<compile_context>
chip_gen: v6e
topology: v6e:2x2x1
jax: 0.10.0
libtpu: 0.0.40
codegen_flags: <defaults>
</compile_context>

<pallas_src>
import functools
import math

import jax
import jax.numpy as jnp
from jax.experimental import pallas as pl
from jax.experimental.pallas import tpu as pltpu


_VMEM_LIMIT = 40 * 1024 * 1024  # explicit scoped-VMEM limit (fits v5e/v6e/v7x)


# --------------------------------------------------------------------------
# Helpers
# --------------------------------------------------------------------------
def _round_up(x, m):
    return (x + m - 1) // m * m


def _pick_tile(dim, candidates):
    for c in candidates:
        if c <= dim and dim % c == 0:
            return c
    return dim


def _gelu_exact(x):
    # exact (erf-based) GELU, matches torch.nn.GELU() default
    return 0.5 * x * (1.0 + jax.lax.erf(x * 0.7071067811865476))


# --------------------------------------------------------------------------
# Pallas kernels
# --------------------------------------------------------------------------
def _linear_kernel(x_ref, w_ref, b_ref, o_ref, acc_ref, *, activation):
    # x: (tm, tk) bf16, w: (tk, tn) bf16, b: (1, tn) f32, acc: (tm, tn) f32
    k = pl.program_id(2)

    @pl.when(k == 0)
    def _():
        acc_ref[...] = jnp.zeros_like(acc_ref)

    acc_ref[...] += jnp.dot(x_ref[...], w_ref[...],
                            preferred_element_type=jnp.float32)

    @pl.when(k == pl.num_programs(2) - 1)
    def _():
        out = acc_ref[...] + b_ref[...]
        if activation == "gelu":
            out = _gelu_exact(out)
        o_ref[...] = out.astype(o_ref.dtype)


def _layernorm_kernel(x_ref, g_ref, b_ref, o_ref, *, eps):
    x = x_ref[...].astype(jnp.float32)
    mean = jnp.mean(x, axis=-1, keepdims=True)
    var = jnp.mean(jnp.square(x - mean), axis=-1, keepdims=True)
    y = (x - mean) * jax.lax.rsqrt(var + eps)
    o_ref[...] = (y * g_ref[...] + b_ref[...]).astype(o_ref.dtype)


def _add_layernorm_kernel(x_ref, y_ref, g_ref, b_ref, o_ref, *, eps):
    # fused residual add + LayerNorm (f32 math, bf16 in/out)
    x = x_ref[...].astype(jnp.float32) + y_ref[...].astype(jnp.float32)
    mean = jnp.mean(x, axis=-1, keepdims=True)
    var = jnp.mean(jnp.square(x - mean), axis=-1, keepdims=True)
    y = (x - mean) * jax.lax.rsqrt(var + eps)
    o_ref[...] = (y * g_ref[...] + b_ref[...]).astype(o_ref.dtype)


def _attention_kernel(q_ref, kv_ref, m_ref, o_ref, *, num_heads, hidden):
    # q_ref : (1, tq, 3H) bf16  -- query tile, fused QKV layout (only [:H] used)
    # kv_ref: (1, S , 3H) bf16  -- full keys/values for this batch element
    # m_ref : (1, 1 , S ) f32   -- additive mask (0 / -1e4)
    # o_ref : (1, tq, H ) bf16  -- lane-dense output (heads concatenated)
    H = hidden
    d = H // num_heads
    mask = m_ref[0]                                          # (1, S), bcast over tq
    outs = []
    for h in range(num_heads):
        qh = q_ref[0, :, h * d:(h + 1) * d]                  # (tq, d) bf16
        kh = kv_ref[0, :, H + h * d:H + (h + 1) * d]         # (S, d)  bf16
        vh = kv_ref[0, :, 2 * H + h * d:2 * H + (h + 1) * d] # (S, d)  bf16
        s = jax.lax.dot_general(qh, kh, (((1,), (1,)), ((), ())),
                                preferred_element_type=jnp.float32)   # (tq, S)
        s = s + mask
        s = s - jnp.max(s, axis=-1, keepdims=True)
        p = jnp.exp(s)
        p = p * pl.reciprocal(jnp.sum(p, axis=-1, keepdims=True), approx=True)
        outs.append(jnp.dot(p.astype(vh.dtype), vh,
                            preferred_element_type=jnp.float32))       # (tq, d)
    o_ref[0] = jnp.concatenate(outs, axis=-1).astype(o_ref.dtype)


# --------------------------------------------------------------------------
# Pallas wrappers
# --------------------------------------------------------------------------
def linear(x2d, w, b, n_valid=None, *, activation=None, out_dtype=jnp.bfloat16):
    """x2d: (M, K) bf16.  w: (K, Np) bf16 (pre-padded).  b: (1, Np) f32.

    Returns (M, n_valid) in out_dtype.  K-reduction tiled last with an f32
    VMEM accumulator; optional fused exact-GELU epilogue.
    """
    M, K = x2d.shape
    Kw, Np = w.shape
    assert Kw == K
    if n_valid is None:
        n_valid = Np

    xb = x2d if x2d.dtype == jnp.bfloat16 else x2d.astype(jnp.bfloat16)
    Mp = _round_up(M, 8)
    if Mp != M:
        xb = jnp.pad(xb, ((0, Mp - M), (0, 0)))

    tm = _pick_tile(Mp, (512, 256, 128, 64, 32, 16, 8))
    tn = _pick_tile(Np, (512, 256, 128))
    tk = _pick_tile(K, (512, 256, 128))
    grid = (Mp // tm, Np // tn, K // tk)

    out = pl.pallas_call(
        functools.partial(_linear_kernel, activation=activation),
        out_shape=jax.ShapeDtypeStruct((Mp, Np), out_dtype),
        grid=grid,
        in_specs=[
            pl.BlockSpec((tm, tk), lambda i, j, k: (i, k)),
            pl.BlockSpec((tk, tn), lambda i, j, k: (k, j)),
            pl.BlockSpec((1, tn), lambda i, j, k: (0, j)),
        ],
        out_specs=pl.BlockSpec((tm, tn), lambda i, j, k: (i, j)),
        scratch_shapes=[pltpu.VMEM((tm, tn), jnp.float32)],
        compiler_params=pltpu.CompilerParams(
            dimension_semantics=("parallel", "parallel", "arbitrary"),
            vmem_limit_bytes=_VMEM_LIMIT),
    )(xb, w, b)

    if Mp != M or Np != n_valid:
        out = out[:M, :n_valid]
    return out


def layer_norm(x2d, g, b, eps):
    M, H = x2d.shape
    Mp = _round_up(M, 8)
    xp = x2d if Mp == M else jnp.pad(x2d, ((0, Mp - M), (0, 0)))
    tm = _pick_tile(Mp, (512, 256, 128, 64, 32, 16, 8))
    out = pl.pallas_call(
        functools.partial(_layernorm_kernel, eps=eps),
        out_shape=jax.ShapeDtypeStruct((Mp, H), jnp.bfloat16),
        grid=(Mp // tm,),
        in_specs=[
            pl.BlockSpec((tm, H), lambda i: (i, 0)),
            pl.BlockSpec((1, H), lambda i: (0, 0)),
            pl.BlockSpec((1, H), lambda i: (0, 0)),
        ],
        out_specs=pl.BlockSpec((tm, H), lambda i: (i, 0)),
        compiler_params=pltpu.CompilerParams(dimension_semantics=("parallel",)),
    )(xp, g.reshape(1, H), b.reshape(1, H))
    return out[:M] if Mp != M else out


def add_layer_norm(x2d, y2d, g, b, eps):
    M, H = x2d.shape
    Mp = _round_up(M, 8)
    xp = x2d if Mp == M else jnp.pad(x2d, ((0, Mp - M), (0, 0)))
    yp = y2d if Mp == M else jnp.pad(y2d, ((0, Mp - M), (0, 0)))
    tm = _pick_tile(Mp, (512, 256, 128, 64, 32, 16, 8))
    out = pl.pallas_call(
        functools.partial(_add_layernorm_kernel, eps=eps),
        out_shape=jax.ShapeDtypeStruct((Mp, H), jnp.bfloat16),
        grid=(Mp // tm,),
        in_specs=[
            pl.BlockSpec((tm, H), lambda i: (i, 0)),
            pl.BlockSpec((tm, H), lambda i: (i, 0)),
            pl.BlockSpec((1, H), lambda i: (0, 0)),
            pl.BlockSpec((1, H), lambda i: (0, 0)),
        ],
        out_specs=pl.BlockSpec((tm, H), lambda i: (i, 0)),
        compiler_params=pltpu.CompilerParams(dimension_semantics=("parallel",)),
    )(xp, yp, g.reshape(1, H), b.reshape(1, H))
    return out[:M] if Mp != M else out


def multihead_attention(qkv, additive_mask, num_heads, hidden):
    """qkv: (B, S, 3H) bf16 fused QKV; additive_mask: (B, 1, S) f32.

    Grid = (B, S // tq): one query tile of ALL heads per step; heads are
    sliced on the lane dimension inside the kernel, so there are no XLA
    q/k/v slices or head transposes, and the output is written lane-dense
    as (B, S, H) bf16.  1/sqrt(head_dim) is pre-folded into W_Q.
    """
    B, S, H3 = qkv.shape
    H = hidden
    assert H3 == 3 * H
    tq = _pick_tile(S, (256, 128, 64, 32, 16, 8))
    nq = S // tq

    out = pl.pallas_call(
        functools.partial(_attention_kernel, num_heads=num_heads, hidden=H),
        out_shape=jax.ShapeDtypeStruct((B, S, H), jnp.bfloat16),
        grid=(B, nq),
        in_specs=[
            pl.BlockSpec((1, tq, H3), lambda b, qi: (b, qi, 0)),   # query tile
            pl.BlockSpec((1, S, H3), lambda b, qi: (b, 0, 0)),     # full K/V
            pl.BlockSpec((1, 1, S), lambda b, qi: (b, 0, 0)),      # mask
        ],
        out_specs=pl.BlockSpec((1, tq, H), lambda b, qi: (b, qi, 0)),
        compiler_params=pltpu.CompilerParams(
            dimension_semantics=("parallel", "parallel"),
            vmem_limit_bytes=_VMEM_LIMIT),
    )(qkv, qkv, additive_mask)
    return out


# --------------------------------------------------------------------------
# Parameter construction (deterministic, synthetic). Weight pad/cast hoisted
# here so the jitted forward never copies weights.
# --------------------------------------------------------------------------
def _pad_last(a, mult=128):
    n = a.shape[-1]
    npad = _round_up(n, mult) - n
    if npad:
        a = jnp.pad(a, [(0, 0)] * (a.ndim - 1) + [(0, npad)])
    return a


def _prep_linear(w, b):
    """w: (K, N) f32, b: (N,) f32 -> ((K, Np) bf16, (1, Np) f32)."""
    wp = _pad_last(w).astype(jnp.bfloat16)
    bp = _pad_last(b.reshape(1, -1)).astype(jnp.float32)
    return (wp, bp)


def init_params(key, *, num_layers, num_heads, vocab_size, hidden_size, max_seq_len):
    H = hidden_size
    d = H // num_heads
    scale = 1.0 / math.sqrt(d)

    def nrm(k, shape, s=0.02):
        return jax.random.normal(k, shape, jnp.float32) * s

    keys = iter(jax.random.split(key, 16 + 8 * num_layers))
    tok_emb = nrm(next(keys), (vocab_size, H))
    p = {
        "tok_emb": tok_emb,                                   # f32 (V, H) for gather
        "pos_emb": nrm(next(keys), (max_seq_len, H)),
        "tt_emb": nrm(next(keys), (2, H)),
        "ln_emb_g": jnp.ones((H,), jnp.float32),
        "ln_emb_b": jnp.zeros((H,), jnp.float32),
        "head": _prep_linear(nrm(next(keys), (H, H)), jnp.zeros((H,), jnp.float32)),
        "head_ln_g": jnp.ones((H,), jnp.float32),
        "head_ln_b": jnp.zeros((H,), jnp.float32),
        # unembedding: pre-transposed (H, V) bf16 copy of the embedding table,
        # so the final matmul uses the normal (K, N) path (no in-kernel transpose)
        "unembed": _prep_linear(
            tok_emb.T, jax.random.normal(next(keys), (vocab_size,), jnp.float32)),
        "blocks": [],
    }
    for _ in range(num_layers):
        wq = nrm(next(keys), (H, H))
        wk = nrm(next(keys), (H, H))
        wv = nrm(next(keys), (H, H))
        # fused QKV projection; 1/sqrt(d) folded into the Q columns
        wqkv = jnp.concatenate([wq * scale, wk, wv], axis=1)
        bqkv = jnp.zeros((3 * H,), jnp.float32)
        blk = {
            "qkv": _prep_linear(wqkv, bqkv),
            "o": _prep_linear(nrm(next(keys), (H, H)), jnp.zeros((H,), jnp.float32)),
            "ln1_g": jnp.ones((H,), jnp.float32), "ln1_b": jnp.zeros((H,), jnp.float32),
            "mlp1": _prep_linear(nrm(next(keys), (H, 4 * H)),
                                 jnp.zeros((4 * H,), jnp.float32)),
            "mlp2": _prep_linear(nrm(next(keys), (4 * H, H)),
                                 jnp.zeros((H,), jnp.float32)),
            "ln2_g": jnp.ones((H,), jnp.float32), "ln2_b": jnp.zeros((H,), jnp.float32),
        }
        p["blocks"].append(blk)
    return p


# --------------------------------------------------------------------------
# Forward pass (mirrors BertLanguageModel.forward)
# --------------------------------------------------------------------------
def bert_language_model(params, ids, one_zero_attention_mask=None,
                        token_type_ids=None, *, num_heads, eps=1e-12):
    B, S = ids.shape
    V, H = params["tok_emb"].shape

    # --- BERTCommon embeddings (gathers are XLA glue) ---
    tok = jnp.take(params["tok_emb"], ids, axis=0)                       # (B,S,H)
    pos = params["pos_emb"][:S][None, :, :]                              # (1,S,H)
    tt_ids = token_type_ids if token_type_ids is not None else jnp.zeros_like(ids)
    tt = jnp.take(params["tt_emb"], tt_ids, axis=0)                      # (B,S,H)
    x2 = (tok + pos + tt).reshape(B * S, H)
    x2 = layer_norm(x2, params["ln_emb_g"], params["ln_emb_b"], eps)     # bf16
    # nn.Dropout: identity in eval/inference mode.

    # make_additive_attention_mask
    if one_zero_attention_mask is not None:
        add_mask = jnp.where(one_zero_attention_mask.astype(bool), 0.0, -10000.0)
        add_mask = add_mask.astype(jnp.float32).reshape(B, 1, S)
    else:
        add_mask = jnp.zeros((B, 1, S), jnp.float32)

    # --- BERT blocks (bf16 residual stream) ---
    for blk in params["blocks"]:
        wqkv, bqkv = blk["qkv"]
        qkv = linear(x2, wqkv, bqkv, 3 * H)                              # (M,3H) bf16
        attn = multihead_attention(qkv.reshape(B, S, 3 * H), add_mask,
                                   num_heads, H)                          # (B,S,H) bf16
        wo, bo = blk["o"]
        y = linear(attn.reshape(B * S, H), wo, bo, H)                    # bf16
        x2 = add_layer_norm(x2, y, blk["ln1_g"], blk["ln1_b"], eps)
        w1, b1 = blk["mlp1"]
        h = linear(x2, w1, b1, 4 * H, activation="gelu")                 # bf16, fused GELU
        w2, b2 = blk["mlp2"]
        z = linear(h, w2, b2, H)                                         # bf16
        # MLP dropout: identity in eval mode.
        x2 = add_layer_norm(x2, z, blk["ln2_g"], blk["ln2_b"], eps)

    # --- LM head ---
    hw, hb = params["head"]
    x2 = linear(x2, hw, hb, H, activation="gelu")
    x2 = layer_norm(x2, params["head_ln_g"], params["head_ln_b"], eps)
    # einsum('v h, b s h -> b s v') == x @ E^T: uses the pre-transposed (H, V)
    # bf16 table from init (no runtime transpose), logits stay f32.
    uw, ub = params["unembed"]
    logits = linear(x2, uw, ub, V, out_dtype=jnp.float32)
    return logits.reshape(B, S, V)


# --------------------------------------------------------------------------
if __name__ == "__main__":
    # Small config consistent with the module (scaled-down BERT).
    NUM_LAYERS = 2
    NUM_HEADS = 4
    VOCAB = 512
    HIDDEN = 128
    MAX_SEQ = 64
    BATCH, SEQ = 2, 16

    key = jax.random.PRNGKey(0)
    pkey, ikey, mkey = jax.random.split(key, 3)
    params = init_params(
        pkey,
        num_layers=NUM_LAYERS,
        num_heads=NUM_HEADS,
        vocab_size=VOCAB,
        hidden_size=HIDDEN,
        max_seq_len=MAX_SEQ,
    )

    input_ids = jax.random.randint(ikey, (BATCH, SEQ), 0, VOCAB, dtype=jnp.int32)
    # mask: first 12 tokens valid, last 4 padding
    one_zero_mask = jnp.concatenate(
        [jnp.ones((BATCH, 12), jnp.int32), jnp.zeros((BATCH, SEQ - 12), jnp.int32)],
        axis=1,
    )
    token_type_ids = jnp.zeros((BATCH, SEQ), jnp.int32)

    fwd = jax.jit(
        functools.partial(bert_language_model, num_heads=NUM_HEADS, eps=1e-12)
    )
    out = fwd(params, input_ids, one_zero_mask, token_type_ids)
    out = jax.block_until_ready(out)
    assert out.shape == (BATCH, SEQ, VOCAB), out.shape
    assert jnp.all(jnp.isfinite(out))
    print("KERNEL_OK")
</pallas_src>

<mosaic_0001>
module attributes {stable_mosaic.version = 11 : i64} {
  func.func @_linear_kernel(%arg0: i32, %arg1: i32, %arg2: i32, %arg3: memref<32x128xbf16, #tpu.memory_space<vmem>>, %arg4: memref<128x128xbf16, #tpu.memory_space<vmem>>, %arg5: memref<1x128xf32, #tpu.memory_space<vmem>>, %arg6: memref<32x128xbf16, #tpu.memory_space<vmem>>, %arg7: memref<32x128xf32, #tpu.memory_space<vmem>>) attributes {dimension_semantics = [#tpu.dimension_semantics<parallel>, #tpu.dimension_semantics<parallel>, #tpu.dimension_semantics<arbitrary>], iteration_bounds = array<i64: 1, 3, 1>, scalar_prefetch = 0 : i64, scratch_operands = 1 : i64, tpu.core_type = #tpu.core_type<tc>, window_params = [{transform_indices = @transform_0, window_bounds = array<i64: 32, 128>}, {transform_indices = @transform_1, window_bounds = array<i64: 128, 128>}, {transform_indices = @transform_2, window_bounds = array<i64: 1, 128>}, {transform_indices = @transform_3, window_bounds = array<i64: 32, 128>}]} {
    %c0_i32 = arith.constant 0 : i32
    %0 = arith.cmpi eq, %arg2, %c0_i32 : i32
    %1 = arith.extui %0 : i1 to i32
    %c0_i32_0 = arith.constant 0 : i32
    %2 = arith.cmpi ne, %1, %c0_i32_0 : i32
    scf.if %2 {
      %cst_10 = arith.constant 0.000000e+00 : f32
      %12 = vector.broadcast %cst_10 : f32 to vector<32x128xf32>
      %c0_11 = arith.constant 0 : index
      %c0_12 = arith.constant 0 : index
      %13 = vector.load %arg7[%c0_11, %c0_12] : memref<32x128xf32, #tpu.memory_space<vmem>>, vector<32x128xf32>
      tpu.vector_store %arg7[%c0_11, %c0_12], %12 {strides = array<i32>} : memref<32x128xf32, #tpu.memory_space<vmem>>, vector<32x128xf32>,
    } else {
    }
    %c0 = arith.constant 0 : index
    %c0_1 = arith.constant 0 : index
    %3 = vector.load %arg7[%c0, %c0_1] : memref<32x128xf32, #tpu.memory_space<vmem>>, vector<32x128xf32>
    %c0_2 = arith.constant 0 : index
    %c0_3 = arith.constant 0 : index
    %4 = vector.load %arg3[%c0_2, %c0_3] : memref<32x128xbf16, #tpu.memory_space<vmem>>, vector<32x128xbf16>
    %c0_4 = arith.constant 0 : index
    %c0_5 = arith.constant 0 : index
    %5 = vector.load %arg4[%c0_4, %c0_5] : memref<128x128xbf16, #tpu.memory_space<vmem>>, vector<128x128xbf16>
    %cst = arith.constant dense<0.000000e+00> : vector<32x128xf32>
    %6 = tpu.matmul %4, %5, %cst {dimension_numbers = #tpu.dot_dimension_numbers<[1], [0], [0], [1], [0, 0, 1, 1], [], []>} : vector<32x128xbf16>, vector<128x128xbf16>, vector<32x128xf32> -> vector<32x128xf32>
    %7 = arith.addf %3, %6 : vector<32x128xf32>
    %c0_6 = arith.constant 0 : index
    %c0_7 = arith.constant 0 : index
    %8 = vector.load %arg7[%c0_6, %c0_7] : memref<32x128xf32, #tpu.memory_space<vmem>>, vector<32x128xf32>
    tpu.vector_store %arg7[%c0_6, %c0_7], %7 {strides = array<i32>} : memref<32x128xf32, #tpu.memory_space<vmem>>, vector<32x128xf32>,
    %c0_i32_8 = arith.constant 0 : i32
    %9 = arith.cmpi eq, %arg2, %c0_i32_8 : i32
    %10 = arith.extui %9 : i1 to i32
    %c0_i32_9 = arith.constant 0 : i32
    %11 = arith.cmpi ne, %10, %c0_i32_9 : i32
    scf.if %11 {
      %c0_10 = arith.constant 0 : index
      %c0_11 = arith.constant 0 : index
      %12 = vector.load %arg7[%c0_10, %c0_11] : memref<32x128xf32, #tpu.memory_space<vmem>>, vector<32x128xf32>
      %c0_12 = arith.constant 0 : index
      %c0_13 = arith.constant 0 : index
      %13 = vector.load %arg5[%c0_12, %c0_13] : memref<1x128xf32, #tpu.memory_space<vmem>>, vector<1x128xf32>
      %14 = vector.broadcast %13 : vector<1x128xf32> to vector<32x128xf32>
      %15 = arith.addf %12, %14 : vector<32x128xf32>
      %16 = arith.truncf %15 : vector<32x128xf32> to vector<32x128xbf16>
      %c0_14 = arith.constant 0 : index
      %c0_15 = arith.constant 0 : index
      %17 = vector.load %arg6[%c0_14, %c0_15] : memref<32x128xbf16, #tpu.memory_space<vmem>>, vector<32x128xbf16>
      tpu.vector_store %arg6[%c0_14, %c0_15], %16 {strides = array<i32>} : memref<32x128xbf16, #tpu.memory_space<vmem>>, vector<32x128xbf16>,
    } else {
    }
    return
  }
  func.func @transform_0(%arg0: i32, %arg1: i32, %arg2: i32) -> (i32, i32) {
    %c0_i32 = arith.constant 0 : i32
    return %arg0, %arg2 : i32, i32
  }
  func.func @transform_1(%arg0: i32, %arg1: i32, %arg2: i32) -> (i32, i32) {
    %c0_i32 = arith.constant 0 : i32
    return %arg2, %arg1 : i32, i32
  }
  func.func @transform_2(%arg0: i32, %arg1: i32, %arg2: i32) -> (i32, i32) {
    %c0_i32 = arith.constant 0 : i32
    %c0_i32_0 = arith.constant 0 : i32
    return %c0_i32, %arg1 : i32, i32
  }
  func.func @transform_3(%arg0: i32, %arg1: i32, %arg2: i32) -> (i32, i32) {
    %c0_i32 = arith.constant 0 : i32
    return %arg0, %arg1 : i32, i32
  }
}

module attributes {stable_mosaic.version = 11 : i64} {
  func.func @_attention_kernel(%arg0: i32, %arg1: i32, %arg2: memref<1x16x384xbf16, #tpu.memory_space<vmem>>, %arg3: memref<1x16x384xbf16, #tpu.memory_space<vmem>>, %arg4: memref<1x1x16xf32, #tpu.memory_space<vmem>>, %arg5: memref<1x16x128xbf16, #tpu.memory_space<vmem>>) attributes {dimension_semantics = [#tpu.dimension_semantics<parallel>, #tpu.dimension_semantics<parallel>], iteration_bounds = array<i64: 2, 1>, scalar_prefetch = 0 : i64, scratch_operands = 0 : i64, tpu.core_type = #tpu.core_type<tc>, window_params = [{transform_indices = @transform_0, window_bounds = array<i64: 1, 16, 384>}, {transform_indices = @transform_1, window_bounds = array<i64: 1, 16, 384>}, {transform_indices = @transform_2, window_bounds = array<i64: 1, 1, 16>}, {transform_indices = @transform_3, window_bounds = array<i64: 1, 16, 128>}]} {
    %c0 = arith.constant 0 : index
    %c0_0 = arith.constant 0 : index
    %c0_1 = arith.constant 0 : index
    %0 = vector.load %arg4[%c0, %c0_0, %c0_1] : memref<1x1x16xf32, #tpu.memory_space<vmem>>, vector<1x1x16xf32>
    %1 = vector.shape_cast %0 : vector<1x1x16xf32> to vector<1x16xf32>
    %c0_2 = arith.constant 0 : index
    %c0_3 = arith.constant 0 : index
    %c0_4 = arith.constant 0 : index
    %2 = vector.load %arg2[%c0_2, %c0_3, %c0_4] : memref<1x16x384xbf16, #tpu.memory_space<vmem>>, vector<1x16x32xbf16>
    %3 = vector.shape_cast %2 : vector<1x16x32xbf16> to vector<16x32xbf16>
    %c0_5 = arith.constant 0 : index
    %c0_6 = arith.constant 0 : index
    %c128 = arith.constant 128 : index
    %4 = vector.load %arg3[%c0_5, %c0_6, %c128] : memref<1x16x384xbf16, #tpu.memory_space<vmem>>, vector<1x16x32xbf16>
    %5 = vector.shape_cast %4 : vector<1x16x32xbf16> to vector<16x32xbf16>
    %c0_7 = arith.constant 0 : index
    %c0_8 = arith.constant 0 : index
    %c256 = arith.constant 256 : index
    %6 = vector.load %arg3[%c0_7, %c0_8, %c256] : memref<1x16x384xbf16, #tpu.memory_space<vmem>>, vector<1x16x32xbf16>
    %7 = vector.shape_cast %6 : vector<1x16x32xbf16> to vector<16x32xbf16>
    %cst = arith.constant dense<0.000000e+00> : vector<16x16xf32>
    %8 = tpu.matmul %3, %5, %cst {dimension_numbers = #tpu.dot_dimension_numbers<[1], [1], [0], [0], [0, 0, 1, 0], [], []>} : vector<16x32xbf16>, vector<16x32xbf16>, vector<16x16xf32> -> vector<16x16xf32>
    %9 = vector.broadcast %1 : vector<1x16xf32> to vector<16x16xf32>
    %10 = arith.addf %8, %9 : vector<16x16xf32>
    %cst_9 = arith.constant dense<0xFF800000> : vector<16xf32>
    %11 = vector.multi_reduction <maximumf>, %10, %cst_9 [1] : vector<16x16xf32> to vector<16xf32>
    %12 = vector.shape_cast %11 : vector<16xf32> to vector<16x1xf32>
    %13 = vector.broadcast %12 : vector<16x1xf32> to vector<16x16xf32>
    %14 = arith.subf %10, %13 : vector<16x16xf32>
    %15 = math.exp %14 : vector<16x16xf32>
    %cst_10 = arith.constant dense<0.000000e+00> : vector<16xf32>
    %16 = vector.multi_reduction <add>, %15, %cst_10 [1] : vector<16x16xf32> to vector<16xf32>
    %17 = vector.shape_cast %16 : vector<16xf32> to vector<16x1xf32>
    %18 = tpu.reciprocal %17 {approx = true} : vector<16x1xf32> -> vector<16x1xf32>
    %19 = vector.broadcast %18 : vector<16x1xf32> to vector<16x16xf32>
    %20 = arith.mulf %15, %19 : vector<16x16xf32>
    %21 = arith.truncf %20 : vector<16x16xf32> to vector<16x16xbf16>
    %cst_11 = arith.constant dense<0.000000e+00> : vector<16x32xf32>
    %22 = tpu.matmul %21, %7, %cst_11 {dimension_numbers = #tpu.dot_dimension_numbers<[1], [0], [0], [1], [0, 0, 1, 1], [], []>} : vector<16x16xbf16>, vector<16x32xbf16>, vector<16x32xf32> -> vector<16x32xf32>
    %c0_12 = arith.constant 0 : index
    %c0_13 = arith.constant 0 : index
    %c32 = arith.constant 32 : index
    %23 = vector.load %arg2[%c0_12, %c0_13, %c32] : memref<1x16x384xbf16, #tpu.memory_space<vmem>>, vector<1x16x32xbf16>
    %24 = vector.shape_cast %23 : vector<1x16x32xbf16> to vector<16x32xbf16>
    %c0_14 = arith.constant 0 : index
    %c0_15 = arith.constant 0 : index
    %c160 = arith.constant 160 : index
    %25 = vector.load %arg3[%c0_14, %c0_15, %c160] : memref<1x16x384xbf16, #tpu.memory_space<vmem>>, vector<1x16x32xbf16>
    %26 = vector.shape_cast %25 : vector<1x16x32xbf16> to vector<16x32xbf16>
    %c0_16 = arith.constant 0 : index
    %c0_17 = arith.constant 0 : index
    %c288 = arith.constant 288 : index
    %27 = vector.load %arg3[%c0_16, %c0_17, %c288] : memref<1x16x384xbf16, #tpu.memory_space<vmem>>, vector<1x16x32xbf16>
    %28 = vector.shape_cast %27 : vector<1x16x32xbf16> to vector<16x32xbf16>
    %cst_18 = arith.constant dense<0.000000e+00> : vector<16x16xf32>
    %29 = tpu.matmul %24, %26, %cst_18 {dimension_numbers = #tpu.dot_dimension_numbers<[1], [1], [0], [0], [0, 0, 1, 0], [], []>} : vector<16x32xbf16>, vector<16x32xbf16>, vector<16x16xf32> -> vector<16x16xf32>
    %30 = vector.broadcast %1 : vector<1x16xf32> to vector<16x16xf32>
    %31 = arith.addf %29, %30 : vector<16x16xf32>
    %cst_19 = arith.constant dense<0xFF800000> : vector<16xf32>
    %32 = vector.multi_reduction <maximumf>, %31, %cst_19 [1] : vector<16x16xf32> to vector<16xf32>
    %33 = vector.shape_cast %32 : vector<16xf32> to vector<16x1xf32>
    %34 = vector.broadcast %33 : vector<16x1xf32> to vector<16x16xf32>
    %35 = arith.subf %31, %34 : vector<16x16xf32>
    %36 = math.exp %35 : vector<16x16xf32>
    %cst_20 = arith.constant dense<0.000000e+00> : vector<16xf32>
    %37 = vector.multi_reduction <add>, %36, %cst_20 [1] : vector<16x16xf32> to vector<16xf32>
    %38 = vector.shape_cast %37 : vector<16xf32> to vector<16x1xf32>
    %39 = tpu.reciprocal %38 {approx = true} : vector<16x1xf32> -> vector<16x1xf32>
    %40 = vector.broadcast %39 : vector<16x1xf32> to vector<16x16xf32>
    %41 = arith.mulf %36, %40 : vector<16x16xf32>
    %42 = arith.truncf %41 : vector<16x16xf32> to vector<16x16xbf16>
    %cst_21 = arith.constant dense<0.000000e+00> : vector<16x32xf32>
    %43 = tpu.matmul %42, %28, %cst_21 {dimension_numbers = #tpu.dot_dimension_numbers<[1], [0], [0], [1], [0, 0, 1, 1], [], []>} : vector<16x16xbf16>, vector<16x32xbf16>, vector<16x32xf32> -> vector<16x32xf32>
    %c0_22 = arith.constant 0 : index
    %c0_23 = arith.constant 0 : index
    %c64 = arith.constant 64 : index
    %44 = vector.load %arg2[%c0_22, %c0_23, %c64] : memref<1x16x384xbf16, #tpu.memory_space<vmem>>, vector<1x16x32xbf16>
    %45 = vector.shape_cast %44 : vector<1x16x32xbf16> to vector<16x32xbf16>
    %c0_24 = arith.constant 0 : index
    %c0_25 = arith.constant 0 : index
    %c192 = arith.constant 192 : index
    %46 = vector.load %arg3[%c0_24, %c0_25, %c192] : memref<1x16x384xbf16, #tpu.memory_space<vmem>>, vector<1x16x32xbf16>
    %47 = vector.shape_cast %46 : vector<1x16x32xbf16> to vector<16x32xbf16>
    %c0_26 = arith.constant 0 : index
    %c0_27 = arith.constant 0 : index
    %c320 = arith.constant 320 : index
    %48 = vector.load %arg3[%c0_26, %c0_27, %c320] : memref<1x16x384xbf16, #tpu.memory_space<vmem>>, vector<1x16x32xbf16>
    %49 = vector.shape_cast %48 : vector<1x16x32xbf16> to vector<16x32xbf16>
    %cst_28 = arith.constant dense<0.000000e+00> : vector<16x16xf32>
    %50 = tpu.matmul %45, %47, %cst_28 {dimension_numbers = #tpu.dot_dimension_numbers<[1], [1], [0], [0], [0, 0, 1, 0], [], []>} : vector<16x32xbf16>, vector<16x32xbf16>, vector<16x16xf32> -> vector<16x16xf32>
    %51 = vector.broadcast %1 : vector<1x16xf32> to vector<16x16xf32>
    %52 = arith.addf %50, %51 : vector<16x16xf32>
    %cst_29 = arith.constant dense<0xFF800000> : vector<16xf32>
    %53 = vector.multi_reduction <maximumf>, %52, %cst_29 [1] : vector<16x16xf32> to vector<16xf32>
    %54 = vector.shape_cast %53 : vector<16xf32> to vector<16x1xf32>
    %55 = vector.broadcast %54 : vector<16x1xf32> to vector<16x16xf32>
    %56 = arith.subf %52, %55 : vector<16x16xf32>
    %57 = math.exp %56 : vector<16x16xf32>
    %cst_30 = arith.constant dense<0.000000e+00> : vector<16xf32>
    %58 = vector.multi_reduction <add>, %57, %cst_30 [1] : vector<16x16xf32> to vector<16xf32>
    %59 = vector.shape_cast %58 : vector<16xf32> to vector<16x1xf32>
    %60 = tpu.reciprocal %59 {approx = true} : vector<16x1xf32> -> vector<16x1xf32>
    %61 = vector.broadcast %60 : vector<16x1xf32> to vector<16x16xf32>
    %62 = arith.mulf %57, %61 : vector<16x16xf32>
    %63 = arith.truncf %62 : vector<16x16xf32> to vector<16x16xbf16>
    %cst_31 = arith.constant dense<0.000000e+00> : vector<16x32xf32>
    %64 = tpu.matmul %63, %49, %cst_31 {dimension_numbers = #tpu.dot_dimension_numbers<[1], [0], [0], [1], [0, 0, 1, 1], [], []>} : vector<16x16xbf16>, vector<16x32xbf16>, vector<16x32xf32> -> vector<16x32xf32>
    %c0_32 = arith.constant 0 : index
    %c0_33 = arith.constant 0 : index
    %c96 = arith.constant 96 : index
    %65 = vector.load %arg2[%c0_32, %c0_33, %c96] : memref<1x16x384xbf16, #tpu.memory_space<vmem>>, vector<1x16x32xbf16>
    %66 = vector.shape_cast %65 : vector<1x16x32xbf16> to vector<16x32xbf16>
    %c0_34 = arith.constant 0 : index
    %c0_35 = arith.constant 0 : index
    %c224 = arith.constant 224 : index
    %67 = vector.load %arg3[%c0_34, %c0_35, %c224] : memref<1x16x384xbf16, #tpu.memory_space<vmem>>, vector<1x16x32xbf16>
    %68 = vector.shape_cast %67 : vector<1x16x32xbf16> to vector<16x32xbf16>
    %c0_36 = arith.constant 0 : index
    %c0_37 = arith.constant 0 : index
    %c352 = arith.constant 352 : index
    %69 = vector.load %arg3[%c0_36, %c0_37, %c352] : memref<1x16x384xbf16, #tpu.memory_space<vmem>>, vector<1x16x32xbf16>
    %70 = vector.shape_cast %69 : vector<1x16x32xbf16> to vector<16x32xbf16>
    %cst_38 = arith.constant dense<0.000000e+00> : vector<16x16xf32>
    %71 = tpu.matmul %66, %68, %cst_38 {dimension_numbers = #tpu.dot_dimension_numbers<[1], [1], [0], [0], [0, 0, 1, 0], [], []>} : vector<16x32xbf16>, vector<16x32xbf16>, vector<16x16xf32> -> vector<16x16xf32>
    %72 = vector.broadcast %1 : vector<1x16xf32> to vector<16x16xf32>
    %73 = arith.addf %71, %72 : vector<16x16xf32>
    %cst_39 = arith.constant dense<0xFF800000> : vector<16xf32>
    %74 = vector.multi_reduction <maximumf>, %73, %cst_39 [1] : vector<16x16xf32> to vector<16xf32>
    %75 = vector.shape_cast %74 : vector<16xf32> to vector<16x1xf32>
    %76 = vector.broadcast %75 : vector<16x1xf32> to vector<16x16xf32>
    %77 = arith.subf %73, %76 : vector<16x16xf32>
    %78 = math.exp %77 : vector<16x16xf32>
    %cst_40 = arith.constant dense<0.000000e+00> : vector<16xf32>
    %79 = vector.multi_reduction <add>, %78, %cst_40 [1] : vector<16x16xf32> to vector<16xf32>
    %80 = vector.shape_cast %79 : vector<16xf32> to vector<16x1xf32>
    %81 = tpu.reciprocal %80 {approx = true} : vector<16x1xf32> -> vector<16x1xf32>
    %82 = vector.broadcast %81 : vector<16x1xf32> to vector<16x16xf32>
    %83 = arith.mulf %78, %82 : vector<16x16xf32>
    %84 = arith.truncf %83 : vector<16x16xf32> to vector<16x16xbf16>
    %cst_41 = arith.constant dense<0.000000e+00> : vector<16x32xf32>
    %85 = tpu.matmul %84, %70, %cst_41 {dimension_numbers = #tpu.dot_dimension_numbers<[1], [0], [0], [1], [0, 0, 1, 1], [], []>} : vector<16x16xbf16>, vector<16x32xbf16>, vector<16x32xf32> -> vector<16x32xf32>
    %86 = tpu.concatenate %22, %43, %64, %85 in 1 : vector<16x32xf32>, vector<16x32xf32>, vector<16x32xf32>, vector<16x32xf32> -> vector<16x128xf32>
    %87 = arith.truncf %86 : vector<16x128xf32> to vector<16x128xbf16>
    %c0_42 = arith.constant 0 : index
    %c0_43 = arith.constant 0 : index
    %c0_44 = arith.constant 0 : index
    %88 = vector.load %arg5[%c0_42, %c0_43, %c0_44] : memref<1x16x128xbf16, #tpu.memory_space<vmem>>, vector<1x16x128xbf16>
    %89 = vector.shape_cast %88 : vector<1x16x128xbf16> to vector<16x128xbf16>
    %90 = vector.shape_cast %87 : vector<16x128xbf16> to vector<1x16x128xbf16>
    tpu.vector_store %arg5[%c0_42, %c0_43, %c0_44], %90 {strides = array<i32>} : memref<1x16x128xbf16, #tpu.memory_space<vmem>>, vector<1x16x128xbf16>,
    return
  }
  func.func @transform_0(%arg0: i32, %arg1: i32) -> (i32, i32, i32) {
    %c0_i32 = arith.constant 0 : i32
    %c0_i32_0 = arith.constant 0 : i32
    return %arg0, %arg1, %c0_i32 : i32, i32, i32
  }
  func.func @transform_1(%arg0: i32, %arg1: i32) -> (i32, i32, i32) {
    %c0_i32 = arith.constant 0 : i32
    %c0_i32_0 = arith.constant 0 : i32
    %c0_i32_1 = arith.constant 0 : i32
    return %arg0, %c0_i32, %c0_i32_0 : i32, i32, i32
  }
  func.func @transform_2(%arg0: i32, %arg1: i32) -> (i32, i32, i32) {
    %c0_i32 = arith.constant 0 : i32
    %c0_i32_0 = arith.constant 0 : i32
    %c0_i32_1 = arith.constant 0 : i32
    return %arg0, %c0_i32, %c0_i32_0 : i32, i32, i32
  }
  func.func @transform_3(%arg0: i32, %arg1: i32) -> (i32, i32, i32) {
    %c0_i32 = arith.constant 0 : i32
    %c0_i32_0 = arith.constant 0 : i32
    return %arg0, %arg1, %c0_i32 : i32, i32, i32
  }
}

module attributes {stable_mosaic.version = 11 : i64} {
  func.func @_layernorm_kernel(%arg0: i32, %arg1: memref<32x128xf32, #tpu.memory_space<vmem>>, %arg2: memref<1x128xf32, #tpu.memory_space<vmem>>, %arg3: memref<1x128xf32, #tpu.memory_space<vmem>>, %arg4: memref<32x128xbf16, #tpu.memory_space<vmem>>) attributes {dimension_semantics = [#tpu.dimension_semantics<parallel>], iteration_bounds = array<i64: 1>, scalar_prefetch = 0 : i64, scratch_operands = 0 : i64, tpu.core_type = #tpu.core_type<tc>, window_params = [{transform_indices = @transform_0, window_bounds = array<i64: 32, 128>}, {pipeline_mode = #tpu.pipeline_mode<synchronous>, transform_indices = @transform_1, window_bounds = array<i64: 1, 128>}, {pipeline_mode = #tpu.pipeline_mode<synchronous>, transform_indices = @transform_2, window_bounds = array<i64: 1, 128>}, {transform_indices = @transform_3, window_bounds = array<i64: 32, 128>}]} {
    %c0 = arith.constant 0 : index
    %c0_0 = arith.constant 0 : index
    %0 = vector.load %arg1[%c0, %c0_0] : memref<32x128xf32, #tpu.memory_space<vmem>>, vector<32x128xf32>
    %cst = arith.constant dense<0.000000e+00> : vector<32xf32>
    %1 = vector.multi_reduction <add>, %0, %cst [1] : vector<32x128xf32> to vector<32xf32>
    %2 = vector.shape_cast %1 : vector<32xf32> to vector<32x1xf32>
    %cst_1 = arith.constant 1.280000e+02 : f32
    %3 = vector.broadcast %cst_1 : f32 to vector<32x1xf32>
    %4 = arith.divf %2, %3 : vector<32x1xf32>
    %5 = vector.broadcast %4 : vector<32x1xf32> to vector<32x128xf32>
    %6 = arith.subf %0, %5 : vector<32x128xf32>
    %7 = arith.mulf %6, %6 : vector<32x128xf32>
    %cst_2 = arith.constant dense<0.000000e+00> : vector<32xf32>
    %8 = vector.multi_reduction <add>, %7, %cst_2 [1] : vector<32x128xf32> to vector<32xf32>
    %9 = vector.shape_cast %8 : vector<32xf32> to vector<32x1xf32>
    %cst_3 = arith.constant 1.280000e+02 : f32
    %10 = vector.broadcast %cst_3 : f32 to vector<32x1xf32>
    %11 = arith.divf %9, %10 : vector<32x1xf32>
    %12 = vector.broadcast %4 : vector<32x1xf32> to vector<32x128xf32>
    %13 = arith.subf %0, %12 : vector<32x128xf32>
    %cst_4 = arith.constant 9.99999996E-13 : f32
    %14 = vector.broadcast %cst_4 : f32 to vector<32x1xf32>
    %15 = arith.addf %11, %14 : vector<32x1xf32>
    %16 = math.rsqrt %15 : vector<32x1xf32>
    %17 = vector.broadcast %16 : vector<32x1xf32> to vector<32x128xf32>
    %18 = arith.mulf %13, %17 : vector<32x128xf32>
    %c0_5 = arith.constant 0 : index
    %c0_6 = arith.constant 0 : index
    %19 = vector.load %arg2[%c0_5, %c0_6] : memref<1x128xf32, #tpu.memory_space<vmem>>, vector<1x128xf32>
    %20 = vector.broadcast %19 : vector<1x128xf32> to vector<32x128xf32>
    %21 = arith.mulf %18, %20 : vector<32x128xf32>
    %c0_7 = arith.constant 0 : index
    %c0_8 = arith.constant 0 : index
    %22 = vector.load %arg3[%c0_7, %c0_8] : memref<1x128xf32, #tpu.memory_space<vmem>>, vector<1x128xf32>
    %23 = vector.broadcast %22 : vector<1x128xf32> to vector<32x128xf32>
    %24 = arith.addf %21, %23 : vector<32x128xf32>
    %25 = arith.truncf %24 : vector<32x128xf32> to vector<32x128xbf16>
    %c0_9 = arith.constant 0 : index
    %c0_10 = arith.constant 0 : index
    %26 = vector.load %arg4[%c0_9, %c0_10] : memref<32x128xbf16, #tpu.memory_space<vmem>>, vector<32x128xbf16>
    tpu.vector_store %arg4[%c0_9, %c0_10], %25 {strides = array<i32>} : memref<32x128xbf16, #tpu.memory_space<vmem>>, vector<32x128xbf16>,
    return
  }
  func.func @transform_0(%arg0: i32) -> (i32, i32) {
    %c0_i32 = arith.constant 0 : i32
    %c0_i32_0 = arith.constant 0 : i32
    return %arg0, %c0_i32 : i32, i32
  }
  func.func @transform_1(%arg0: i32) -> (i32, i32) {
    %c0_i32 = arith.constant 0 : i32
    %c0_i32_0 = arith.constant 0 : i32
    %c0_i32_1 = arith.constant 0 : i32
    return %c0_i32, %c0_i32_0 : i32, i32
  }
  func.func @transform_2(%arg0: i32) -> (i32, i32) {
    %c0_i32 = arith.constant 0 : i32
    %c0_i32_0 = arith.constant 0 : i32
    %c0_i32_1 = arith.constant 0 : i32
    return %c0_i32, %c0_i32_0 : i32, i32
  }
  func.func @transform_3(%arg0: i32) -> (i32, i32) {
    %c0_i32 = arith.constant 0 : i32
    %c0_i32_0 = arith.constant 0 : i32
    return %arg0, %c0_i32 : i32, i32
  }
}

module attributes {stable_mosaic.version = 11 : i64} {
  func.func @_linear_kernel(%arg0: i32, %arg1: i32, %arg2: i32, %arg3: memref<32x128xbf16, #tpu.memory_space<vmem>>, %arg4: memref<128x128xbf16, #tpu.memory_space<vmem>>, %arg5: memref<1x128xf32, #tpu.memory_space<vmem>>, %arg6: memref<32x128xbf16, #tpu.memory_space<vmem>>, %arg7: memref<32x128xf32, #tpu.memory_space<vmem>>) attributes {dimension_semantics = [#tpu.dimension_semantics<parallel>, #tpu.dimension_semantics<parallel>, #tpu.dimension_semantics<arbitrary>], iteration_bounds = array<i64: 1, 1, 1>, scalar_prefetch = 0 : i64, scratch_operands = 1 : i64, tpu.core_type = #tpu.core_type<tc>, window_params = [{transform_indices = @transform_0, window_bounds = array<i64: 32, 128>}, {transform_indices = @transform_1, window_bounds = array<i64: 128, 128>}, {transform_indices = @transform_2, window_bounds = array<i64: 1, 128>}, {transform_indices = @transform_3, window_bounds = array<i64: 32, 128>}]} {
    %c0_i32 = arith.constant 0 : i32
    %0 = arith.cmpi eq, %arg2, %c0_i32 : i32
    %1 = arith.extui %0 : i1 to i32
    %c0_i32_0 = arith.constant 0 : i32
    %2 = arith.cmpi ne, %1, %c0_i32_0 : i32
    scf.if %2 {
      %cst_10 = arith.constant 0.000000e+00 : f32
      %12 = vector.broadcast %cst_10 : f32 to vector<32x128xf32>
      %c0_11 = arith.constant 0 : index
      %c0_12 = arith.constant 0 : index
      %13 = vector.load %arg7[%c0_11, %c0_12] : memref<32x128xf32, #tpu.memory_space<vmem>>, vector<32x128xf32>
      tpu.vector_store %arg7[%c0_11, %c0_12], %12 {strides = array<i32>} : memref<32x128xf32, #tpu.memory_space<vmem>>, vector<32x128xf32>,
    } else {
    }
    %c0 = arith.constant 0 : index
    %c0_1 = arith.constant 0 : index
    %3 = vector.load %arg7[%c0, %c0_1] : memref<32x128xf32, #tpu.memory_space<vmem>>, vector<32x128xf32>
    %c0_2 = arith.constant 0 : index
    %c0_3 = arith.constant 0 : index
    %4 = vector.load %arg3[%c0_2, %c0_3] : memref<32x128xbf16, #tpu.memory_space<vmem>>, vector<32x128xbf16>
    %c0_4 = arith.constant 0 : index
    %c0_5 = arith.constant 0 : index
    %5 = vector.load %arg4[%c0_4, %c0_5] : memref<128x128xbf16, #tpu.memory_space<vmem>>, vector<128x128xbf16>
    %cst = arith.constant dense<0.000000e+00> : vector<32x128xf32>
    %6 = tpu.matmul %4, %5, %cst {dimension_numbers = #tpu.dot_dimension_numbers<[1], [0], [0], [1], [0, 0, 1, 1], [], []>} : vector<32x128xbf16>, vector<128x128xbf16>, vector<32x128xf32> -> vector<32x128xf32>
    %7 = arith.addf %3, %6 : vector<32x128xf32>
    %c0_6 = arith.constant 0 : index
    %c0_7 = arith.constant 0 : index
    %8 = vector.load %arg7[%c0_6, %c0_7] : memref<32x128xf32, #tpu.memory_space<vmem>>, vector<32x128xf32>
    tpu.vector_store %arg7[%c0_6, %c0_7], %7 {strides = array<i32>} : memref<32x128xf32, #tpu.memory_space<vmem>>, vector<32x128xf32>,
    %c0_i32_8 = arith.constant 0 : i32
    %9 = arith.cmpi eq, %arg2, %c0_i32_8 : i32
    %10 = arith.extui %9 : i1 to i32
    %c0_i32_9 = arith.constant 0 : i32
    %11 = arith.cmpi ne, %10, %c0_i32_9 : i32
    scf.if %11 {
      %c0_10 = arith.constant 0 : index
      %c0_11 = arith.constant 0 : index
      %12 = vector.load %arg7[%c0_10, %c0_11] : memref<32x128xf32, #tpu.memory_space<vmem>>, vector<32x128xf32>
      %c0_12 = arith.constant 0 : index
      %c0_13 = arith.constant 0 : index
      %13 = vector.load %arg5[%c0_12, %c0_13] : memref<1x128xf32, #tpu.memory_space<vmem>>, vector<1x128xf32>
      %14 = vector.broadcast %13 : vector<1x128xf32> to vector<32x128xf32>
      %15 = arith.addf %12, %14 : vector<32x128xf32>
      %16 = arith.truncf %15 : vector<32x128xf32> to vector<32x128xbf16>
      %c0_14 = arith.constant 0 : index
      %c0_15 = arith.constant 0 : index
      %17 = vector.load %arg6[%c0_14, %c0_15] : memref<32x128xbf16, #tpu.memory_space<vmem>>, vector<32x128xbf16>
      tpu.vector_store %arg6[%c0_14, %c0_15], %16 {strides = array<i32>} : memref<32x128xbf16, #tpu.memory_space<vmem>>, vector<32x128xbf16>,
    } else {
    }
    return
  }
  func.func @transform_0(%arg0: i32, %arg1: i32, %arg2: i32) -> (i32, i32) {
    %c0_i32 = arith.constant 0 : i32
    return %arg0, %arg2 : i32, i32
  }
  func.func @transform_1(%arg0: i32, %arg1: i32, %arg2: i32) -> (i32, i32) {
    %c0_i32 = arith.constant 0 : i32
    return %arg2, %arg1 : i32, i32
  }
  func.func @transform_2(%arg0: i32, %arg1: i32, %arg2: i32) -> (i32, i32) {
    %c0_i32 = arith.constant 0 : i32
    %c0_i32_0 = arith.constant 0 : i32
    return %c0_i32, %arg1 : i32, i32
  }
  func.func @transform_3(%arg0: i32, %arg1: i32, %arg2: i32) -> (i32, i32) {
    %c0_i32 = arith.constant 0 : i32
    return %arg0, %arg1 : i32, i32
  }
}

module attributes {stable_mosaic.version = 11 : i64} {
  func.func @_add_layernorm_kernel(%arg0: i32, %arg1: memref<32x128xbf16, #tpu.memory_space<vmem>>, %arg2: memref<32x128xbf16, #tpu.memory_space<vmem>>, %arg3: memref<1x128xf32, #tpu.memory_space<vmem>>, %arg4: memref<1x128xf32, #tpu.memory_space<vmem>>, %arg5: memref<32x128xbf16, #tpu.memory_space<vmem>>) attributes {dimension_semantics = [#tpu.dimension_semantics<parallel>], iteration_bounds = array<i64: 1>, scalar_prefetch = 0 : i64, scratch_operands = 0 : i64, tpu.core_type = #tpu.core_type<tc>, window_params = [{transform_indices = @transform_0, window_bounds = array<i64: 32, 128>}, {transform_indices = @transform_1, window_bounds = array<i64: 32, 128>}, {pipeline_mode = #tpu.pipeline_mode<synchronous>, transform_indices = @transform_2, window_bounds = array<i64: 1, 128>}, {pipeline_mode = #tpu.pipeline_mode<synchronous>, transform_indices = @transform_3, window_bounds = array<i64: 1, 128>}, {transform_indices = @transform_4, window_bounds = array<i64: 32, 128>}]} {
    %c0 = arith.constant 0 : index
    %c0_0 = arith.constant 0 : index
    %0 = vector.load %arg1[%c0, %c0_0] : memref<32x128xbf16, #tpu.memory_space<vmem>>, vector<32x128xbf16>
    %1 = arith.extf %0 : vector<32x128xbf16> to vector<32x128xf32>
    %c0_1 = arith.constant 0 : index
    %c0_2 = arith.constant 0 : index
    %2 = vector.load %arg2[%c0_1, %c0_2] : memref<32x128xbf16, #tpu.memory_space<vmem>>, vector<32x128xbf16>
    %3 = arith.extf %2 : vector<32x128xbf16> to vector<32x128xf32>
    %4 = arith.addf %1, %3 : vector<32x128xf32>
    %cst = arith.constant dense<0.000000e+00> : vector<32xf32>
    %5 = vector.multi_reduction <add>, %4, %cst [1] : vector<32x128xf32> to vector<32xf32>
    %6 = vector.shape_cast %5 : vector<32xf32> to vector<32x1xf32>
    %cst_3 = arith.constant 1.280000e+02 : f32
    %7 = vector.broadcast %cst_3 : f32 to vector<32x1xf32>
    %8 = arith.divf %6, %7 : vector<32x1xf32>
    %9 = vector.broadcast %8 : vector<32x1xf32> to vector<32x128xf32>
    %10 = arith.subf %4, %9 : vector<32x128xf32>
    %11 = arith.mulf %10, %10 : vector<32x128xf32>
    %cst_4 = arith.constant dense<0.000000e+00> : vector<32xf32>
    %12 = vector.multi_reduction <add>, %11, %cst_4 [1] : vector<32x128xf32> to vector<32xf32>
    %13 = vector.shape_cast %12 : vector<32xf32> to vector<32x1xf32>
    %cst_5 = arith.constant 1.280000e+02 : f32
    %14 = vector.broadcast %cst_5 : f32 to vector<32x1xf32>
    %15 = arith.divf %13, %14 : vector<32x1xf32>
    %16 = vector.broadcast %8 : vector<32x1xf32> to vector<32x128xf32>
    %17 = arith.subf %4, %16 : vector<32x128xf32>
    %cst_6 = arith.constant 9.99999996E-13 : f32
    %18 = vector.broadcast %cst_6 : f32 to vector<32x1xf32>
    %19 = arith.addf %15, %18 : vector<32x1xf32>
    %20 = math.rsqrt %19 : vector<32x1xf32>
    %21 = vector.broadcast %20 : vector<32x1xf32> to vector<32x128xf32>
    %22 = arith.mulf %17, %21 : vector<32x128xf32>
    %c0_7 = arith.constant 0 : index
    %c0_8 = arith.constant 0 : index
    %23 = vector.load %arg3[%c0_7, %c0_8] : memref<1x128xf32, #tpu.memory_space<vmem>>, vector<1x128xf32>
    %24 = vector.broadcast %23 : vector<1x128xf32> to vector<32x128xf32>
    %25 = arith.mulf %22, %24 : vector<32x128xf32>
    %c0_9 = arith.constant 0 : index
    %c0_10 = arith.constant 0 : index
    %26 = vector.load %arg4[%c0_9, %c0_10] : memref<1x128xf32, #tpu.memory_space<vmem>>, vector<1x128xf32>
    %27 = vector.broadcast %26 : vector<1x128xf32> to vector<32x128xf32>
    %28 = arith.addf %25, %27 : vector<32x128xf32>
    %29 = arith.truncf %28 : vector<32x128xf32> to vector<32x128xbf16>
    %c0_11 = arith.constant 0 : index
    %c0_12 = arith.constant 0 : index
    %30 = vector.load %arg5[%c0_11, %c0_12] : memref<32x128xbf16, #tpu.memory_space<vmem>>, vector<32x128xbf16>
    tpu.vector_store %arg5[%c0_11, %c0_12], %29 {strides = array<i32>} : memref<32x128xbf16, #tpu.memory_space<vmem>>, vector<32x128xbf16>,
    return
  }
  func.func @transform_0(%arg0: i32) -> (i32, i32) {
    %c0_i32 = arith.constant 0 : i32
    %c0_i32_0 = arith.constant 0 : i32
    return %arg0, %c0_i32 : i32, i32
  }
  func.func @transform_1(%arg0: i32) -> (i32, i32) {
    %c0_i32 = arith.constant 0 : i32
    %c0_i32_0 = arith.constant 0 : i32
    return %arg0, %c0_i32 : i32, i32
  }
  func.func @transform_2(%arg0: i32) -> (i32, i32) {
    %c0_i32 = arith.constant 0 : i32
    %c0_i32_0 = arith.constant 0 : i32
    %c0_i32_1 = arith.constant 0 : i32
    return %c0_i32, %c0_i32_0 : i32, i32
  }
  func.func @transform_3(%arg0: i32) -> (i32, i32) {
    %c0_i32 = arith.constant 0 : i32
    %c0_i32_0 = arith.constant 0 : i32
    %c0_i32_1 = arith.constant 0 : i32
    return %c0_i32, %c0_i32_0 : i32, i32
  }
  func.func @transform_4(%arg0: i32) -> (i32, i32) {
    %c0_i32 = arith.constant 0 : i32
    %c0_i32_0 = arith.constant 0 : i32
    return %arg0, %c0_i32 : i32, i32
  }
}

module attributes {stable_mosaic.version = 11 : i64} {
  func.func @_linear_kernel(%arg0: i32, %arg1: i32, %arg2: i32, %arg3: memref<32x128xbf16, #tpu.memory_space<vmem>>, %arg4: memref<128x512xbf16, #tpu.memory_space<vmem>>, %arg5: memref<1x512xf32, #tpu.memory_space<vmem>>, %arg6: memref<32x512xbf16, #tpu.memory_space<vmem>>, %arg7: memref<32x512xf32, #tpu.memory_space<vmem>>) attributes {dimension_semantics = [#tpu.dimension_semantics<parallel>, #tpu.dimension_semantics<parallel>, #tpu.dimension_semantics<arbitrary>], iteration_bounds = array<i64: 1, 1, 1>, scalar_prefetch = 0 : i64, scratch_operands = 1 : i64, tpu.core_type = #tpu.core_type<tc>, window_params = [{transform_indices = @transform_0, window_bounds = array<i64: 32, 128>}, {transform_indices = @transform_1, window_bounds = array<i64: 128, 512>}, {transform_indices = @transform_2, window_bounds = array<i64: 1, 512>}, {transform_indices = @transform_3, window_bounds = array<i64: 32, 512>}]} {
    %c0_i32 = arith.constant 0 : i32
    %0 = arith.cmpi eq, %arg2, %c0_i32 : i32
    %1 = arith.extui %0 : i1 to i32
    %c0_i32_0 = arith.constant 0 : i32
    %2 = arith.cmpi ne, %1, %c0_i32_0 : i32
    scf.if %2 {
      %cst_10 = arith.constant 0.000000e+00 : f32
      %12 = vector.broadcast %cst_10 : f32 to vector<32x512xf32>
      %c0_11 = arith.constant 0 : index
      %c0_12 = arith.constant 0 : index
      %13 = vector.load %arg7[%c0_11, %c0_12] : memref<32x512xf32, #tpu.memory_space<vmem>>, vector<32x512xf32>
      tpu.vector_store %arg7[%c0_11, %c0_12], %12 {strides = array<i32>} : memref<32x512xf32, #tpu.memory_space<vmem>>, vector<32x512xf32>,
    } else {
    }
    %c0 = arith.constant 0 : index
    %c0_1 = arith.constant 0 : index
    %3 = vector.load %arg7[%c0, %c0_1] : memref<32x512xf32, #tpu.memory_space<vmem>>, vector<32x512xf32>
    %c0_2 = arith.constant 0 : index
    %c0_3 = arith.constant 0 : index
    %4 = vector.load %arg3[%c0_2, %c0_3] : memref<32x128xbf16, #tpu.memory_space<vmem>>, vector<32x128xbf16>
    %c0_4 = arith.constant 0 : index
    %c0_5 = arith.constant 0 : index
    %5 = vector.load %arg4[%c0_4, %c0_5] : memref<128x512xbf16, #tpu.memory_space<vmem>>, vector<128x512xbf16>
    %cst = arith.constant dense<0.000000e+00> : vector<32x512xf32>
    %6 = tpu.matmul %4, %5, %cst {dimension_numbers = #tpu.dot_dimension_numbers<[1], [0], [0], [1], [0, 0, 1, 1], [], []>} : vector<32x128xbf16>, vector<128x512xbf16>, vector<32x512xf32> -> vector<32x512xf32>
    %7 = arith.addf %3, %6 : vector<32x512xf32>
    %c0_6 = arith.constant 0 : index
    %c0_7 = arith.constant 0 : index
    %8 = vector.load %arg7[%c0_6, %c0_7] : memref<32x512xf32, #tpu.memory_space<vmem>>, vector<32x512xf32>
    tpu.vector_store %arg7[%c0_6, %c0_7], %7 {strides = array<i32>} : memref<32x512xf32, #tpu.memory_space<vmem>>, vector<32x512xf32>,
    %c0_i32_8 = arith.constant 0 : i32
    %9 = arith.cmpi eq, %arg2, %c0_i32_8 : i32
    %10 = arith.extui %9 : i1 to i32
    %c0_i32_9 = arith.constant 0 : i32
    %11 = arith.cmpi ne, %10, %c0_i32_9 : i32
    scf.if %11 {
      %c0_10 = arith.constant 0 : index
      %c0_11 = arith.constant 0 : index
      %12 = vector.load %arg7[%c0_10, %c0_11] : memref<32x512xf32, #tpu.memory_space<vmem>>, vector<32x512xf32>
      %c0_12 = arith.constant 0 : index
      %c0_13 = arith.constant 0 : index
      %13 = vector.load %arg5[%c0_12, %c0_13] : memref<1x512xf32, #tpu.memory_space<vmem>>, vector<1x512xf32>
      %14 = vector.broadcast %13 : vector<1x512xf32> to vector<32x512xf32>
      %15 = arith.addf %12, %14 : vector<32x512xf32>
      %cst_14 = arith.constant 5.000000e-01 : f32
      %16 = vector.broadcast %cst_14 : f32 to vector<32x512xf32>
      %17 = arith.mulf %16, %15 : vector<32x512xf32>
      %cst_15 = arith.constant 0.707106769 : f32
      %18 = vector.broadcast %cst_15 : f32 to vector<32x512xf32>
      %19 = arith.mulf %15, %18 : vector<32x512xf32>
      %20 = math.erf %19 : vector<32x512xf32>
      %cst_16 = arith.constant 1.000000e+00 : f32
      %21 = vector.broadcast %cst_16 : f32 to vector<32x512xf32>
      %22 = arith.addf %21, %20 : vector<32x512xf32>
      %23 = arith.mulf %17, %22 : vector<32x512xf32>
      %24 = arith.truncf %23 : vector<32x512xf32> to vector<32x512xbf16>
      %c0_17 = arith.constant 0 : index
      %c0_18 = arith.constant 0 : index
      %25 = vector.load %arg6[%c0_17, %c0_18] : memref<32x512xbf16, #tpu.memory_space<vmem>>, vector<32x512xbf16>
      tpu.vector_store %arg6[%c0_17, %c0_18], %24 {strides = array<i32>} : memref<32x512xbf16, #tpu.memory_space<vmem>>, vector<32x512xbf16>,
    } else {
    }
    return
  }
  func.func @transform_0(%arg0: i32, %arg1: i32, %arg2: i32) -> (i32, i32) {
    %c0_i32 = arith.constant 0 : i32
    return %arg0, %arg2 : i32, i32
  }
  func.func @transform_1(%arg0: i32, %arg1: i32, %arg2: i32) -> (i32, i32) {
    %c0_i32 = arith.constant 0 : i32
    return %arg2, %arg1 : i32, i32
  }
  func.func @transform_2(%arg0: i32, %arg1: i32, %arg2: i32) -> (i32, i32) {
    %c0_i32 = arith.constant 0 : i32
    %c0_i32_0 = arith.constant 0 : i32
    return %c0_i32, %arg1 : i32, i32
  }
  func.func @transform_3(%arg0: i32, %arg1: i32, %arg2: i32) -> (i32, i32) {
    %c0_i32 = arith.constant 0 : i32
    return %arg0, %arg1 : i32, i32
  }
}

module attributes {stable_mosaic.version = 11 : i64} {
  func.func @_linear_kernel(%arg0: i32, %arg1: i32, %arg2: i32, %arg3: memref<32x512xbf16, #tpu.memory_space<vmem>>, %arg4: memref<512x128xbf16, #tpu.memory_space<vmem>>, %arg5: memref<1x128xf32, #tpu.memory_space<vmem>>, %arg6: memref<32x128xbf16, #tpu.memory_space<vmem>>, %arg7: memref<32x128xf32, #tpu.memory_space<vmem>>) attributes {dimension_semantics = [#tpu.dimension_semantics<parallel>, #tpu.dimension_semantics<parallel>, #tpu.dimension_semantics<arbitrary>], iteration_bounds = array<i64: 1, 1, 1>, scalar_prefetch = 0 : i64, scratch_operands = 1 : i64, tpu.core_type = #tpu.core_type<tc>, window_params = [{transform_indices = @transform_0, window_bounds = array<i64: 32, 512>}, {transform_indices = @transform_1, window_bounds = array<i64: 512, 128>}, {transform_indices = @transform_2, window_bounds = array<i64: 1, 128>}, {transform_indices = @transform_3, window_bounds = array<i64: 32, 128>}]} {
    %c0_i32 = arith.constant 0 : i32
    %0 = arith.cmpi eq, %arg2, %c0_i32 : i32
    %1 = arith.extui %0 : i1 to i32
    %c0_i32_0 = arith.constant 0 : i32
    %2 = arith.cmpi ne, %1, %c0_i32_0 : i32
    scf.if %2 {
      %cst_10 = arith.constant 0.000000e+00 : f32
      %12 = vector.broadcast %cst_10 : f32 to vector<32x128xf32>
      %c0_11 = arith.constant 0 : index
      %c0_12 = arith.constant 0 : index
      %13 = vector.load %arg7[%c0_11, %c0_12] : memref<32x128xf32, #tpu.memory_space<vmem>>, vector<32x128xf32>
      tpu.vector_store %arg7[%c0_11, %c0_12], %12 {strides = array<i32>} : memref<32x128xf32, #tpu.memory_space<vmem>>, vector<32x128xf32>,
    } else {
    }
    %c0 = arith.constant 0 : index
    %c0_1 = arith.constant 0 : index
    %3 = vector.load %arg7[%c0, %c0_1] : memref<32x128xf32, #tpu.memory_space<vmem>>, vector<32x128xf32>
    %c0_2 = arith.constant 0 : index
    %c0_3 = arith.constant 0 : index
    %4 = vector.load %arg3[%c0_2, %c0_3] : memref<32x512xbf16, #tpu.memory_space<vmem>>, vector<32x512xbf16>
    %c0_4 = arith.constant 0 : index
    %c0_5 = arith.constant 0 : index
    %5 = vector.load %arg4[%c0_4, %c0_5] : memref<512x128xbf16, #tpu.memory_space<vmem>>, vector<512x128xbf16>
    %cst = arith.constant dense<0.000000e+00> : vector<32x128xf32>
    %6 = tpu.matmul %4, %5, %cst {dimension_numbers = #tpu.dot_dimension_numbers<[1], [0], [0], [1], [0, 0, 1, 1], [], []>} : vector<32x512xbf16>, vector<512x128xbf16>, vector<32x128xf32> -> vector<32x128xf32>
    %7 = arith.addf %3, %6 : vector<32x128xf32>
    %c0_6 = arith.constant 0 : index
    %c0_7 = arith.constant 0 : index
    %8 = vector.load %arg7[%c0_6, %c0_7] : memref<32x128xf32, #tpu.memory_space<vmem>>, vector<32x128xf32>
    tpu.vector_store %arg7[%c0_6, %c0_7], %7 {strides = array<i32>} : memref<32x128xf32, #tpu.memory_space<vmem>>, vector<32x128xf32>,
    %c0_i32_8 = arith.constant 0 : i32
    %9 = arith.cmpi eq, %arg2, %c0_i32_8 : i32
    %10 = arith.extui %9 : i1 to i32
    %c0_i32_9 = arith.constant 0 : i32
    %11 = arith.cmpi ne, %10, %c0_i32_9 : i32
    scf.if %11 {
      %c0_10 = arith.constant 0 : index
      %c0_11 = arith.constant 0 : index
      %12 = vector.load %arg7[%c0_10, %c0_11] : memref<32x128xf32, #tpu.memory_space<vmem>>, vector<32x128xf32>
      %c0_12 = arith.constant 0 : index
      %c0_13 = arith.constant 0 : index
      %13 = vector.load %arg5[%c0_12, %c0_13] : memref<1x128xf32, #tpu.memory_space<vmem>>, vector<1x128xf32>
      %14 = vector.broadcast %13 : vector<1x128xf32> to vector<32x128xf32>
      %15 = arith.addf %12, %14 : vector<32x128xf32>
      %16 = arith.truncf %15 : vector<32x128xf32> to vector<32x128xbf16>
      %c0_14 = arith.constant 0 : index
      %c0_15 = arith.constant 0 : index
      %17 = vector.load %arg6[%c0_14, %c0_15] : memref<32x128xbf16, #tpu.memory_space<vmem>>, vector<32x128xbf16>
      tpu.vector_store %arg6[%c0_14, %c0_15], %16 {strides = array<i32>} : memref<32x128xbf16, #tpu.memory_space<vmem>>, vector<32x128xbf16>,
    } else {
    }
    return
  }
  func.func @transform_0(%arg0: i32, %arg1: i32, %arg2: i32) -> (i32, i32) {
    %c0_i32 = arith.constant 0 : i32
    return %arg0, %arg2 : i32, i32
  }
  func.func @transform_1(%arg0: i32, %arg1: i32, %arg2: i32) -> (i32, i32) {
    %c0_i32 = arith.constant 0 : i32
    return %arg2, %arg1 : i32, i32
  }
  func.func @transform_2(%arg0: i32, %arg1: i32, %arg2: i32) -> (i32, i32) {
    %c0_i32 = arith.constant 0 : i32
    %c0_i32_0 = arith.constant 0 : i32
    return %c0_i32, %arg1 : i32, i32
  }
  func.func @transform_3(%arg0: i32, %arg1: i32, %arg2: i32) -> (i32, i32) {
    %c0_i32 = arith.constant 0 : i32
    return %arg0, %arg1 : i32, i32
  }
}

module attributes {stable_mosaic.version = 11 : i64} {
  func.func @_linear_kernel(%arg0: i32, %arg1: i32, %arg2: i32, %arg3: memref<32x128xbf16, #tpu.memory_space<vmem>>, %arg4: memref<128x128xbf16, #tpu.memory_space<vmem>>, %arg5: memref<1x128xf32, #tpu.memory_space<vmem>>, %arg6: memref<32x128xbf16, #tpu.memory_space<vmem>>, %arg7: memref<32x128xf32, #tpu.memory_space<vmem>>) attributes {dimension_semantics = [#tpu.dimension_semantics<parallel>, #tpu.dimension_semantics<parallel>, #tpu.dimension_semantics<arbitrary>], iteration_bounds = array<i64: 1, 1, 1>, scalar_prefetch = 0 : i64, scratch_operands = 1 : i64, tpu.core_type = #tpu.core_type<tc>, window_params = [{transform_indices = @transform_0, window_bounds = array<i64: 32, 128>}, {transform_indices = @transform_1, window_bounds = array<i64: 128, 128>}, {transform_indices = @transform_2, window_bounds = array<i64: 1, 128>}, {transform_indices = @transform_3, window_bounds = array<i64: 32, 128>}]} {
    %c0_i32 = arith.constant 0 : i32
    %0 = arith.cmpi eq, %arg2, %c0_i32 : i32
    %1 = arith.extui %0 : i1 to i32
    %c0_i32_0 = arith.constant 0 : i32
    %2 = arith.cmpi ne, %1, %c0_i32_0 : i32
    scf.if %2 {
      %cst_10 = arith.constant 0.000000e+00 : f32
      %12 = vector.broadcast %cst_10 : f32 to vector<32x128xf32>
      %c0_11 = arith.constant 0 : index
      %c0_12 = arith.constant 0 : index
      %13 = vector.load %arg7[%c0_11, %c0_12] : memref<32x128xf32, #tpu.memory_space<vmem>>, vector<32x128xf32>
      tpu.vector_store %arg7[%c0_11, %c0_12], %12 {strides = array<i32>} : memref<32x128xf32, #tpu.memory_space<vmem>>, vector<32x128xf32>,
    } else {
    }
    %c0 = arith.constant 0 : index
    %c0_1 = arith.constant 0 : index
    %3 = vector.load %arg7[%c0, %c0_1] : memref<32x128xf32, #tpu.memory_space<vmem>>, vector<32x128xf32>
    %c0_2 = arith.constant 0 : index
    %c0_3 = arith.constant 0 : index
    %4 = vector.load %arg3[%c0_2, %c0_3] : memref<32x128xbf16, #tpu.memory_space<vmem>>, vector<32x128xbf16>
    %c0_4 = arith.constant 0 : index
    %c0_5 = arith.constant 0 : index
    %5 = vector.load %arg4[%c0_4, %c0_5] : memref<128x128xbf16, #tpu.memory_space<vmem>>, vector<128x128xbf16>
    %cst = arith.constant dense<0.000000e+00> : vector<32x128xf32>
    %6 = tpu.matmul %4, %5, %cst {dimension_numbers = #tpu.dot_dimension_numbers<[1], [0], [0], [1], [0, 0, 1, 1], [], []>} : vector<32x128xbf16>, vector<128x128xbf16>, vector<32x128xf32> -> vector<32x128xf32>
    %7 = arith.addf %3, %6 : vector<32x128xf32>
    %c0_6 = arith.constant 0 : index
    %c0_7 = arith.constant 0 : index
    %8 = vector.load %arg7[%c0_6, %c0_7] : memref<32x128xf32, #tpu.memory_space<vmem>>, vector<32x128xf32>
    tpu.vector_store %arg7[%c0_6, %c0_7], %7 {strides = array<i32>} : memref<32x128xf32, #tpu.memory_space<vmem>>, vector<32x128xf32>,
    %c0_i32_8 = arith.constant 0 : i32
    %9 = arith.cmpi eq, %arg2, %c0_i32_8 : i32
    %10 = arith.extui %9 : i1 to i32
    %c0_i32_9 = arith.constant 0 : i32
    %11 = arith.cmpi ne, %10, %c0_i32_9 : i32
    scf.if %11 {
      %c0_10 = arith.constant 0 : index
      %c0_11 = arith.constant 0 : index
      %12 = vector.load %arg7[%c0_10, %c0_11] : memref<32x128xf32, #tpu.memory_space<vmem>>, vector<32x128xf32>
      %c0_12 = arith.constant 0 : index
      %c0_13 = arith.constant 0 : index
      %13 = vector.load %arg5[%c0_12, %c0_13] : memref<1x128xf32, #tpu.memory_space<vmem>>, vector<1x128xf32>
      %14 = vector.broadcast %13 : vector<1x128xf32> to vector<32x128xf32>
      %15 = arith.addf %12, %14 : vector<32x128xf32>
      %cst_14 = arith.constant 5.000000e-01 : f32
      %16 = vector.broadcast %cst_14 : f32 to vector<32x128xf32>
      %17 = arith.mulf %16, %15 : vector<32x128xf32>
      %cst_15 = arith.constant 0.707106769 : f32
      %18 = vector.broadcast %cst_15 : f32 to vector<32x128xf32>
      %19 = arith.mulf %15, %18 : vector<32x128xf32>
      %20 = math.erf %19 : vector<32x128xf32>
      %cst_16 = arith.constant 1.000000e+00 : f32
      %21 = vector.broadcast %cst_16 : f32 to vector<32x128xf32>
      %22 = arith.addf %21, %20 : vector<32x128xf32>
      %23 = arith.mulf %17, %22 : vector<32x128xf32>
      %24 = arith.truncf %23 : vector<32x128xf32> to vector<32x128xbf16>
      %c0_17 = arith.constant 0 : index
      %c0_18 = arith.constant 0 : index
      %25 = vector.load %arg6[%c0_17, %c0_18] : memref<32x128xbf16, #tpu.memory_space<vmem>>, vector<32x128xbf16>
      tpu.vector_store %arg6[%c0_17, %c0_18], %24 {strides = array<i32>} : memref<32x128xbf16, #tpu.memory_space<vmem>>, vector<32x128xbf16>,
    } else {
    }
    return
  }
  func.func @transform_0(%arg0: i32, %arg1: i32, %arg2: i32) -> (i32, i32) {
    %c0_i32 = arith.constant 0 : i32
    return %arg0, %arg2 : i32, i32
  }
  func.func @transform_1(%arg0: i32, %arg1: i32, %arg2: i32) -> (i32, i32) {
    %c0_i32 = arith.constant 0 : i32
    return %arg2, %arg1 : i32, i32
  }
  func.func @transform_2(%arg0: i32, %arg1: i32, %arg2: i32) -> (i32, i32) {
    %c0_i32 = arith.constant 0 : i32
    %c0_i32_0 = arith.constant 0 : i32
    return %c0_i32, %arg1 : i32, i32
  }
  func.func @transform_3(%arg0: i32, %arg1: i32, %arg2: i32) -> (i32, i32) {
    %c0_i32 = arith.constant 0 : i32
    return %arg0, %arg1 : i32, i32
  }
}

module attributes {stable_mosaic.version = 11 : i64} {
  func.func @_layernorm_kernel(%arg0: i32, %arg1: memref<32x128xbf16, #tpu.memory_space<vmem>>, %arg2: memref<1x128xf32, #tpu.memory_space<vmem>>, %arg3: memref<1x128xf32, #tpu.memory_space<vmem>>, %arg4: memref<32x128xbf16, #tpu.memory_space<vmem>>) attributes {dimension_semantics = [#tpu.dimension_semantics<parallel>], iteration_bounds = array<i64: 1>, scalar_prefetch = 0 : i64, scratch_operands = 0 : i64, tpu.core_type = #tpu.core_type<tc>, window_params = [{transform_indices = @transform_0, window_bounds = array<i64: 32, 128>}, {pipeline_mode = #tpu.pipeline_mode<synchronous>, transform_indices = @transform_1, window_bounds = array<i64: 1, 128>}, {pipeline_mode = #tpu.pipeline_mode<synchronous>, transform_indices = @transform_2, window_bounds = array<i64: 1, 128>}, {transform_indices = @transform_3, window_bounds = array<i64: 32, 128>}]} {
    %c0 = arith.constant 0 : index
    %c0_0 = arith.constant 0 : index
    %0 = vector.load %arg1[%c0, %c0_0] : memref<32x128xbf16, #tpu.memory_space<vmem>>, vector<32x128xbf16>
    %1 = arith.extf %0 : vector<32x128xbf16> to vector<32x128xf32>
    %cst = arith.constant dense<0.000000e+00> : vector<32xf32>
    %2 = vector.multi_reduction <add>, %1, %cst [1] : vector<32x128xf32> to vector<32xf32>
    %3 = vector.shape_cast %2 : vector<32xf32> to vector<32x1xf32>
    %cst_1 = arith.constant 1.280000e+02 : f32
    %4 = vector.broadcast %cst_1 : f32 to vector<32x1xf32>
    %5 = arith.divf %3, %4 : vector<32x1xf32>
    %6 = vector.broadcast %5 : vector<32x1xf32> to vector<32x128xf32>
    %7 = arith.subf %1, %6 : vector<32x128xf32>
    %8 = arith.mulf %7, %7 : vector<32x128xf32>
    %cst_2 = arith.constant dense<0.000000e+00> : vector<32xf32>
    %9 = vector.multi_reduction <add>, %8, %cst_2 [1] : vector<32x128xf32> to vector<32xf32>
    %10 = vector.shape_cast %9 : vector<32xf32> to vector<32x1xf32>
    %cst_3 = arith.constant 1.280000e+02 : f32
    %11 = vector.broadcast %cst_3 : f32 to vector<32x1xf32>
    %12 = arith.divf %10, %11 : vector<32x1xf32>
    %13 = vector.broadcast %5 : vector<32x1xf32> to vector<32x128xf32>
    %14 = arith.subf %1, %13 : vector<32x128xf32>
    %cst_4 = arith.constant 9.99999996E-13 : f32
    %15 = vector.broadcast %cst_4 : f32 to vector<32x1xf32>
    %16 = arith.addf %12, %15 : vector<32x1xf32>
    %17 = math.rsqrt %16 : vector<32x1xf32>
    %18 = vector.broadcast %17 : vector<32x1xf32> to vector<32x128xf32>
    %19 = arith.mulf %14, %18 : vector<32x128xf32>
    %c0_5 = arith.constant 0 : index
    %c0_6 = arith.constant 0 : index
    %20 = vector.load %arg2[%c0_5, %c0_6] : memref<1x128xf32, #tpu.memory_space<vmem>>, vector<1x128xf32>
    %21 = vector.broadcast %20 : vector<1x128xf32> to vector<32x128xf32>
    %22 = arith.mulf %19, %21 : vector<32x128xf32>
    %c0_7 = arith.constant 0 : index
    %c0_8 = arith.constant 0 : index
    %23 = vector.load %arg3[%c0_7, %c0_8] : memref<1x128xf32, #tpu.memory_space<vmem>>, vector<1x128xf32>
    %24 = vector.broadcast %23 : vector<1x128xf32> to vector<32x128xf32>
    %25 = arith.addf %22, %24 : vector<32x128xf32>
    %26 = arith.truncf %25 : vector<32x128xf32> to vector<32x128xbf16>
    %c0_9 = arith.constant 0 : index
    %c0_10 = arith.constant 0 : index
    %27 = vector.load %arg4[%c0_9, %c0_10] : memref<32x128xbf16, #tpu.memory_space<vmem>>, vector<32x128xbf16>
    tpu.vector_store %arg4[%c0_9, %c0_10], %26 {strides = array<i32>} : memref<32x128xbf16, #tpu.memory_space<vmem>>, vector<32x128xbf16>,
    return
  }
  func.func @transform_0(%arg0: i32) -> (i32, i32) {
    %c0_i32 = arith.constant 0 : i32
    %c0_i32_0 = arith.constant 0 : i32
    return %arg0, %c0_i32 : i32, i32
  }
  func.func @transform_1(%arg0: i32) -> (i32, i32) {
    %c0_i32 = arith.constant 0 : i32
    %c0_i32_0 = arith.constant 0 : i32
    %c0_i32_1 = arith.constant 0 : i32
    return %c0_i32, %c0_i32_0 : i32, i32
  }
  func.func @transform_2(%arg0: i32) -> (i32, i32) {
    %c0_i32 = arith.constant 0 : i32
    %c0_i32_0 = arith.constant 0 : i32
    %c0_i32_1 = arith.constant 0 : i32
    return %c0_i32, %c0_i32_0 : i32, i32
  }
  func.func @transform_3(%arg0: i32) -> (i32, i32) {
    %c0_i32 = arith.constant 0 : i32
    %c0_i32_0 = arith.constant 0 : i32
    return %arg0, %c0_i32 : i32, i32
  }
}

module attributes {stable_mosaic.version = 11 : i64} {
  func.func @_linear_kernel(%arg0: i32, %arg1: i32, %arg2: i32, %arg3: memref<32x128xbf16, #tpu.memory_space<vmem>>, %arg4: memref<128x512xbf16, #tpu.memory_space<vmem>>, %arg5: memref<1x512xf32, #tpu.memory_space<vmem>>, %arg6: memref<32x512xf32, #tpu.memory_space<vmem>>, %arg7: memref<32x512xf32, #tpu.memory_space<vmem>>) attributes {dimension_semantics = [#tpu.dimension_semantics<parallel>, #tpu.dimension_semantics<parallel>, #tpu.dimension_semantics<arbitrary>], iteration_bounds = array<i64: 1, 1, 1>, scalar_prefetch = 0 : i64, scratch_operands = 1 : i64, tpu.core_type = #tpu.core_type<tc>, window_params = [{transform_indices = @transform_0, window_bounds = array<i64: 32, 128>}, {transform_indices = @transform_1, window_bounds = array<i64: 128, 512>}, {transform_indices = @transform_2, window_bounds = array<i64: 1, 512>}, {transform_indices = @transform_3, window_bounds = array<i64: 32, 512>}]} {
    %c0_i32 = arith.constant 0 : i32
    %0 = arith.cmpi eq, %arg2, %c0_i32 : i32
    %1 = arith.extui %0 : i1 to i32
    %c0_i32_0 = arith.constant 0 : i32
    %2 = arith.cmpi ne, %1, %c0_i32_0 : i32
    scf.if %2 {
      %cst_10 = arith.constant 0.000000e+00 : f32
      %12 = vector.broadcast %cst_10 : f32 to vector<32x512xf32>
      %c0_11 = arith.constant 0 : index
      %c0_12 = arith.constant 0 : index
      %13 = vector.load %arg7[%c0_11, %c0_12] : memref<32x512xf32, #tpu.memory_space<vmem>>, vector<32x512xf32>
      tpu.vector_store %arg7[%c0_11, %c0_12], %12 {strides = array<i32>} : memref<32x512xf32, #tpu.memory_space<vmem>>, vector<32x512xf32>,
    } else {
    }
    %c0 = arith.constant 0 : index
    %c0_1 = arith.constant 0 : index
    %3 = vector.load %arg7[%c0, %c0_1] : memref<32x512xf32, #tpu.memory_space<vmem>>, vector<32x512xf32>
    %c0_2 = arith.constant 0 : index
    %c0_3 = arith.constant 0 : index
    %4 = vector.load %arg3[%c0_2, %c0_3] : memref<32x128xbf16, #tpu.memory_space<vmem>>, vector<32x128xbf16>
    %c0_4 = arith.constant 0 : index
    %c0_5 = arith.constant 0 : index
    %5 = vector.load %arg4[%c0_4, %c0_5] : memref<128x512xbf16, #tpu.memory_space<vmem>>, vector<128x512xbf16>
    %cst = arith.constant dense<0.000000e+00> : vector<32x512xf32>
    %6 = tpu.matmul %4, %5, %cst {dimension_numbers = #tpu.dot_dimension_numbers<[1], [0], [0], [1], [0, 0, 1, 1], [], []>} : vector<32x128xbf16>, vector<128x512xbf16>, vector<32x512xf32> -> vector<32x512xf32>
    %7 = arith.addf %3, %6 : vector<32x512xf32>
    %c0_6 = arith.constant 0 : index
    %c0_7 = arith.constant 0 : index
    %8 = vector.load %arg7[%c0_6, %c0_7] : memref<32x512xf32, #tpu.memory_space<vmem>>, vector<32x512xf32>
    tpu.vector_store %arg7[%c0_6, %c0_7], %7 {strides = array<i32>} : memref<32x512xf32, #tpu.memory_space<vmem>>, vector<32x512xf32>,
    %c0_i32_8 = arith.constant 0 : i32
    %9 = arith.cmpi eq, %arg2, %c0_i32_8 : i32
    %10 = arith.extui %9 : i1 to i32
    %c0_i32_9 = arith.constant 0 : i32
    %11 = arith.cmpi ne, %10, %c0_i32_9 : i32
    scf.if %11 {
      %c0_10 = arith.constant 0 : index
      %c0_11 = arith.constant 0 : index
      %12 = vector.load %arg7[%c0_10, %c0_11] : memref<32x512xf32, #tpu.memory_space<vmem>>, vector<32x512xf32>
      %c0_12 = arith.constant 0 : index
      %c0_13 = arith.constant 0 : index
      %13 = vector.load %arg5[%c0_12, %c0_13] : memref<1x512xf32, #tpu.memory_space<vmem>>, vector<1x512xf32>
      %14 = vector.broadcast %13 : vector<1x512xf32> to vector<32x512xf32>
      %15 = arith.addf %12, %14 : vector<32x512xf32>
      %c0_14 = arith.constant 0 : index
      %c0_15 = arith.constant 0 : index
      %16 = vector.load %arg6[%c0_14, %c0_15] : memref<32x512xf32, #tpu.memory_space<vmem>>, vector<32x512xf32>
      tpu.vector_store %arg6[%c0_14, %c0_15], %15 {strides = array<i32>} : memref<32x512xf32, #tpu.memory_space<vmem>>, vector<32x512xf32>,
    } else {
    }
    return
  }
  func.func @transform_0(%arg0: i32, %arg1: i32, %arg2: i32) -> (i32, i32) {
    %c0_i32 = arith.constant 0 : i32
    return %arg0, %arg2 : i32, i32
  }
  func.func @transform_1(%arg0: i32, %arg1: i32, %arg2: i32) -> (i32, i32) {
    %c0_i32 = arith.constant 0 : i32
    return %arg2, %arg1 : i32, i32
  }
  func.func @transform_2(%arg0: i32, %arg1: i32, %arg2: i32) -> (i32, i32) {
    %c0_i32 = arith.constant 0 : i32
    %c0_i32_0 = arith.constant 0 : i32
    return %c0_i32, %arg1 : i32, i32
  }
  func.func @transform_3(%arg0: i32, %arg1: i32, %arg2: i32) -> (i32, i32) {
    %c0_i32 = arith.constant 0 : i32
    return %arg0, %arg1 : i32, i32
  }
}

</mosaic_0001>

<bundles_post_ra>
// kernel: bert_language_model.19
= control target key start
LH: loop header
LB: loop body
LE: loop exit
PB: predicated region body
PF: predicated region fallthrough
CT: control target
= control target key end

     0   :  { %s879_s12 = smov 0   ;;  %s881_s13 = smov 0   ;;  %s984_s0 = inlined_call_operand.vmem [shape: bf16[32,128], index: 0, kind: input, shape index: {}]   ;;  %s985_s1 = inlined_call_operand.vmem [shape: bf16[128,384], index: 1, kind: input, shape index: {}]   ;;  %s986_s2 = inlined_call_operand.vmem [shape: f32[1,384], index: 2, kind: input, shape index: {}]   ;;  %s987_s3 = inlined_call_operand.vmem [shape: bf16[32,384], index: 3, kind: output, shape index: {}]  }
   0x1   :  { %s883_s14 = smov 0   ;;  %s885_s15 = smov 0  }
   0x2   :  { %s887_s16 = smov 0  }
   0x3 LB: > { %s28_s17 = sadd.s32 1, %s853_s15  ;;  %s695_s18 = sadd.s32 4294967295, %s857_s16   ;;  %s857_s16 = sphi %s887_s16, %s13_s16   ;;  %s853_s15 = sphi %s885_s15, %s992_s15   ;;  %s849_s14 = sphi %s883_s14, %s991_s14   ;;  %s845_s13 = sphi %s881_s13, %s990_s13   ;;  %s841_s12 = sphi %s879_s12, %s989_s12  }
   0x4   : > { %p30_p0 = scmp.ge.s32.totalorder %s28_s17, 3  ;;  %p76_p1 = scmp.ne.s32.totalorder %s845_s13, %s841_s12 }
   0x5   : > { %p77_p2 = scmp.eq.s32.totalorder %s857_s16, 0  ;;  %p134_p4 = scmp.eq.s32.totalorder %s695_s18, 2 }
   0x6   : > { %s994_s17 = smov (%p30_p0, %s28_s17), 0  ;;  %s69_s20 = sadd.s32 1, %s845_s13 }
   0x7   : > { %p78_p3 = por %p77_p2, %p76_p1  ;;  %s65_s19 = ssub.s32 %s853_s15, %s994_s17 }
   0x8   : > { %p67_p5 = scmp.eq.s32.totalorder %s65_s19, 0  ;;  %p914_p6 = por %p134_p4, %p76_p1 }
   0x9   : > { %p699_p7 = scmp.ge.s32.totalorder %s857_s16, 3 }
   0xa   : > { %s919_s22 = scalar_select %p67_p5, %s845_s13, %s69_s20  }
   0xb   : > { %168 = sbr.rel (%p699_p7) target bundleno = 30 (0x1e), region = 20 }
  0x10   : > { %171 = sbr.rel (!%p78_p3) target bundleno = 30 (0x1e), region = 24  ;;  %s173_s23 = sand.u32 (%p78_p3), 1, %s845_s13  }
  0x11   : > { %s701_s24 = sshll.u32 (%p78_p3), %s853_s15, 2  ;;  %s700_s25 = sshll.u32 (%p78_p3), %s173_s23, 6 }
  0x12   : > { %s927_s28 = scalar_lea.vmem (%p78_p3), %s985_s1, %s701_s24  ;;  %s175_s29 = scalar_lea.vmem (%p78_p3), [#allocation3], %s700_s25 }
  0x13   : > { %v197_v0 = vld [vmem:[%s927_s28] sm:$0xf] (%p78_p3)  ;;  %v199_v1 = vld [vmem:[%s927_s28 + $0xc] sm:$0xf] (%p78_p3)  ;;  %v201_v2 = vld [vmem:[%s927_s28 + $0x18] sm:$0xf] (%p78_p3) }
  0x14   : > { %198 = vst [vmem:[%s175_s29] sm:$0xf] (%p78_p3), %v197_v0  ;;  %200 = vst [vmem:[%s175_s29 + $0x4] sm:$0xf] (%p78_p3), %v199_v1  ;;  %v203_v3 = vld [vmem:[%s927_s28 + $0x24] sm:$0xf] (%p78_p3) }
  0x15   : > { %v205_v4 = vld [vmem:[%s927_s28 + $0x30] sm:$0xf]  ;;  %202 = vst [vmem:[%s175_s29 + $0x8] sm:$0xf] %v201_v2  ;;  %204 = vst [vmem:[%s175_s29 + $0xc] sm:$0xf] %v203_v3 }
  0x16   : > { %206 = vst [vmem:[%s175_s29 + $0x10] sm:$0xf] %v205_v4  ;;  %v207_v5 = vld [vmem:[%s927_s28 + $0x3c] sm:$0xf]  ;;  %v209_v6 = vld [vmem:[%s927_s28 + $0x48] sm:$0xf] }
  0x17   : > { %v211_v7 = vld [vmem:[%s927_s28 + $0x54] sm:$0xf]  ;;  %208 = vst [vmem:[%s175_s29 + $0x14] sm:$0xf] %v207_v5  ;;  %210 = vst [vmem:[%s175_s29 + $0x18] sm:$0xf] %v209_v6 }
  0x18   : > { %212 = vst [vmem:[%s175_s29 + $0x1c] sm:$0xf] %v211_v7  ;;  %v213_v8 = vld [vmem:[%s927_s28 + $0x60] sm:$0xf]  ;;  %v215_v9 = vld [vmem:[%s927_s28 + $0x6c] sm:$0xf] }
  0x19   : > { %v217_v10 = vld [vmem:[%s927_s28 + $0x78] sm:$0xf]  ;;  %214 = vst [vmem:[%s175_s29 + $0x20] sm:$0xf] %v213_v8  ;;  %216 = vst [vmem:[%s175_s29 + $0x24] sm:$0xf] %v215_v9 }
  0x1a   : > { %218 = vst [vmem:[%s175_s29 + $0x28] sm:$0xf] %v217_v10  ;;  %v219_v11 = vld [vmem:[%s927_s28 + $0x84] sm:$0xf]  ;;  %v221_v12 = vld [vmem:[%s927_s28 + $0x90] sm:$0xf] }
  0x1b   : > { %v223_v13 = vld [vmem:[%s927_s28 + $0x9c] sm:$0xf]  ;;  %220 = vst [vmem:[%s175_s29 + $0x2c] sm:$0xf] %v219_v11  ;;  %222 = vst [vmem:[%s175_s29 + $0x30] sm:$0xf] %v221_v12 }
  0x1c   : > { %224 = vst [vmem:[%s175_s29 + $0x34] sm:$0xf] %v223_v13  ;;  %v225_v14 = vld [vmem:[%s927_s28 + $0xa8] sm:$0xf]  ;;  %v227_v15 = vld [vmem:[%s927_s28 + $0xb4] sm:$0xf] }
  0x1d   : > { %226 = vst [vmem:[%s175_s29 + $0x38] sm:$0xf] %v225_v14  ;;  %228 = vst [vmem:[%s175_s29 + $0x3c] sm:$0xf] %v227_v15 }
  0x1e PF: > { %p702_p8 = scmp.ge.s32.totalorder %s857_s16, 1  ;;  %p289_p9 = scmp.lt.s32.totalorder %s857_s16, 4 }
  0x20   : > { %p290_p10 = pnand %p702_p8, %p289_p9 }
  0x21   : > { %s296_s30 = sand.u32 (!%p290_p10), 1, %s841_s12   ;;  %p339_p11 = scmp.lt.s32.totalorder (!%p290_p10), %s849_s14, 2 }
  0x22   : > { %293 = sbr.rel (%p290_p10) target bundleno = 284 (0x11c), region = 69  ;;  %s703_s6 = sshll.u32 (!%p290_p10), %s296_s30, 6 }
  0x23   : > { %s298_s7 = scalar_lea.vmem (!%p290_p10), [#allocation3], %s703_s6  ;;  %s704_s20 = sshll.u32 (!%p290_p10), %s296_s30, 4 }
  0x24   : > { %s328_s23 = scalar_lea.vmem (!%p290_p10), [#allocation4], %s704_s20 }
  0x27   : > { %v817_v16 = vld [vmem:[%s984_s0] sm:$0xff]   ;;  %v809_v17 = vld [vmem:[%s298_s7 + $0x38] sm:$0xff]   ;;  %v810_v18 = vld [vmem:[%s298_s7 + $0x30] sm:$0xff]   ;;  %s340_s10 = scalar_select %p339_p11, %s849_s14, 2 }
  0x28   : > { %765 = vmatprep.mubr.bf16.mxu0 %v817_v16  ;;  %749 = vmatprep.subr.bf16.mxu0 %v809_v17  ;;  %v811_v19 = vld [vmem:[%s298_s7 + $0x28] sm:$0xff]   ;;  %v812_v20 = vld [vmem:[%s298_s7 + $0x20] sm:$0xff]   ;;  %v813_v21 = vld [vmem:[%s298_s7 + $0x18] sm:$0xff]   ;;  %s721_s24 = sshll.u32 (%p914_p6), %s849_s14, 2 }
  0x29   : > { %750 = vmatpush3.bf16.msra.mxu0 %v809_v17  ;;  %v814_v22 = vld [vmem:[%s298_s7 + $0x10] sm:$0xff]   ;;  %v815_v23 = vld [vmem:[%s298_s7 + $0x8] sm:$0xff]   ;;  %v816_v24 = vld [vmem:[%s298_s7] sm:$0xff]   ;;  %s341_s19 = scalar_lea.vmem %s986_s2, %s340_s10  ;;  %s542_s26 = scalar_lea.vmem (%p914_p6), %s987_s3, %s721_s24 }
  0x2a   : > { %751 = vmatprep.subr.bf16.mxu0 %v810_v18  ;;  %v818_v25 = vld [vmem:[%s984_s0 + $0x8] sm:$0xff]   ;;  %v715_v27 = vld [vmem:[%s341_s19] ss:$0 sm:$0xff] }
  0x2d   : > { %752 = vmatpush3.bf16.msra.mxu0 %v810_v18 }
  0x2e   : > { %753 = vmatprep.subr.bf16.mxu0 %v811_v19 }
  0x31   : > { %754 = vmatpush3.bf16.msra.mxu0 %v811_v19 }
  0x32   : > { %755 = vmatprep.subr.bf16.mxu0 %v812_v20 }
  0x35   : > { %756 = vmatpush3.bf16.msra.mxu0 %v812_v20 }
  0x36   : > { %757 = vmatprep.subr.bf16.mxu0 %v813_v21 }
  0x39   : > { %758 = vmatpush3.bf16.msra.mxu0 %v813_v21 }
  0x3a   : > { %759 = vmatprep.subr.bf16.mxu0 %v814_v22 }
  0x3d   : > { %760 = vmatpush3.bf16.msra.mxu0 %v814_v22 }
  0x3e   : > { %761 = vmatprep.subr.bf16.mxu0 %v815_v23 }
  0x41   : > { %762 = vmatpush3.bf16.msra.mxu0 %v815_v23 }
  0x42   : > { %763 = vmatprep.subr.bf16.mxu0 %v816_v24 }
  0x45   : > { %764 = vmatpush3.bf16.msra.mxu0 %v816_v24 }
  0x48   : > { %766 = vmatmul.mubr.bf16.vlgmr.msra.gmra.mxu0 %v818_v25 }
 0x108   : > { %v767_v26 = vpop.f32.mrf.mxu0 }
 0x109   : > { %v509_v30 = vadd.f32 %v767_v26, %v715_v27 }
 0x10a   : > { %v470_v28 = vpop.f32.mrf.mxu0 }
 0x10b   : > { %v507_v33 = vadd.f32 %v715_v27, %v470_v28 }
 0x10c   : > { %v768_v29 = vpop.f32.mrf.mxu0 }
 0x10d   : > { %v510_v31 = vadd.f32 %v768_v29, %v715_v27 }
 0x10e   : > { %v473_v32 = vpop.f32.mrf.mxu0 }
 0x10f   : > { %v736_v34 = vpack.c.bf16 %v510_v31, %v509_v30  ;;  %v508_v35 = vadd.f32 %v715_v27, %v473_v32  ;;  %537 = sbr.rel (!%p914_p6) target bundleno = 284 (0x11c), region = 85 }
 0x111   : > { %738 = vst [vmem:[%s328_s23 + $0x8] sm:$0xff] %v736_v34   ;;  %v731_v36 = vpack.c.bf16 %v508_v35, %v507_v33 }
 0x113   : > { %732 = vst [vmem:[%s328_s23] sm:$0xff] %v731_v36  }
 0x118   : > { %v563_v39 = vld [vmem:[%s328_s23 + $0x8] sm:$0xf]  ;;  %v565_v40 = vld [vmem:[%s328_s23 + $0xc] sm:$0xf] }
 0x119   : > { %564 = vst [vmem:[%s542_s26 + $0x18] sm:$0xf] %v563_v39  ;;  %566 = vst [vmem:[%s542_s26 + $0x24] sm:$0xf] %v565_v40 }
 0x11a   : > { %v559_v37 = vld [vmem:[%s328_s23] sm:$0xf]  ;;  %v561_v38 = vld [vmem:[%s328_s23 + $0x4] sm:$0xf] }
 0x11b   : > { %560 = vst [vmem:[%s542_s26] sm:$0xf] %v559_v37  ;;  %562 = vst [vmem:[%s542_s26 + $0xc] sm:$0xf] %v561_v38 }
 0x11c PF: > { %s13_s16 = sadd.s32 1, %s857_s16   ;;  %s989_s12 = smov %s845_s13 }
 0x11d   : > { %p10_p12 = scmp.ge.s32.totalorder %s13_s16, 5   ;;  %s990_s13 = smov %s919_s22 }
 0x11e   : > { %s991_s14 = smov %s853_s15  ;;  %s992_s15 = smov %s994_s17 }
 0x11f   :  { %12 = sbr.rel (!%p10_p12) target bundleno = 3 (0x3), region = 163 }

// kernel: bert_language_model.21
= control target key start
LH: loop header
LB: loop body
LE: loop exit
PB: predicated region body
PF: predicated region fallthrough
CT: control target
= control target key end

     0   :  { %s335_s1 = inlined_call_operand.vmem [shape: bf16[128,128], index: 1, kind: input, shape index: {}]   ;;  %s336_s0 = inlined_call_operand.vmem [shape: bf16[32,128], index: 0, kind: input, shape index: {}]   ;;  %s337_s2 = inlined_call_operand.vmem [shape: f32[1,128], index: 2, kind: input, shape index: {}]   ;;  %s338_s3 = inlined_call_operand.vmem [shape: bf16[32,128], index: 3, kind: output, shape index: {}]  }
   0x1   :  { %v266_v0 = vld [vmem:[%s335_s1 + $0x38] sm:$0xff]   ;;  %v267_v1 = vld [vmem:[%s335_s1 + $0x30] sm:$0xff]   ;;  %v268_v2 = vld [vmem:[%s335_s1 + $0x28] sm:$0xff]  }
   0x2   :  { %246 = vmatprep.subr.bf16.mxu0 %v266_v0  ;;  %v269_v3 = vld [vmem:[%s335_s1 + $0x20] sm:$0xff]   ;;  %v270_v5 = vld [vmem:[%s335_s1 + $0x18] sm:$0xff]   ;;  %v271_v6 = vld [vmem:[%s335_s1 + $0x10] sm:$0xff]  }
   0x3   :  { %247 = vmatpush3.bf16.msra.mxu0 %v266_v0  ;;  %v274_v4 = vld [vmem:[%s336_s0] sm:$0xff]   ;;  %v272_v7 = vld [vmem:[%s335_s1 + $0x8] sm:$0xff]  }
   0x4   :  { %248 = vmatprep.subr.bf16.mxu0 %v267_v1  ;;  %262 = vmatprep.mubr.bf16.mxu0 %v274_v4  ;;  %v273_v8 = vld [vmem:[%s335_s1] sm:$0xff]   ;;  %v275_v9 = vld [vmem:[%s336_s0 + $0x8] sm:$0xff]  }
   0x5   :  { %v216_v11 = vld [vmem:[%s337_s2] ss:$0 sm:$0xff] }
   0x7   :  { %249 = vmatpush3.bf16.msra.mxu0 %v267_v1 }
   0x8   :  { %250 = vmatprep.subr.bf16.mxu0 %v268_v2 }
   0xb   :  { %251 = vmatpush3.bf16.msra.mxu0 %v268_v2 }
   0xc   :  { %252 = vmatprep.subr.bf16.mxu0 %v269_v3 }
   0xf   :  { %253 = vmatpush3.bf16.msra.mxu0 %v269_v3 }
  0x10   :  { %254 = vmatprep.subr.bf16.mxu0 %v270_v5 }
  0x13   :  { %255 = vmatpush3.bf16.msra.mxu0 %v270_v5 }
  0x14   :  { %256 = vmatprep.subr.bf16.mxu0 %v271_v6 }
  0x17   :  { %257 = vmatpush3.bf16.msra.mxu0 %v271_v6 }
  0x18   :  { %258 = vmatprep.subr.bf16.mxu0 %v272_v7 }
  0x1b   :  { %259 = vmatpush3.bf16.msra.mxu0 %v272_v7 }
  0x1c   :  { %260 = vmatprep.subr.bf16.mxu0 %v273_v8 }
  0x1f   :  { %261 = vmatpush3.bf16.msra.mxu0 %v273_v8 }
  0x22   :  { %263 = vmatmul.mubr.bf16.vlgmr.msra.gmra.mxu0 %v275_v9 }
  0xe2   :  { %v264_v10 = vpop.f32.mrf.mxu0 }
  0xe3   :  { %v180_v14 = vadd.f32 %v264_v10, %v216_v11 }
  0xe4   :  { %v141_v12 = vpop.f32.mrf.mxu0 }
  0xe5   :  { %v178_v17 = vadd.f32 %v216_v11, %v141_v12 }
  0xe6   :  { %v265_v13 = vpop.f32.mrf.mxu0 }
  0xe7   :  { %v181_v15 = vadd.f32 %v265_v13, %v216_v11 }
  0xe8   :  { %v144_v16 = vpop.f32.mrf.mxu0 }
  0xe9   :  { %v233_v18 = vpack.c.bf16 %v181_v15, %v180_v14  ;;  %v179_v19 = vadd.f32 %v216_v11, %v144_v16 }
  0xeb   :  { %235 = vst [vmem:[%s338_s3 + $0x8] sm:$0xff] %v233_v18   ;;  %v228_v20 = vpack.c.bf16 %v179_v19, %v178_v17 }
  0xed   :  { %229 = vst [vmem:[%s338_s3] sm:$0xff] %v228_v20  }

// kernel: bert_language_model.18
= control target key start
LH: loop header
LB: loop body
LE: loop exit
PB: predicated region body
PF: predicated region fallthrough
CT: control target
= control target key end

     0   :  { %s182_s0 = inlined_call_operand.vmem [shape: f32[32,128], index: 0, kind: input, shape index: {}]   ;;  %s183_s1 = inlined_call_operand.vmem [shape: f32[1,128], index: 1, kind: input, shape index: {}]   ;;  %s184_s2 = inlined_call_operand.vmem [shape: f32[1,128], index: 2, kind: input, shape index: {}]   ;;  %s185_s3 = inlined_call_operand.vmem [shape: bf16[32,128], index: 3, kind: output, shape index: {}]  }
   0x1   :  { %v14_v0 = vld [vmem:[%s182_s0] sm:$0xff]  ;;  %v16_v1 = vld [vmem:[%s182_s0 + $0x10] sm:$0xff]  ;;  %v15_v2 = vld [vmem:[%s182_s0 + $0x8] sm:$0xff] }
   0x2   :  { %18 = vadd.xlane.f32.xlu0 %v14_v0  ;;  %22 = vadd.xlane.f32.xlu1 %v16_v1  ;;  %v17_v3 = vld [vmem:[%s182_s0 + $0x18] sm:$0xff]  ;;  %v109_v34 = vld [vmem:[%s183_s1] ss:$0 sm:$0xff] }
   0x3   :  { %v110_v39 = vld [vmem:[%s184_s2] ss:$0 sm:$0xff] }
   0x6   :  { %20 = vadd.xlane.f32.xlu0 %v15_v2  ;;  %24 = vadd.xlane.f32.xlu1 %v17_v3 }
  0x8b   :  { %v19_v4 = vpop.xlane.xlu0 %18  ;;  %v23_v5 = vpop.xlane.xlu1 %22 }
  0x8c   :  { %v27_v6 = vmul.f32 0.0078125, %v19_v4  ;;  %v29_v7 = vmul.f32 0.0078125, %v23_v5 }
  0x8e   :  { %v31_v8 = vsub.f32 %v14_v0, %v27_v6  ;;  %v33_v9 = vsub.f32 %v16_v1, %v29_v7 }
  0x8f   :  { %v21_v10 = vpop.xlane.xlu0 %20  ;;  %v25_v11 = vpop.xlane.xlu1 %24 }
  0x90   :  { %v28_v12 = vmul.f32 0.0078125, %v21_v10  ;;  %v35_v13 = vmul.f32 %v31_v8, %v31_v8  ;;  %v30_v14 = vmul.f32 0.0078125, %v25_v11  ;;  %v37_v17 = vmul.f32 %v33_v9, %v33_v9 }
  0x92   :  { %v32_v15 = vsub.f32 %v15_v2, %v28_v12  ;;  %39 = vadd.xlane.f32.xlu0 %v35_v13  ;;  %v34_v16 = vsub.f32 %v17_v3, %v30_v14 }
  0x94   :  { %v36_v18 = vmul.f32 %v32_v15, %v32_v15  ;;  %v38_v19 = vmul.f32 %v34_v16, %v34_v16 }
  0x96   :  { %43 = vadd.xlane.f32.xlu0 %v37_v17  ;;  %41 = vadd.xlane.f32.xlu1 %v36_v18 }
  0x9a   :  { %45 = vadd.xlane.f32.xlu1 %v38_v19 }
 0x11b   :  { %v40_v20 = vpop.xlane.xlu0 %39 }
 0x11c   :  { %v47_v21 = vmul.f32 0.0078125, %v40_v20 }
 0x11e   :  { %v51_v22 = vadd.f32 1e-12, %v47_v21 }
 0x11f   :  { %v42_v23 = vpop.xlane.xlu1 %41  ;;  %v44_v24 = vpop.xlane.xlu0 %43 }
 0x120   :  { %130 = vrsqrt.f32 %v51_v22  ;;  %v48_v25 = vmul.f32 0.0078125, %v42_v23  ;;  %v49_v26 = vmul.f32 0.0078125, %v44_v24 }
 0x122   :  { %v52_v27 = vadd.f32 1e-12, %v48_v25  ;;  %v53_v28 = vadd.f32 1e-12, %v49_v26 }
 0x123   :  { %v46_v29 = vpop.xlane.xlu1 %45 }
 0x124   :  { %132 = vrsqrt.f32 %v52_v27  ;;  %v50_v30 = vmul.f32 0.0078125, %v46_v29 }
 0x125   :  { %134 = vrsqrt.f32 %v53_v28 }
 0x126   :  { %v54_v31 = vadd.f32 1e-12, %v50_v30 }
 0x128   :  { %136 = vrsqrt.f32 %v54_v31 }
 0x12d   :  { %v131_v32 = vpop.eup %130 }
 0x12e   :  { %v59_v33 = vmul.f32 %v131_v32, %v31_v8 }
 0x130   :  { %v70_v37 = vmul.f32 %v109_v34, %v59_v33 }
 0x131   :  { %v133_v35 = vpop.eup %132 }
 0x132   :  { %v135_v36 = vpop.eup %134  ;;  %v60_v38 = vmul.f32 %v133_v35, %v32_v15  ;;  %v81_v43 = vadd.f32 %v110_v39, %v70_v37 }
 0x133   :  { %v61_v40 = vmul.f32 %v135_v36, %v33_v9 }
 0x134   :  { %v71_v41 = vmul.f32 %v109_v34, %v60_v38 }
 0x135   :  { %v137_v42 = vpop.eup %136  ;;  %v72_v45 = vmul.f32 %v109_v34, %v61_v40 }
 0x136   :  { %v82_v44 = vadd.f32 %v110_v39, %v71_v41  ;;  %v62_v46 = vmul.f32 %v137_v42, %v34_v16 }
 0x137   :  { %v83_v49 = vadd.f32 %v110_v39, %v72_v45 }
 0x138   :  { %v122_v47 = vpack.c.bf16 %v82_v44, %v81_v43  ;;  %v73_v48 = vmul.f32 %v109_v34, %v62_v46 }
 0x13a   :  { %123 = vst [vmem:[%s185_s3] sm:$0xff] %v122_v47   ;;  %v84_v50 = vadd.f32 %v110_v39, %v73_v48 }
 0x13c   :  { %v127_v51 = vpack.c.bf16 %v84_v50, %v83_v49 }
 0x13e   :  { %129 = vst [vmem:[%s185_s3 + $0x8] sm:$0xff] %v127_v51  }

// kernel: bert_language_model.20
= control target key start
LH: loop header
LB: loop body
LE: loop exit
PB: predicated region body
PF: predicated region fallthrough
CT: control target
= control target key end

     0   :  { %s1135_s12 = smov 0   ;;  %s1137_s13 = smov 0   ;;  %s1271_s0 = inlined_call_operand.vmem [shape: bf16[2,16,384], index: 0, kind: input, shape index: {}, may-alias: {0,1}]   ;;  %s1272_s1 = inlined_call_operand.vmem [shape: bf16[2,16,384], index: 1, kind: input, shape index: {}, may-alias: {0,1}]   ;;  %s1273_s2 = inlined_call_operand.vmem [shape: f32[2,1,16], index: 2, kind: input, shape index: {}]   ;;  %s1274_s3 = inlined_call_operand.vmem [shape: bf16[2,16,128], index: 3, kind: output, shape index: {}]  }
   0x1   :  { %s1139_s14 = smov 0  }
   0x2 LB: > { %s25_s15 = sadd.s32 1, %s1104_s13  ;;  %p913_p0 = scmp.ge.s32.totalorder %s1108_s14, 1  ;;  %s1108_s14 = sphi %s1139_s14, %s13_s14   ;;  %s1104_s13 = sphi %s1137_s13, %s1276_s13   ;;  %s1100_s12 = sphi %s1135_s12, %s1275_s12  }
   0x3   : > { %p27_p1 = scmp.ge.s32.totalorder %s25_s15, 2  ;;  %p177_p2 = scmp.lt.s32.totalorder %s1108_s14, 3 }
   0x5   : > { %s1278_s15 = smov (%p27_p1, %s25_s15), 0  ;;  %p178_p3 = pnand %p913_p0, %p177_p2 }
   0x6   : > { %p219_p4 = scmp.lt.s32.totalorder (!%p178_p3), %s1100_s12, 1  ;;  %s1112_s26 = smov (!%p178_p3), 96  }
   0x7   : > { %181 = sbr.rel (%p178_p3) target bundleno = 1440 (0x5a0), region = 32  ;;  %s1113_s27 = smov (!%p178_p3), 32  }
   0x8   : > { %s1114_s28 = smov (!%p178_p3), 64  }
   0xc   : > { %v1110_v0 = vmov 0.0   ;;  %vm1111_vm0 = vmmov 0   ;;  %s1280_s12 = smov (!%p219_p4, %s1100_s12), 1  ;;  %vm271_vm1 = vcmask 261120   ;;  %vm319_vm2 = vcmask 130048  }
   0xd   : > { %958 = vmatprep.subr.bf16.mxu0 %v1110_v0  ;;  %960 = vmatprep.mubr.msk.bf16.mxu0 %vm1111_vm0, %v1110_v0  ;;  %s1006_s16 = smul.u32 24, %s1280_s12  ;;  %s236_s25 = scalar_lea.vmem %s1273_s2, %s1280_s12  ;;  %vm782_vm3 = vcmask 523264   ;;  %vm785_vm4 = vcmask 785408  }
   0xe   : > { %964 = vmatprep.subr.bf16.mxu1 %v1110_v0  ;;  %966 = vmatprep.mubr.msk.bf16.mxu1 %vm1111_vm0, %v1110_v0  ;;  %v1180_v4 = vld [vmem:[%s236_s25] ss:$0 sm:$0xff]  ;;  %s934_s29 = sshll.u32 %s1280_s12, 3 }
   0xf   : > { %s1165_s19 = scalar_lea.vmem %s1272_s1, %s1006_s16  ;;  %s227_s22 = scalar_lea.vmem %s1271_s0, %s1006_s16 }
  0x10   : > { %v1051_v1 = vld [vmem:[%s1165_s19 + $0x4] ss:$12 sps:$4 sm:$0xff]   ;;  %v1052_v3 = vld [vmem:[%s227_s22] ss:$12 sps:$4 sm:$0xff]   ;;  %v1191_v23 = vld [vmem:[%s1165_s19 + $0x8] ss:$12 sps:$4 sm:$0xff]   ;;  %s245_s5 = scalar_lea.vmem %s1274_s3, %s934_s29 }
  0x11   : > { %v276_v2 = vsel %vm271_vm1, %v1051_v1, 0  ;;  %965 = vmatpush3.bf16.msra.mxu1 %v1191_v23 }
  0x12   : > { %959 = vmatpush3.bf16.xpose.msra.mxu0 %v276_v2  ;;  %970 = vmatprep.subr.bf16.mxu1 %v1110_v0 }
  0x13   : > { %976 = vmatprep.subr.bf16.mxu0 %v1110_v0 }
  0x19   : > { %961 = vmatmul.mubr.msk.bf16.vlgmr.msra.gmra.mxu0 %vm271_vm1, %v1052_v3 }
  0x1a   : > { %978 = vmatprep.mubr.msk.bf16.mxu0 %vm1111_vm0, %v1110_v0 }
  0xd9   : > { %v312_v5 = vpop.f32.mrf.mxu0 }
  0xda   : > { %v313_v6 = vadd.f32 %v1180_v4, %v312_v5 }
  0xdb   : > { %v962_v7 = vpop.f32.mrf.mxu0 }
  0xdc   : > { %v320_v8 = vsel %vm319_vm2, %v313_v6, -inf }
  0xdd   : > { %321 = vmax.xlane.f32.xlu0 %v320_v8  ;;  %v315_v9 = vpop.f32.mrf.mxu0 }
  0xde   : > { %v316_v10 = vadd.f32 %v1180_v4, %v315_v9 }
  0xdf   : > { %v963_v11 = vpop.f32.mrf.mxu0 }
  0xe0   : > { %v323_v12 = vsel %vm319_vm2, %v316_v10, -inf }
  0xe1   : > { %324 = vmax.xlane.f32.xlu0 %v323_v12 }
  0xf7   : > { %395 = vrot.lane.b32.xlu0 %v1051_v1, %s1112_s26 }
  0xfb   : > { %637 = vrot.lane.b32.xlu0 %v1051_v1, %s1113_s27 }
 0x166   : > { %v322_v13 = vpop.xlane.xlu0 %321 }
 0x167   : > { %v326_v14 = vsub.f32 %v313_v6, %v322_v13 }
 0x169   : > { %v328_v15 = vmul.f32 1.442695, %v326_v14 }
 0x16a   : > { %v325_v16 = vpop.xlane.xlu0 %324 }
 0x16b   : > { %1054 = vpow2.f32 %v328_v15  ;;  %v327_v17 = vsub.f32 %v316_v10, %v325_v16 }
 0x16d   : > { %v330_v18 = vmul.f32 1.442695, %v327_v17 }
 0x16e   : > { %v396_v28 = vpop.permute.xlu0 %395 }
 0x16f   : > { %1056 = vpow2.f32 %v330_v18  ;;  %v401_v32 = vsel %vm271_vm1, %v396_v28, 0 }
 0x172   : > { %v638_v36 = vpop.permute.xlu0 %637 }
 0x173   : > { %v643_v38 = vsel %vm271_vm1, %v638_v36, 0 }
 0x178   : > { %v1055_v19 = vpop.eup %1054 }
 0x179   : > { %v332_v20 = vsel %vm319_vm2, %v1055_v19, 0.0 }
 0x17a   : > { %333 = vadd.xlane.f32.xlu1 %v332_v20 }
 0x17c   : > { %v1057_v21 = vpop.eup %1056 }
 0x17d   : > { %v335_v22 = vsel %vm319_vm2, %v1057_v21, 0.0 }
 0x17e   : > { %336 = vadd.xlane.f32.xlu1 %v335_v22 }
 0x18f   : > { %393 = vrot.lane.b32.xlu1 %v1052_v3, %s1112_s26 }
 0x193   : > { %516 = vrot.lane.b32.xlu1 %v1051_v1, %s1114_s28 }
 0x197   : > { %514 = vrot.lane.b32.xlu1 %v1052_v3, %s1114_s28 }
 0x19b   : > { %635 = vrot.lane.b32.xlu1 %v1052_v3, %s1113_s27 }
 0x203   : > { %v334_v24 = vpop.xlane.xlu1 %333 }
 0x204   : > { %1058 = vrcp.f32 %v334_v24 }
 0x207   : > { %v337_v25 = vpop.xlane.xlu1 %336 }
 0x208   : > { %1060 = vrcp.f32 %v337_v25 }
 0x20b   : > { %v394_v31 = vpop.permute.xlu1 %393 }
 0x20f   : > { %v517_v34 = vpop.permute.xlu1 %516 }
 0x210   : > { %v522_v35 = vsel %vm271_vm1, %v517_v34, 0 }
 0x211   : > { %v1059_v26 = vpop.eup %1058 }
 0x212   : > { %v340_v29 = vmul.f32 %v1059_v26, %v1055_v19 }
 0x213   : > { %v515_v37 = vpop.permute.xlu1 %514 }
 0x215   : > { %v1061_v27 = vpop.eup %1060 }
 0x216   : > { %v341_v30 = vmul.f32 %v1061_v27, %v1057_v21 }
 0x217   : > { %v636_v39 = vpop.permute.xlu1 %635 }
 0x218   : > { %v342_v33 = vpack.c.bf16 %v341_v30, %v340_v29 }
 0x21a   : > { %967 = vmatmul.mubr.msk.bf16.vlgmr.msra.gmra.mxu1 %vm319_vm2, %v342_v33 }
 0x21b   : > { %971 = vmatpush3.bf16.xpose.msra.mxu1 %v401_v32  ;;  %972 = vmatprep.mubr.msk.bf16.mxu1 %vm1111_vm0, %v1110_v0 }
 0x21c   : > { %982 = vmatprep.subr.bf16.mxu1 %v1110_v0 }
 0x222   : > { %973 = vmatmul.mubr.msk.bf16.vlgmr.msra.gmra.mxu1 %vm271_vm1, %v394_v31 }
 0x223   : > { %983 = vmatpush3.bf16.xpose.msra.mxu1 %v522_v35  ;;  %984 = vmatprep.mubr.msk.bf16.mxu1 %vm1111_vm0, %v1110_v0 }
 0x224   : > { %994 = vmatprep.subr.bf16.mxu1 %v1110_v0 }
 0x22a   : > { %985 = vmatmul.mubr.msk.bf16.vlgmr.msra.gmra.mxu1 %vm271_vm1, %v515_v37 }
 0x22b   : > { %995 = vmatpush3.bf16.xpose.msra.mxu1 %v643_v38  ;;  %996 = vmatprep.mubr.msk.bf16.mxu1 %vm1111_vm0, %v1110_v0 }
 0x232   : > { %997 = vmatmul.mubr.msk.bf16.vlgmr.msra.gmra.mxu1 %vm271_vm1, %v636_v39 }
 0x2da   : > { %v1214_v40 = vpop.f32.mrf.mxu1 }
 0x2dc   : > { %v968_v41 = vpop.f32.mrf.mxu1 }
 0x2de   : > { %v1216_v42 = vpop.f32.mrf.mxu1 }
 0x2e0   : > { %v969_v43 = vpop.f32.mrf.mxu1 }
 0x2e2   : > { %v437_v44 = vpop.f32.mrf.mxu1 }
 0x2e3   : > { %v438_v45 = vadd.f32 %v1180_v4, %v437_v44 }
 0x2e4   : > { %v974_v46 = vpop.f32.mrf.mxu1 }
 0x2e5   : > { %v444_v47 = vsel %vm319_vm2, %v438_v45, -inf }
 0x2e6   : > { %445 = vmax.xlane.f32.xlu0 %v444_v47  ;;  %v440_v48 = vpop.f32.mrf.mxu1 }
 0x2e7   : > { %v441_v49 = vadd.f32 %v1180_v4, %v440_v48 }
 0x2e8   : > { %v975_v50 = vpop.f32.mrf.mxu1 }
 0x2e9   : > { %v447_v51 = vsel %vm319_vm2, %v441_v49, -inf }
 0x2ea   : > { %448 = vmax.xlane.f32.xlu1 %v447_v51  ;;  %v558_v52 = vpop.f32.mrf.mxu1 }
 0x2eb   : > { %v559_v53 = vadd.f32 %v1180_v4, %v558_v52 }
 0x2ec   : > { %v986_v54 = vpop.f32.mrf.mxu1 }
 0x2ed   : > { %v565_v55 = vsel %vm319_vm2, %v559_v53, -inf }
 0x2ee   : > { %566 = vmax.xlane.f32.xlu0 %v565_v55  ;;  %v561_v56 = vpop.f32.mrf.mxu1 }
 0x2ef   : > { %v562_v57 = vadd.f32 %v1180_v4, %v561_v56 }
 0x2f0   : > { %v987_v58 = vpop.f32.mrf.mxu1 }
 0x2f1   : > { %v568_v59 = vsel %vm319_vm2, %v562_v57, -inf }
 0x2f2   : > { %569 = vmax.xlane.f32.xlu0 %v568_v59  ;;  %v679_v60 = vpop.f32.mrf.mxu1 }
 0x2f3   : > { %v680_v61 = vadd.f32 %v1180_v4, %v679_v60 }
 0x2f4   : > { %v998_v62 = vpop.f32.mrf.mxu1 }
 0x2f5   : > { %v686_v63 = vsel %vm319_vm2, %v680_v61, -inf }
 0x2f6   : > { %687 = vmax.xlane.f32.xlu0 %v686_v63  ;;  %v682_v1 = vpop.f32.mrf.mxu1 }
 0x2f7   : > { %v683_v2 = vadd.f32 %v1180_v4, %v682_v1 }
 0x2f8   : > { %v999_v3 = vpop.f32.mrf.mxu1 }
 0x2f9   : > { %v689_v5 = vsel %vm319_vm2, %v683_v2, -inf }
 0x2fa   : > { %690 = vmax.xlane.f32.xlu1 %v689_v5 }
 0x36f   : > { %v446_v6 = vpop.xlane.xlu0 %445 }
 0x370   : > { %v450_v7 = vsub.f32 %v438_v45, %v446_v6 }
 0x372   : > { %v452_v8 = vmul.f32 1.442695, %v450_v7 }
 0x373   : > { %v449_v9 = vpop.xlane.xlu1 %448 }
 0x374   : > { %1062 = vpow2.f32 %v452_v8  ;;  %v451_v10 = vsub.f32 %v441_v49, %v449_v9 }
 0x376   : > { %v454_v11 = vmul.f32 1.442695, %v451_v10 }
 0x377   : > { %v567_v12 = vpop.xlane.xlu0 %566 }
 0x378   : > { %1064 = vpow2.f32 %v454_v11  ;;  %v571_v13 = vsub.f32 %v559_v53, %v567_v12 }
 0x37a   : > { %v573_v14 = vmul.f32 1.442695, %v571_v13 }
 0x37b   : > { %v570_v15 = vpop.xlane.xlu0 %569 }
 0x37c   : > { %1066 = vpow2.f32 %v573_v14  ;;  %v572_v16 = vsub.f32 %v562_v57, %v570_v15 }
 0x37e   : > { %v575_v17 = vmul.f32 1.442695, %v572_v16 }
 0x37f   : > { %v688_v4 = vpop.xlane.xlu0 %687 }
 0x380   : > { %1068 = vpow2.f32 %v575_v17  ;;  %v692_v18 = vsub.f32 %v680_v61, %v688_v4 }
 0x381   : > { %v1063_v19 = vpop.eup %1062 }
 0x382   : > { %v694_v20 = vmul.f32 1.442695, %v692_v18  ;;  %v456_v21 = vsel %vm319_vm2, %v1063_v19, 0.0 }
 0x383   : > { %457 = vadd.xlane.f32.xlu0 %v456_v21  ;;  %v691_v31 = vpop.xlane.xlu1 %690 }
 0x384   : > { %1070 = vpow2.f32 %v694_v20  ;;  %v693_v32 = vsub.f32 %v683_v2, %v691_v31 }
 0x385   : > { %v1065_v22 = vpop.eup %1064 }
 0x386   : > { %v459_v24 = vsel %vm319_vm2, %v1065_v22, 0.0  ;;  %v696_v33 = vmul.f32 1.442695, %v693_v32 }
 0x387   : > { %460 = vadd.xlane.f32.xlu1 %v459_v24 }
 0x388   : > { %1072 = vpow2.f32 %v696_v33 }
 0x389   : > { %v1067_v25 = vpop.eup %1066 }
 0x38a   : > { %v577_v26 = vsel %vm319_vm2, %v1067_v25, 0.0 }
 0x38b   : > { %578 = vadd.xlane.f32.xlu0 %v577_v26 }
 0x38d   : > { %v1069_v27 = vpop.eup %1068 }
 0x38e   : > { %v580_v28 = vsel %vm319_vm2, %v1069_v27, 0.0 }
 0x38f   : > { %581 = vadd.xlane.f32.xlu1 %v580_v28 }
 0x391   : > { %v1071_v29 = vpop.eup %1070 }
 0x392   : > { %v698_v30 = vsel %vm319_vm2, %v1071_v29, 0.0 }
 0x393   : > { %699 = vadd.xlane.f32.xlu0 %v698_v30 }
 0x395   : > { %v1073_v34 = vpop.eup %1072 }
 0x396   : > { %v701_v35 = vsel %vm319_vm2, %v1073_v34, 0.0 }
 0x3a0   : > { %588 = vrot.lane.b32.xlu1 %v1191_v23, %s1114_s28 }
 0x3a9   : > { %467 = vrot.lane.b32.xlu0 %v1191_v23, %s1112_s26 }
 0x3c4   : > { %702 = vadd.xlane.f32.xlu1 %v701_v35 }
 0x3d5   : > { %709 = vrot.lane.b32.xlu1 %v1191_v23, %s1113_s27 }
 0x40c   : > { %v458_v36 = vpop.xlane.xlu0 %457 }
 0x40d   : > { %1074 = vrcp.f32 %v458_v36 }
 0x410   : > { %v461_v37 = vpop.xlane.xlu1 %460 }
 0x411   : > { %1076 = vrcp.f32 %v461_v37 }
 0x414   : > { %v579_v38 = vpop.xlane.xlu0 %578 }
 0x415   : > { %1078 = vrcp.f32 %v579_v38 }
 0x418   : > { %v582_v39 = vpop.xlane.xlu1 %581 }
 0x419   : > { %1080 = vrcp.f32 %v582_v39 }
 0x41a   : > { %v1075_v41 = vpop.eup %1074 }
 0x41b   : > { %v464_v45 = vmul.f32 %v1075_v41, %v1063_v19 }
 0x41c   : > { %v700_v43 = vpop.xlane.xlu0 %699  ;;  %v589_v23 = vpop.permute.xlu1 %588 }
 0x41d   : > { %1082 = vrcp.f32 %v700_v43 }
 0x41e   : > { %v1077_v44 = vpop.eup %1076 }
 0x41f   : > { %v465_v46 = vmul.f32 %v1077_v44, %v1065_v22 }
 0x420   : > { %v468_v47 = vpop.permute.xlu0 %467 }
 0x421   : > { %977 = vmatpush3.bf16.msra.mxu0 %v468_v47  ;;  %v466_v48 = vpack.c.bf16 %v465_v46, %v464_v45 }
 0x422   : > { %988 = vmatprep.subr.bf16.mxu0 %v1110_v0  ;;  %v1079_v49 = vpop.eup %1078 }
 0x423   : > { %v585_v51 = vmul.f32 %v1079_v49, %v1067_v25 }
 0x424   : > { %979 = vmatmul.mubr.msk.bf16.vlgmr.msra.gmra.mxu0 %vm319_vm2, %v466_v48 }
 0x425   : > { %989 = vmatpush3.bf16.msra.mxu0 %v589_v23  ;;  %990 = vmatprep.mubr.msk.bf16.mxu0 %vm1111_vm0, %v1110_v0 }
 0x426   : > { %v1081_v50 = vpop.eup %1080  ;;  %1000 = vmatprep.subr.bf16.mxu0 %v1110_v0 }
 0x427   : > { %v586_v52 = vmul.f32 %v1081_v50, %v1069_v27 }
 0x429   : > { %v587_v53 = vpack.c.bf16 %v586_v52, %v585_v51 }
 0x42a   : > { %v1083_v56 = vpop.eup %1082 }
 0x42b   : > { %v706_v58 = vmul.f32 %v1083_v56, %v1071_v29 }
 0x42c   : > { %991 = vmatmul.mubr.msk.bf16.vlgmr.msra.gmra.mxu0 %vm319_vm2, %v587_v53 }
 0x42d   : > { %1002 = vmatprep.mubr.msk.bf16.mxu0 %vm1111_vm0, %v1110_v0 }
 0x44d   : > { %v703_v54 = vpop.xlane.xlu1 %702 }
 0x44e   : > { %1084 = vrcp.f32 %v703_v54 }
 0x451   : > { %v710_v55 = vpop.permute.xlu1 %709 }
 0x452   : > { %1001 = vmatpush3.bf16.msra.mxu0 %v710_v55 }
 0x45b   : > { %v1085_v57 = vpop.eup %1084 }
 0x45c   : > { %v707_v59 = vmul.f32 %v1085_v57, %v1073_v34 }
 0x45e   : > { %v708_v60 = vpack.c.bf16 %v707_v59, %v706_v58 }
 0x460   : > { %1003 = vmatmul.mubr.msk.bf16.vlgmr.msra.gmra.mxu0 %vm319_vm2, %v708_v60 }
 0x4e4   : > { %v507_v61 = vpop.f32.mrf.mxu0 }
 0x4e6   : > { %v980_v62 = vpop.f32.mrf.mxu0 }
 0x4e8   : > { %v510_v63 = vpop.f32.mrf.mxu0 }
 0x4e9   : > { %v1036_v1 = vpack.i.bf16 %v510_v63, %v507_v61 }
 0x4ea   : > { %v981_v2 = vpop.f32.mrf.mxu0 }
 0x4eb   : > { %1037 = vrot.lane.b32.xlu1 %v1036_v1, %s1113_s27 }
 0x4ec   : > { %v628_v0 = vpop.f32.mrf.mxu0 }
 0x4ee   : > { %v992_v3 = vpop.f32.mrf.mxu0 }
 0x4f0   : > { %v631_v5 = vpop.f32.mrf.mxu0 }
 0x4f1   : > { %v1041_v6 = vpack.i.bf16 %v631_v5, %v628_v0 }
 0x4f2   : > { %v993_v7 = vpop.f32.mrf.mxu0 }
 0x4f3   : > { %1042 = vrot.lane.b32.xlu0 %v1041_v6, %s1114_s28 }
 0x520   : > { %v749_v8 = vpop.f32.mrf.mxu0 }
 0x522   : > { %v1004_v9 = vpop.f32.mrf.mxu0 }
 0x524   : > { %v752_v10 = vpop.f32.mrf.mxu0 }
 0x525   : > { %v1046_v11 = vpack.i.bf16 %v752_v10, %v749_v8 }
 0x526   : > { %v1005_v12 = vpop.f32.mrf.mxu0 }
 0x527   : > { %1047 = vrot.lane.b32.xlu1 %v1046_v11, %s1112_s26 }
 0x55d   : > { %v1038_v13 = vpop.permute.xlu1 %1037 }
 0x55e   : > { %v1040_v15 = vunpack.i.h.bf16 %v1038_v13  ;;  %v1039_v16 = vunpack.i.l.bf16 %v1038_v13 }
 0x560   : > { %v781_v19 = vsel %vm271_vm1, %v1216_v42, %v1040_v15  ;;  %v780_v20 = vsel %vm271_vm1, %v1214_v40, %v1039_v16 }
 0x565   : > { %v1043_v14 = vpop.permute.xlu0 %1042 }
 0x566   : > { %v1045_v17 = vunpack.i.h.bf16 %v1043_v14  ;;  %v1044_v4 = vunpack.i.l.bf16 %v1043_v14 }
 0x568   : > { %v784_v24 = vsel %vm782_vm3, %v781_v19, %v1045_v17  ;;  %v783_v25 = vsel %vm782_vm3, %v780_v20, %v1044_v4 }
 0x599   : > { %v1048_v18 = vpop.permute.xlu1 %1047 }
 0x59a   : > { %v1050_v21 = vunpack.i.h.bf16 %v1048_v18  ;;  %v1049_v22 = vunpack.i.l.bf16 %v1048_v18 }
 0x59c   : > { %v787_v26 = vsel %vm785_vm4, %v784_v24, %v1050_v21  ;;  %v786_v27 = vsel %vm785_vm4, %v783_v25, %v1049_v22 }
 0x59d   : > { %v940_v28 = vpack.c.bf16 %v787_v26, %v786_v27 }
 0x59f   : > { %941 = vst [vmem:[%s245_s5] sm:$0xff] %v940_v28  }
 0x5a0 PF: > { %s13_s14 = sadd.s32 1, %s1108_s14   ;;  %s1275_s12 = smov %s1104_s13 }
 0x5a1   : > { %p10_p5 = scmp.ge.s32.totalorder %s13_s14, 4   ;;  %s1276_s13 = smov %s1278_s15 }
 0x5a3   :  { %12 = sbr.rel (!%p10_p5) target bundleno = 2 (0x2), region = 68 }

// kernel: bert_language_model.22
= control target key start
LH: loop header
LB: loop body
LE: loop exit
PB: predicated region body
PF: predicated region fallthrough
CT: control target
= control target key end

     0   :  { %s224_s0 = inlined_call_operand.vmem [shape: bf16[32,128], index: 0, kind: input, shape index: {}]   ;;  %s225_s1 = inlined_call_operand.vmem [shape: bf16[32,128], index: 1, kind: input, shape index: {}]   ;;  %s226_s2 = inlined_call_operand.vmem [shape: f32[1,128], index: 2, kind: input, shape index: {}]   ;;  %s227_s3 = inlined_call_operand.vmem [shape: f32[1,128], index: 3, kind: input, shape index: {}]   ;;  %s228_s4 = inlined_call_operand.vmem [shape: bf16[32,128], index: 4, kind: output, shape index: {}]  }
   0x1   :  { %v139_v0 = vld [vmem:[%s224_s0] sm:$0xff]   ;;  %v164_v2 = vld [vmem:[%s224_s0 + $0x8] sm:$0xff]  }
   0x2   :  { %v147_v1 = vld [vmem:[%s225_s1] sm:$0xff]   ;;  %v140_v3 = vunpack.c.l.bf16 %v139_v0  ;;  %v144_v5 = vunpack.c.l.bf16 %v164_v2  ;;  %v165_v6 = vld [vmem:[%s225_s1 + $0x8] sm:$0xff]   ;;  %v141_v7 = vunpack.c.h.bf16 %v139_v0  ;;  %v145_v10 = vunpack.c.h.bf16 %v164_v2 }
   0x3   :  { %v148_v4 = vunpack.c.l.bf16 %v147_v1  ;;  %v152_v8 = vunpack.c.l.bf16 %v165_v6  ;;  %v149_v9 = vunpack.c.h.bf16 %v147_v1  ;;  %v153_v11 = vunpack.c.h.bf16 %v165_v6  ;;  %v128_v46 = vld [vmem:[%s226_s2] ss:$0 sm:$0xff] }
   0x4   :  { %v129_v51 = vld [vmem:[%s227_s3] ss:$0 sm:$0xff] }
   0x5   :  { %v33_v12 = vadd.f32 %v148_v4, %v140_v3  ;;  %v35_v13 = vadd.f32 %v152_v8, %v144_v5  ;;  %v34_v14 = vadd.f32 %v149_v9, %v141_v7  ;;  %v36_v15 = vadd.f32 %v153_v11, %v145_v10 }
   0x7   :  { %37 = vadd.xlane.f32.xlu0 %v33_v12  ;;  %41 = vadd.xlane.f32.xlu1 %v35_v13 }
   0xb   :  { %39 = vadd.xlane.f32.xlu0 %v34_v14  ;;  %43 = vadd.xlane.f32.xlu1 %v36_v15 }
  0x90   :  { %v38_v16 = vpop.xlane.xlu0 %37  ;;  %v42_v18 = vpop.xlane.xlu1 %41 }
  0x91   :  { %v46_v17 = vmul.f32 0.0078125, %v38_v16  ;;  %v48_v19 = vmul.f32 0.0078125, %v42_v18 }
  0x93   :  { %v50_v20 = vsub.f32 %v33_v12, %v46_v17  ;;  %v52_v21 = vsub.f32 %v35_v13, %v48_v19 }
  0x94   :  { %v40_v22 = vpop.xlane.xlu0 %39  ;;  %v44_v25 = vpop.xlane.xlu1 %43 }
  0x95   :  { %v47_v23 = vmul.f32 0.0078125, %v40_v22  ;;  %v54_v24 = vmul.f32 %v50_v20, %v50_v20  ;;  %v49_v26 = vmul.f32 0.0078125, %v44_v25  ;;  %v56_v28 = vmul.f32 %v52_v21, %v52_v21 }
  0x97   :  { %v51_v27 = vsub.f32 %v34_v14, %v47_v23  ;;  %58 = vadd.xlane.f32.xlu0 %v54_v24  ;;  %v53_v29 = vsub.f32 %v36_v15, %v49_v26 }
  0x99   :  { %v55_v30 = vmul.f32 %v51_v27, %v51_v27  ;;  %v57_v31 = vmul.f32 %v53_v29, %v53_v29 }
  0x9b   :  { %62 = vadd.xlane.f32.xlu0 %v56_v28  ;;  %60 = vadd.xlane.f32.xlu1 %v55_v30 }
  0x9f   :  { %64 = vadd.xlane.f32.xlu1 %v57_v31 }
 0x120   :  { %v59_v32 = vpop.xlane.xlu0 %58 }
 0x121   :  { %v66_v33 = vmul.f32 0.0078125, %v59_v32 }
 0x123   :  { %v70_v34 = vadd.f32 1e-12, %v66_v33 }
 0x124   :  { %v61_v35 = vpop.xlane.xlu1 %60  ;;  %v63_v36 = vpop.xlane.xlu0 %62 }
 0x125   :  { %167 = vrsqrt.f32 %v70_v34  ;;  %v67_v37 = vmul.f32 0.0078125, %v61_v35  ;;  %v68_v38 = vmul.f32 0.0078125, %v63_v36 }
 0x127   :  { %v71_v39 = vadd.f32 1e-12, %v67_v37  ;;  %v72_v40 = vadd.f32 1e-12, %v68_v38 }
 0x128   :  { %v65_v41 = vpop.xlane.xlu1 %64 }
 0x129   :  { %169 = vrsqrt.f32 %v71_v39  ;;  %v69_v42 = vmul.f32 0.0078125, %v65_v41 }
 0x12a   :  { %171 = vrsqrt.f32 %v72_v40 }
 0x12b   :  { %v73_v43 = vadd.f32 1e-12, %v69_v42 }
 0x12d   :  { %173 = vrsqrt.f32 %v73_v43 }
 0x132   :  { %v168_v44 = vpop.eup %167 }
 0x133   :  { %v78_v45 = vmul.f32 %v168_v44, %v50_v20 }
 0x135   :  { %v89_v49 = vmul.f32 %v128_v46, %v78_v45 }
 0x136   :  { %v170_v47 = vpop.eup %169 }
 0x137   :  { %v172_v48 = vpop.eup %171  ;;  %v79_v50 = vmul.f32 %v170_v47, %v51_v27  ;;  %v100_v55 = vadd.f32 %v129_v51, %v89_v49 }
 0x138   :  { %v80_v52 = vmul.f32 %v172_v48, %v52_v21 }
 0x139   :  { %v90_v53 = vmul.f32 %v128_v46, %v79_v50 }
 0x13a   :  { %v174_v54 = vpop.eup %173  ;;  %v91_v57 = vmul.f32 %v128_v46, %v80_v52 }
 0x13b   :  { %v101_v56 = vadd.f32 %v129_v51, %v90_v53  ;;  %v81_v58 = vmul.f32 %v174_v54, %v53_v29 }
 0x13c   :  { %v102_v61 = vadd.f32 %v129_v51, %v91_v57 }
 0x13d   :  { %v157_v59 = vpack.c.bf16 %v101_v56, %v100_v55  ;;  %v92_v60 = vmul.f32 %v128_v46, %v81_v58 }
 0x13f   :  { %158 = vst [vmem:[%s228_s4] sm:$0xff] %v157_v59   ;;  %v103_v62 = vadd.f32 %v129_v51, %v92_v60 }
 0x141   :  { %v162_v63 = vpack.c.bf16 %v103_v62, %v102_v61 }
 0x143   :  { %166 = vst [vmem:[%s228_s4 + $0x8] sm:$0xff] %v162_v63  }

// kernel: bert_language_model.33
= control target key start
LH: loop header
LB: loop body
LE: loop exit
PB: predicated region body
PF: predicated region fallthrough
CT: control target
= control target key end

     0   :  { %s363_s1 = inlined_call_operand.vmem [shape: bf16[128,128], index: 1, kind: input, shape index: {}]   ;;  %s364_s0 = inlined_call_operand.vmem [shape: bf16[32,128], index: 0, kind: input, shape index: {}]   ;;  %s365_s2 = inlined_call_operand.vmem [shape: f32[1,128], index: 2, kind: input, shape index: {}]   ;;  %s366_s3 = inlined_call_operand.vmem [shape: bf16[32,128], index: 3, kind: output, shape index: {}]  }
   0x1   :  { %v286_v0 = vld [vmem:[%s363_s1 + $0x38] sm:$0xff]   ;;  %v287_v1 = vld [vmem:[%s363_s1 + $0x30] sm:$0xff]   ;;  %v288_v2 = vld [vmem:[%s363_s1 + $0x28] sm:$0xff]  }
   0x2   :  { %266 = vmatprep.subr.bf16.mxu0 %v286_v0  ;;  %v289_v3 = vld [vmem:[%s363_s1 + $0x20] sm:$0xff]   ;;  %v290_v5 = vld [vmem:[%s363_s1 + $0x18] sm:$0xff]   ;;  %v291_v6 = vld [vmem:[%s363_s1 + $0x10] sm:$0xff]  }
   0x3   :  { %267 = vmatpush3.bf16.msra.mxu0 %v286_v0  ;;  %v294_v4 = vld [vmem:[%s364_s0] sm:$0xff]   ;;  %v292_v7 = vld [vmem:[%s363_s1 + $0x8] sm:$0xff]  }
   0x4   :  { %268 = vmatprep.subr.bf16.mxu0 %v287_v1  ;;  %282 = vmatprep.mubr.bf16.mxu0 %v294_v4  ;;  %v293_v8 = vld [vmem:[%s363_s1] sm:$0xff]   ;;  %v295_v9 = vld [vmem:[%s364_s0 + $0x8] sm:$0xff]  }
   0x5   :  { %v236_v10 = vld [vmem:[%s365_s2] ss:$0 sm:$0xff] }
   0x7   :  { %269 = vmatpush3.bf16.msra.mxu0 %v287_v1 }
   0x8   :  { %270 = vmatprep.subr.bf16.mxu0 %v288_v2 }
   0xb   :  { %271 = vmatpush3.bf16.msra.mxu0 %v288_v2 }
   0xc   :  { %272 = vmatprep.subr.bf16.mxu0 %v289_v3 }
   0xf   :  { %273 = vmatpush3.bf16.msra.mxu0 %v289_v3 }
  0x10   :  { %274 = vmatprep.subr.bf16.mxu0 %v290_v5 }
  0x13   :  { %275 = vmatpush3.bf16.msra.mxu0 %v290_v5 }
  0x14   :  { %276 = vmatprep.subr.bf16.mxu0 %v291_v6 }
  0x17   :  { %277 = vmatpush3.bf16.msra.mxu0 %v291_v6 }
  0x18   :  { %278 = vmatprep.subr.bf16.mxu0 %v292_v7 }
  0x1b   :  { %279 = vmatpush3.bf16.msra.mxu0 %v292_v7 }
  0x1c   :  { %280 = vmatprep.subr.bf16.mxu0 %v293_v8 }
  0x1f   :  { %281 = vmatpush3.bf16.msra.mxu0 %v293_v8 }
  0x22   :  { %283 = vmatmul.mubr.bf16.vlgmr.msra.gmra.mxu0 %v295_v9 }
  0xe2   :  { %v284_v11 = vpop.f32.mrf.mxu0 }
  0xe3   :  { %v180_v12 = vadd.f32 %v284_v11, %v236_v10 }
  0xe4   :  { %v141_v13 = vpop.f32.mrf.mxu0 }
  0xe5   :  { %v188_v14 = vmul.f32 0.70710677, %v180_v12  ;;  %v178_v15 = vadd.f32 %v236_v10, %v141_v13  ;;  %v184_v27 = vmul.f32 0.5, %v180_v12 }
  0xe6   :  { %v285_v16 = vpop.f32.mrf.mxu0 }
  0xe7   :  { %296 = verf.f32 %v188_v14  ;;  %v186_v17 = vmul.f32 0.70710677, %v178_v15  ;;  %v181_v18 = vadd.f32 %v285_v16, %v236_v10  ;;  %v182_v32 = vmul.f32 0.5, %v178_v15 }
  0xe8   :  { %v144_v19 = vpop.f32.mrf.mxu0 }
  0xe9   :  { %298 = verf.f32 %v186_v17  ;;  %v189_v20 = vmul.f32 0.70710677, %v181_v18  ;;  %v179_v21 = vadd.f32 %v236_v10, %v144_v19  ;;  %v185_v29 = vmul.f32 0.5, %v181_v18 }
  0xeb   :  { %300 = verf.f32 %v189_v20  ;;  %v187_v22 = vmul.f32 0.70710677, %v179_v21  ;;  %v183_v35 = vmul.f32 0.5, %v179_v21 }
  0xed   :  { %302 = verf.f32 %v187_v22 }
  0xf4   :  { %v297_v23 = vpop.eup %296 }
  0xf5   :  { %v196_v25 = vadd.f32 1.0, %v297_v23 }
  0xf6   :  { %v299_v24 = vpop.eup %298 }
  0xf7   :  { %v194_v28 = vadd.f32 1.0, %v299_v24  ;;  %v200_v33 = vmul.f32 %v196_v25, %v184_v27 }
  0xf8   :  { %v301_v26 = vpop.eup %300 }
  0xf9   :  { %v197_v30 = vadd.f32 1.0, %v301_v26  ;;  %v198_v37 = vmul.f32 %v194_v28, %v182_v32 }
  0xfa   :  { %v303_v31 = vpop.eup %302 }
  0xfb   :  { %v201_v34 = vmul.f32 %v197_v30, %v185_v29  ;;  %v195_v36 = vadd.f32 1.0, %v303_v31 }
  0xfd   :  { %v253_v38 = vpack.c.bf16 %v201_v34, %v200_v33  ;;  %v199_v39 = vmul.f32 %v195_v36, %v183_v35 }
  0xff   :  { %255 = vst [vmem:[%s366_s3 + $0x8] sm:$0xff] %v253_v38   ;;  %v248_v40 = vpack.c.bf16 %v199_v39, %v198_v37 }
 0x101   :  { %249 = vst [vmem:[%s366_s3] sm:$0xff] %v248_v40  }

// kernel: bert_language_model.24
= control target key start
LH: loop header
LB: loop body
LE: loop exit
PB: predicated region body
PF: predicated region fallthrough
CT: control target
= control target key end

     0   :  { %s788_s1 = inlined_call_operand.vmem [shape: bf16[512,128], index: 1, kind: input, shape index: {}]   ;;  %s789_s0 = inlined_call_operand.vmem [shape: bf16[32,512], index: 0, kind: input, shape index: {}]   ;;  %s790_s2 = inlined_call_operand.vmem [shape: f32[1,128], index: 2, kind: input, shape index: {}]   ;;  %s791_s3 = inlined_call_operand.vmem [shape: bf16[32,128], index: 3, kind: output, shape index: {}]  }
   0x1   :  { %v595_v0 = vld [vmem:[%s788_s1 + $0x78] sm:$0xff]   ;;  %v599_v4 = vld [vmem:[%s788_s1 + $0x70] sm:$0xff]   ;;  %v603_v8 = vld [vmem:[%s788_s1 + $0x68] sm:$0xff]  }
   0x2   :  { %v596_v1 = vld [vmem:[%s788_s1 + $0xf8] sm:$0xff]   ;;  %539 = vmatprep.subr.bf16.mxu0 %v595_v0  ;;  %v600_v5 = vld [vmem:[%s788_s1 + $0xf0] sm:$0xff]   ;;  %v604_v9 = vld [vmem:[%s788_s1 + $0xe8] sm:$0xff]  }
   0x3   :  { %v597_v2 = vld [vmem:[%s788_s1 + $0x38] sm:$0xff]   ;;  %567 = vmatprep.subr.bf16.mxu1 %v596_v1  ;;  %v601_v6 = vld [vmem:[%s788_s1 + $0x30] sm:$0xff]   ;;  %v605_v10 = vld [vmem:[%s788_s1 + $0x28] sm:$0xff]  }
   0x4   :  { %v598_v3 = vld [vmem:[%s788_s1 + $0xb8] sm:$0xff]   ;;  %540 = vmatpush3.bf16.msra.mxu0 %v597_v2  ;;  %v602_v7 = vld [vmem:[%s788_s1 + $0xb0] sm:$0xff]   ;;  %v606_v11 = vld [vmem:[%s788_s1 + $0xa8] sm:$0xff]  }
   0x5   :  { %568 = vmatpush3.bf16.msra.mxu1 %v598_v3  ;;  %541 = vmatprep.subr.bf16.mxu0 %v599_v4  ;;  %v607_v12 = vld [vmem:[%s788_s1 + $0x60] sm:$0xff]   ;;  %v611_v16 = vld [vmem:[%s788_s1 + $0x58] sm:$0xff]   ;;  %v615_v20 = vld [vmem:[%s788_s1 + $0x50] sm:$0xff]  }
   0x6   :  { %569 = vmatprep.subr.bf16.mxu1 %v600_v5  ;;  %v608_v13 = vld [vmem:[%s788_s1 + $0xe0] sm:$0xff]   ;;  %v612_v17 = vld [vmem:[%s788_s1 + $0xd8] sm:$0xff]   ;;  %v616_v21 = vld [vmem:[%s788_s1 + $0xd0] sm:$0xff]  }
   0x7   :  { %v609_v14 = vld [vmem:[%s788_s1 + $0x20] sm:$0xff]   ;;  %v613_v18 = vld [vmem:[%s788_s1 + $0x18] sm:$0xff]   ;;  %v617_v22 = vld [vmem:[%s788_s1 + $0x10] sm:$0xff]  }
   0x8   :  { %542 = vmatpush3.bf16.msra.mxu0 %v601_v6  ;;  %v610_v15 = vld [vmem:[%s788_s1 + $0xa0] sm:$0xff]   ;;  %v614_v19 = vld [vmem:[%s788_s1 + $0x98] sm:$0xff]   ;;  %v618_v23 = vld [vmem:[%s788_s1 + $0x90] sm:$0xff]  }
   0x9   :  { %570 = vmatpush3.bf16.msra.mxu1 %v602_v7  ;;  %543 = vmatprep.subr.bf16.mxu0 %v603_v8  ;;  %v619_v24 = vld [vmem:[%s788_s1 + $0x48] sm:$0xff]   ;;  %v623_v28 = vld [vmem:[%s788_s1 + $0x40] sm:$0xff]  }
   0xa   :  { %571 = vmatprep.subr.bf16.mxu1 %v604_v9  ;;  %v620_v25 = vld [vmem:[%s788_s1 + $0xc8] sm:$0xff]   ;;  %v624_v29 = vld [vmem:[%s788_s1 + $0xc0] sm:$0xff]  }
   0xb   :  { %v621_v26 = vld [vmem:[%s788_s1 + $0x8] sm:$0xff]   ;;  %v625_v30 = vld [vmem:[%s788_s1] sm:$0xff]  }
   0xc   :  { %544 = vmatpush3.bf16.msra.mxu0 %v605_v10  ;;  %v622_v27 = vld [vmem:[%s788_s1 + $0x88] sm:$0xff]   ;;  %v626_v31 = vld [vmem:[%s788_s1 + $0x80] sm:$0xff]  }
   0xd   :  { %572 = vmatpush3.bf16.msra.mxu1 %v606_v11  ;;  %545 = vmatprep.subr.bf16.mxu0 %v607_v12  ;;  %v627_v32 = vld [vmem:[%s789_s0] ss:$16 sps:$4 sm:$0xff]   ;;  %v629_v33 = vld [vmem:[%s789_s0 + $0x4] ss:$16 sps:$4 sm:$0xff]   ;;  %v630_v34 = vld [vmem:[%s789_s0 + $0x8] ss:$16 sps:$4 sm:$0xff]  }
   0xe   :  { %573 = vmatprep.subr.bf16.mxu1 %v608_v13  ;;  %v632_v35 = vld [vmem:[%s789_s0 + $0xc] ss:$16 sps:$4 sm:$0xff]   ;;  %363 = vmatprep.mubr.bf16.mxu0 %v629_v33  ;;  %v633_v36 = vld [vmem:[%s789_s0 + $0x24] ss:$16 sps:$4 sm:$0xff]   ;;  %v637_v38 = vld [vmem:[%s789_s0 + $0x20] ss:$16 sps:$4 sm:$0xff]  }
   0xf   :  { %412 = vmatprep.mubr.bf16.mxu1 %v632_v35  ;;  %v635_v37 = vld [vmem:[%s789_s0 + $0x2c] ss:$16 sps:$4 sm:$0xff]   ;;  %v638_v39 = vld [vmem:[%s789_s0 + $0x28] ss:$16 sps:$4 sm:$0xff]   ;;  %v519_v54 = vld [vmem:[%s790_s2] ss:$0 sm:$0xff] }
  0x10   :  { %546 = vmatpush3.bf16.msra.mxu0 %v609_v14 }
  0x11   :  { %574 = vmatpush3.bf16.msra.mxu1 %v610_v15  ;;  %547 = vmatprep.subr.bf16.mxu0 %v611_v16 }
  0x12   :  { %575 = vmatprep.subr.bf16.mxu1 %v612_v17 }
  0x14   :  { %548 = vmatpush3.bf16.msra.mxu0 %v613_v18 }
  0x15   :  { %576 = vmatpush3.bf16.msra.mxu1 %v614_v19  ;;  %549 = vmatprep.subr.bf16.mxu0 %v615_v20 }
  0x16   :  { %577 = vmatprep.subr.bf16.mxu1 %v616_v21 }
  0x18   :  { %550 = vmatpush3.bf16.msra.mxu0 %v617_v22 }
  0x19   :  { %578 = vmatpush3.bf16.msra.mxu1 %v618_v23  ;;  %551 = vmatprep.subr.bf16.mxu0 %v619_v24 }
  0x1a   :  { %579 = vmatprep.subr.bf16.mxu1 %v620_v25 }
  0x1c   :  { %552 = vmatpush3.bf16.msra.mxu0 %v621_v26 }
  0x1d   :  { %580 = vmatpush3.bf16.msra.mxu1 %v622_v27  ;;  %553 = vmatprep.subr.bf16.mxu0 %v623_v28 }
  0x1e   :  { %581 = vmatprep.subr.bf16.mxu1 %v624_v29 }
  0x20   :  { %554 = vmatpush3.bf16.msra.mxu0 %v625_v30 }
  0x21   :  { %582 = vmatpush3.bf16.msra.mxu1 %v626_v31 }
  0x23   :  { %364 = vmatmul.mubr.bf16.vlgmr.msra.gmra.mxu0 %v627_v32 }
  0x24   :  { %413 = vmatmul.mubr.bf16.vlgmr.msra.gmra.mxu1 %v630_v34  ;;  %371 = vmatprep.mubr.bf16.mxu0 %v633_v36 }
  0x25   :  { %420 = vmatprep.mubr.bf16.mxu1 %v635_v37 }
  0x2b   :  { %372 = vmatmul.mubr.bf16.gmra.mxu0 %v637_v38 }
  0x2c   :  { %421 = vmatmul.mubr.bf16.gmra.mxu1 %v638_v39 }
  0xe3   :  { %v555_v40 = vpop.f32.mrf.mxu0 }
  0xe4   :  { %v583_v41 = vpop.f32.mrf.mxu1 }
  0xe5   :  { %v556_v42 = vpop.f32.mrf.mxu0 }
  0xe6   :  { %v584_v43 = vpop.f32.mrf.mxu1  ;;  %v557_v44 = vadd.f32 %v556_v42, %v555_v40 }
  0xe7   :  { %v585_v45 = vadd.f32 %v584_v43, %v583_v41  ;;  %v558_v46 = vpop.f32.mrf.mxu0 }
  0xe8   :  { %v586_v47 = vpop.f32.mrf.mxu1 }
  0xe9   :  { %v559_v48 = vpop.f32.mrf.mxu0  ;;  %v415_v51 = vadd.f32 %v585_v45, %v557_v44 }
  0xea   :  { %v560_v49 = vadd.f32 %v559_v48, %v558_v46  ;;  %v587_v50 = vpop.f32.mrf.mxu1 }
  0xeb   :  { %v588_v52 = vadd.f32 %v587_v50, %v586_v47  ;;  %v561_v53 = vpop.f32.mrf.mxu0  ;;  %v451_v59 = vadd.f32 %v519_v54, %v415_v51 }
  0xec   :  { %v589_v55 = vpop.f32.mrf.mxu1 }
  0xed   :  { %v418_v56 = vadd.f32 %v588_v52, %v560_v49  ;;  %v562_v57 = vpop.f32.mrf.mxu0 }
  0xee   :  { %v590_v58 = vpop.f32.mrf.mxu1  ;;  %v563_v61 = vadd.f32 %v562_v57, %v561_v53 }
  0xef   :  { %v452_v60 = vadd.f32 %v519_v54, %v418_v56  ;;  %v591_v62 = vadd.f32 %v590_v58, %v589_v55  ;;  %v564_v63 = vpop.f32.mrf.mxu0 }
  0xf0   :  { %v592_v0 = vpop.f32.mrf.mxu1 }
  0xf1   :  { %v531_v1 = vpack.c.bf16 %v452_v60, %v451_v59  ;;  %v565_v2 = vpop.f32.mrf.mxu0  ;;  %v423_v5 = vadd.f32 %v591_v62, %v563_v61 }
  0xf2   :  { %v566_v3 = vadd.f32 %v565_v2, %v564_v63  ;;  %v593_v4 = vpop.f32.mrf.mxu1 }
  0xf3   :  { %532 = vst [vmem:[%s791_s3] sm:$0xff] %v531_v1   ;;  %v594_v6 = vadd.f32 %v593_v4, %v592_v0  ;;  %v453_v8 = vadd.f32 %v519_v54, %v423_v5 }
  0xf5   :  { %v426_v7 = vadd.f32 %v594_v6, %v566_v3 }
  0xf7   :  { %v454_v9 = vadd.f32 %v519_v54, %v426_v7 }
  0xf9   :  { %v536_v10 = vpack.c.bf16 %v454_v9, %v453_v8 }
  0xfb   :  { %538 = vst [vmem:[%s791_s3 + $0x8] sm:$0xff] %v536_v10  }

// kernel: bert_language_model.23
= control target key start
LH: loop header
LB: loop body
LE: loop exit
PB: predicated region body
PF: predicated region fallthrough
CT: control target
= control target key end

     0   :  { %v727_v1 = vmov 0   ;;  %v418_v35 = vlaneseq  ;;  %s941_s1 = inlined_call_operand.vmem [shape: bf16[128,512], index: 1, kind: input, shape index: {}]   ;;  %s942_s0 = inlined_call_operand.vmem [shape: bf16[32,128], index: 0, kind: input, shape index: {}]   ;;  %s943_s2 = inlined_call_operand.vmem [shape: f32[1,512], index: 2, kind: input, shape index: {}]   ;;  %s944_s3 = inlined_call_operand.vmem [shape: bf16[32,512], index: 3, kind: output, shape index: {}]  }
   0x1   :  { %v645_v0 = vld [vmem:[%s941_s1 + $0xe4] ss:$16 sps:$4 sm:$0xff]   ;;  %291 = vmatprep.mubr.bf16.mxu0 %v727_v1  ;;  %344 = vmatprep.mubr.bf16.mxu1 %v727_v1  ;;  %v647_v2 = vld [vmem:[%s941_s1 + $0xec] ss:$16 sps:$4 sm:$0xff]   ;;  %v649_v3 = vld [vmem:[%s941_s1 + $0xe0] ss:$16 sps:$4 sm:$0xff]  }
   0x2   :  { %259 = vmatprep.subr.bf16.mxu0 %v645_v0  ;;  %v650_v4 = vld [vmem:[%s941_s1 + $0xe8] ss:$16 sps:$4 sm:$0xff]   ;;  %312 = vmatprep.subr.bf16.mxu1 %v647_v2  ;;  %v651_v5 = vld [vmem:[%s941_s1 + $0xc4] ss:$16 sps:$4 sm:$0xff]   ;;  %v653_v6 = vld [vmem:[%s941_s1 + $0xcc] ss:$16 sps:$4 sm:$0xff]  }
   0x3   :  { %260 = vmatpush1.bf16.msra.mxu0 %v649_v3  ;;  %313 = vmatpush1.bf16.msra.mxu1 %v650_v4  ;;  %v655_v7 = vld [vmem:[%s941_s1 + $0xc0] ss:$16 sps:$4 sm:$0xff]   ;;  %v656_v8 = vld [vmem:[%s941_s1 + $0xc8] ss:$16 sps:$4 sm:$0xff]   ;;  %v657_v9 = vld [vmem:[%s941_s1 + $0xa4] ss:$16 sps:$4 sm:$0xff]  }
   0x4   :  { %261 = vmatprep.subr.bf16.mxu0 %v651_v5  ;;  %314 = vmatprep.subr.bf16.mxu1 %v653_v6  ;;  %v659_v10 = vld [vmem:[%s941_s1 + $0xac] ss:$16 sps:$4 sm:$0xff]   ;;  %v661_v11 = vld [vmem:[%s941_s1 + $0xa0] ss:$16 sps:$4 sm:$0xff]   ;;  %v662_v12 = vld [vmem:[%s941_s1 + $0xa8] ss:$16 sps:$4 sm:$0xff]  }
   0x5   :  { %v663_v13 = vld [vmem:[%s941_s1 + $0x84] ss:$16 sps:$4 sm:$0xff]   ;;  %v665_v14 = vld [vmem:[%s941_s1 + $0x8c] ss:$16 sps:$4 sm:$0xff]   ;;  %v667_v15 = vld [vmem:[%s941_s1 + $0x80] ss:$16 sps:$4 sm:$0xff]  }
   0x6   :  { %v668_v16 = vld [vmem:[%s941_s1 + $0x88] ss:$16 sps:$4 sm:$0xff]   ;;  %v669_v17 = vld [vmem:[%s941_s1 + $0x64] ss:$16 sps:$4 sm:$0xff]   ;;  %v671_v18 = vld [vmem:[%s941_s1 + $0x6c] ss:$16 sps:$4 sm:$0xff]  }
   0x7   :  { %262 = vmatpush1.bf16.msra.mxu0 %v655_v7  ;;  %315 = vmatpush1.bf16.msra.mxu1 %v656_v8  ;;  %v673_v19 = vld [vmem:[%s941_s1 + $0x60] ss:$16 sps:$4 sm:$0xff]   ;;  %v674_v20 = vld [vmem:[%s941_s1 + $0x68] ss:$16 sps:$4 sm:$0xff]   ;;  %v675_v21 = vld [vmem:[%s941_s1 + $0x44] ss:$16 sps:$4 sm:$0xff]  }
   0x8   :  { %263 = vmatprep.subr.bf16.mxu0 %v657_v9  ;;  %316 = vmatprep.subr.bf16.mxu1 %v659_v10  ;;  %v677_v22 = vld [vmem:[%s941_s1 + $0x4c] ss:$16 sps:$4 sm:$0xff]   ;;  %v679_v23 = vld [vmem:[%s941_s1 + $0x40] ss:$16 sps:$4 sm:$0xff]   ;;  %v680_v24 = vld [vmem:[%s941_s1 + $0x48] ss:$16 sps:$4 sm:$0xff]  }
   0x9   :  { %v681_v25 = vld [vmem:[%s941_s1 + $0x24] ss:$16 sps:$4 sm:$0xff]   ;;  %v683_v26 = vld [vmem:[%s941_s1 + $0x2c] ss:$16 sps:$4 sm:$0xff]   ;;  %v685_v27 = vld [vmem:[%s941_s1 + $0x20] ss:$16 sps:$4 sm:$0xff]  }
   0xa   :  { %v686_v28 = vld [vmem:[%s941_s1 + $0x28] ss:$16 sps:$4 sm:$0xff]   ;;  %v687_v29 = vld [vmem:[%s941_s1 + $0x4] ss:$16 sps:$4 sm:$0xff]   ;;  %v689_v30 = vld [vmem:[%s941_s1 + $0xc] ss:$16 sps:$4 sm:$0xff]  }
   0xb   :  { %264 = vmatpush1.bf16.msra.mxu0 %v661_v11  ;;  %317 = vmatpush1.bf16.msra.mxu1 %v662_v12  ;;  %v691_v31 = vld [vmem:[%s941_s1] ss:$16 sps:$4 sm:$0xff]   ;;  %v692_v32 = vld [vmem:[%s941_s1 + $0x8] ss:$16 sps:$4 sm:$0xff]   ;;  %v419_v36 = vshrl.u32 %v418_v35, 7 }
   0xc   :  { %265 = vmatprep.subr.bf16.mxu0 %v663_v13  ;;  %318 = vmatprep.subr.bf16.mxu1 %v665_v14  ;;  %v693_v33 = vld [vmem:[%s942_s0] sm:$0xff]   ;;  %v694_v34 = vld [vmem:[%s942_s0 + $0x8] sm:$0xff]  }
   0xd   :  { %v420_v37 = vsub.s32 0, %v419_v36  ;;  %v428_v38 = vsub.s32 2, %v419_v36  ;;  %v416_v39 = vld [vmem:[%s943_s2] sm:$0xf]  ;;  %v424_v40 = vsub.s32 1, %v419_v36  ;;  %v432_v41 = vsub.s32 3, %v419_v36 }
   0xf   :  { %266 = vmatpush1.bf16.msra.mxu0 %v667_v15  ;;  %319 = vmatpush1.bf16.msra.mxu1 %v668_v16  ;;  %v421_v42 = vrot.slane %v416_v39, %v420_v37  ;;  %v429_v43 = vrot.slane %v416_v39, %v428_v38  ;;  %v425_v46 = vrot.slane %v416_v39, %v424_v40 }
  0x10   :  { %267 = vmatprep.subr.bf16.mxu0 %v669_v17  ;;  %320 = vmatprep.subr.bf16.mxu1 %v671_v18  ;;  %v433_v47 = vrot.slane %v416_v39, %v432_v41 }
  0x13   :  { %268 = vmatpush1.bf16.msra.mxu0 %v673_v19  ;;  %321 = vmatpush1.bf16.msra.mxu1 %v674_v20 }
  0x14   :  { %269 = vmatprep.subr.bf16.mxu0 %v675_v21  ;;  %322 = vmatprep.subr.bf16.mxu1 %v677_v22 }
  0x17   :  { %270 = vmatpush1.bf16.msra.mxu0 %v679_v23  ;;  %323 = vmatpush1.bf16.msra.mxu1 %v680_v24 }
  0x18   :  { %271 = vmatprep.subr.bf16.mxu0 %v681_v25  ;;  %324 = vmatprep.subr.bf16.mxu1 %v683_v26 }
  0x1b   :  { %272 = vmatpush1.bf16.msra.mxu0 %v685_v27  ;;  %325 = vmatpush1.bf16.msra.mxu1 %v686_v28 }
  0x1c   :  { %273 = vmatprep.subr.bf16.mxu0 %v687_v29  ;;  %326 = vmatprep.subr.bf16.mxu1 %v689_v30 }
  0x1f   :  { %274 = vmatpush1.bf16.msra.mxu0 %v691_v31  ;;  %327 = vmatpush1.bf16.msra.mxu1 %v692_v32 }
  0x22   :  { %292 = vmatmul.mubr.bf16.vlgmr.msra.gmra.mxu0 %v693_v33  ;;  %345 = vmatmul.mubr.bf16.vlgmr.msra.gmra.mxu1 %v693_v33 }
  0x23   :  { %301 = vmatprep.mubr.bf16.mxu0 %v727_v1  ;;  %354 = vmatprep.mubr.bf16.mxu1 %v727_v1 }
  0x2a   :  { %302 = vmatmul.mubr.bf16.gmra.mxu0 %v694_v34  ;;  %355 = vmatmul.mubr.bf16.gmra.mxu1 %v694_v34 }
  0xe2   :  { %v293_v44 = vpop.f32.mrf.mxu0  ;;  %v346_v45 = vpop.f32.mrf.mxu1 }
  0xe3   :  { %v857_v48 = vadd.f32 %v421_v42, %v293_v44  ;;  %v859_v49 = vadd.f32 %v429_v43, %v346_v45 }
  0xe4   :  { %v295_v50 = vpop.f32.mrf.mxu0  ;;  %v348_v51 = vpop.f32.mrf.mxu1 }
  0xe5   :  { %v470_v52 = vmul.f32 0.70710677, %v857_v48  ;;  %v472_v53 = vmul.f32 0.70710677, %v859_v49  ;;  %v439_v54 = vadd.f32 %v425_v46, %v295_v50  ;;  %v863_v55 = vadd.f32 %v433_v47, %v348_v51 }
  0xe6   :  { %v297_v56 = vpop.f32.mrf.mxu0  ;;  %v350_v57 = vpop.f32.mrf.mxu1  ;;  %v454_v36 = vmul.f32 0.5, %v857_v48  ;;  %v456_v40 = vmul.f32 0.5, %v859_v49 }
  0xe7   :  { %695 = verf.f32 %v470_v52  ;;  %v865_v58 = vadd.f32 %v421_v42, %v297_v56  ;;  %v867_v59 = vadd.f32 %v429_v43, %v350_v57  ;;  %v471_v60 = vmul.f32 0.70710677, %v439_v54 }
  0xe8   :  { %697 = verf.f32 %v472_v53  ;;  %v299_v61 = vpop.f32.mrf.mxu0  ;;  %v352_v62 = vpop.f32.mrf.mxu1  ;;  %v473_v63 = vmul.f32 0.70710677, %v863_v55  ;;  %v455_v37 = vmul.f32 0.5, %v439_v54  ;;  %v457_v41 = vmul.f32 0.5, %v863_v55 }
  0xe9   :  { %v474_v0 = vmul.f32 0.70710677, %v865_v58  ;;  %699 = verf.f32 %v471_v60  ;;  %v476_v1 = vmul.f32 0.70710677, %v867_v59  ;;  %v872_v2 = vadd.f32 %v425_v46, %v299_v61 }
  0xea   :  { %v874_v3 = vadd.f32 %v433_v47, %v352_v62  ;;  %v303_v4 = vpop.f32.mrf.mxu0  ;;  %v356_v5 = vpop.f32.mrf.mxu1  ;;  %701 = verf.f32 %v473_v63  ;;  %v458_v48 = vmul.f32 0.5, %v865_v58  ;;  %v460_v55 = vmul.f32 0.5, %v867_v59 }
  0xeb   :  { %v876_v6 = vadd.f32 %v421_v42, %v303_v4  ;;  %v878_v7 = vadd.f32 %v429_v43, %v356_v5  ;;  %703 = verf.f32 %v474_v0  ;;  %v475_v8 = vmul.f32 0.70710677, %v872_v2 }
  0xec   :  { %v305_v9 = vpop.f32.mrf.mxu0  ;;  %v358_v10 = vpop.f32.mrf.mxu1  ;;  %705 = verf.f32 %v476_v1  ;;  %v477_v11 = vmul.f32 0.70710677, %v874_v3  ;;  %v459_v54 = vmul.f32 0.5, %v872_v2  ;;  %v461_v61 = vmul.f32 0.5, %v874_v3 }
  0xed   :  { %v478_v12 = vmul.f32 0.70710677, %v876_v6  ;;  %707 = verf.f32 %v475_v8  ;;  %v480_v13 = vmul.f32 0.70710677, %v878_v7  ;;  %v884_v14 = vadd.f32 %v425_v46, %v305_v9 }
  0xee   :  { %v307_v15 = vpop.f32.mrf.mxu0  ;;  %v360_v16 = vpop.f32.mrf.mxu1  ;;  %709 = verf.f32 %v477_v11  ;;  %v886_v17 = vadd.f32 %v433_v47, %v358_v10  ;;  %v462_v3 = vmul.f32 0.5, %v876_v6 }
  0xef   :  { %v888_v18 = vadd.f32 %v421_v42, %v307_v15  ;;  %v890_v19 = vadd.f32 %v429_v43, %v360_v16  ;;  %711 = verf.f32 %v478_v12  ;;  %v479_v20 = vmul.f32 0.70710677, %v884_v14 }
  0xf0   :  { %v309_v21 = vpop.f32.mrf.mxu0  ;;  %v362_v22 = vpop.f32.mrf.mxu1  ;;  %713 = verf.f32 %v480_v13  ;;  %v481_v23 = vmul.f32 0.70710677, %v886_v17  ;;  %v463_v10 = vmul.f32 0.5, %v884_v14  ;;  %v464_v15 = vmul.f32 0.5, %v878_v7 }
  0xf1   :  { %715 = verf.f32 %v479_v20  ;;  %v482_v24 = vmul.f32 0.70710677, %v888_v18  ;;  %v484_v25 = vmul.f32 0.70710677, %v890_v19  ;;  %v896_v26 = vadd.f32 %v425_v46, %v309_v21 }
  0xf2   :  { %717 = verf.f32 %v481_v23  ;;  %v898_v27 = vadd.f32 %v433_v47, %v362_v22  ;;  %v465_v16 = vmul.f32 0.5, %v886_v17 }
  0xf3   :  { %719 = verf.f32 %v482_v24  ;;  %v483_v30 = vmul.f32 0.70710677, %v896_v26 }
  0xf4   :  { %v696_v28 = vpop.eup %695  ;;  %721 = verf.f32 %v484_v25  ;;  %v485_v32 = vmul.f32 0.70710677, %v898_v27 }
  0xf5   :  { %v698_v29 = vpop.eup %697  ;;  %v502_v31 = vadd.f32 1.0, %v696_v28  ;;  %723 = verf.f32 %v483_v30  ;;  %v466_v30 = vmul.f32 0.5, %v888_v18 }
  0xf6   :  { %v700_v33 = vpop.eup %699  ;;  %v504_v34 = vadd.f32 1.0, %v698_v29  ;;  %725 = verf.f32 %v485_v32 }
  0xf7   :  { %v702_v35 = vpop.eup %701  ;;  %v503_v38 = vadd.f32 1.0, %v700_v33  ;;  %v518_v44 = vmul.f32 %v502_v31, %v454_v36  ;;  %v467_v31 = vmul.f32 0.5, %v896_v26  ;;  %v468_v33 = vmul.f32 0.5, %v890_v19 }
  0xf8   :  { %v704_v39 = vpop.eup %703  ;;  %v505_v42 = vadd.f32 1.0, %v702_v35  ;;  %v520_v50 = vmul.f32 %v504_v34, %v456_v40  ;;  %v469_v34 = vmul.f32 0.5, %v898_v27 }
  0xf9   :  { %v706_v43 = vpop.eup %705  ;;  %v519_v45 = vmul.f32 %v503_v38, %v455_v37  ;;  %v506_v46 = vadd.f32 1.0, %v704_v39 }
  0xfa   :  { %v708_v47 = vpop.eup %707  ;;  %v521_v51 = vmul.f32 %v505_v42, %v457_v41  ;;  %v508_v52 = vadd.f32 1.0, %v706_v43 }
  0xfb   :  { %v710_v53 = vpop.eup %709  ;;  %v636_v56 = vpack.c.bf16 %v519_v45, %v518_v44  ;;  %v507_v57 = vadd.f32 1.0, %v708_v47  ;;  %v522_v0 = vmul.f32 %v506_v46, %v458_v48 }
  0xfc   :  { %v712_v60 = vpop.eup %711  ;;  %v637_v49 = vpack.c.bf16 %v521_v51, %v520_v50  ;;  %v509_v62 = vadd.f32 1.0, %v710_v53  ;;  %v524_v58 = vmul.f32 %v508_v52, %v460_v55 }
  0xfd   :  { %v714_v63 = vpop.eup %713  ;;  %582 = vst [vmem:[%s944_s3] sm:$0xff] %v636_v56  ;;  %v523_v1 = vmul.f32 %v507_v57, %v459_v54  ;;  %v510_v4 = vadd.f32 1.0, %v712_v60 }
  0xfe   :  { %v716_v5 = vpop.eup %715  ;;  %583 = vst [vmem:[%s944_s3 + $0x8] sm:$0xff] %v637_v49  ;;  %v525_v2 = vmul.f32 %v509_v62, %v461_v61  ;;  %v512_v8 = vadd.f32 1.0, %v714_v63 }
  0xff   :  { %v718_v59 = vpop.eup %717  ;;  %v638_v9 = vpack.c.bf16 %v523_v1, %v522_v0  ;;  %v511_v11 = vadd.f32 1.0, %v716_v5  ;;  %v526_v22 = vmul.f32 %v510_v4, %v462_v3 }
 0x100   :  { %v720_v12 = vpop.eup %719  ;;  %v639_v13 = vpack.c.bf16 %v525_v2, %v524_v58  ;;  %v513_v20 = vadd.f32 1.0, %v718_v59  ;;  %v528_v6 = vmul.f32 %v512_v8, %v464_v15 }
 0x101   :  { %v722_v21 = vpop.eup %721  ;;  %584 = vst [vmem:[%s944_s3 + $0x10] sm:$0xff] %v638_v9  ;;  %v527_v23 = vmul.f32 %v511_v11, %v463_v10  ;;  %v514_v24 = vadd.f32 1.0, %v720_v12 }
 0x102   :  { %585 = vst [vmem:[%s944_s3 + $0x18] sm:$0xff] %v639_v13  ;;  %v529_v14 = vmul.f32 %v513_v20, %v465_v16  ;;  %v724_v25 = vpop.eup %723  ;;  %v516_v7 = vadd.f32 1.0, %v722_v21 }
 0x103   :  { %v640_v28 = vpack.c.bf16 %v527_v23, %v526_v22  ;;  %v726_v29 = vpop.eup %725  ;;  %v515_v32 = vadd.f32 1.0, %v724_v25  ;;  %v530_v36 = vmul.f32 %v514_v24, %v466_v30 }
 0x104   :  { %v641_v17 = vpack.c.bf16 %v529_v14, %v528_v6  ;;  %v517_v35 = vadd.f32 1.0, %v726_v29  ;;  %v532_v38 = vmul.f32 %v516_v7, %v468_v33 }
 0x105   :  { %586 = vst [vmem:[%s944_s3 + $0x20] sm:$0xff] %v640_v28  ;;  %v531_v37 = vmul.f32 %v515_v32, %v467_v31 }
 0x106   :  { %587 = vst [vmem:[%s944_s3 + $0x28] sm:$0xff] %v641_v17  ;;  %v533_v18 = vmul.f32 %v517_v35, %v469_v34 }
 0x107   :  { %v642_v39 = vpack.c.bf16 %v531_v37, %v530_v36 }
 0x108   :  { %v643_v26 = vpack.c.bf16 %v533_v18, %v532_v38 }
 0x109   :  { %588 = vst [vmem:[%s944_s3 + $0x30] sm:$0xff] %v642_v39 }
 0x10a   :  { %589 = vst [vmem:[%s944_s3 + $0x38] sm:$0xff] %v643_v26 }

// kernel: bert_language_model.34
= control target key start
LH: loop header
LB: loop body
LE: loop exit
PB: predicated region body
PF: predicated region fallthrough
CT: control target
= control target key end

     0   :  { %s189_s0 = inlined_call_operand.vmem [shape: bf16[32,128], index: 0, kind: input, shape index: {}]   ;;  %s190_s1 = inlined_call_operand.vmem [shape: f32[1,128], index: 1, kind: input, shape index: {}]   ;;  %s191_s2 = inlined_call_operand.vmem [shape: f32[1,128], index: 2, kind: input, shape index: {}]   ;;  %s192_s3 = inlined_call_operand.vmem [shape: bf16[32,128], index: 3, kind: output, shape index: {}]  }
   0x1   :  { %v124_v0 = vld [vmem:[%s189_s0] sm:$0xff]   ;;  %v141_v1 = vld [vmem:[%s189_s0 + $0x8] sm:$0xff]  }
   0x2   :  { %v125_v2 = vunpack.c.l.bf16 %v124_v0  ;;  %v129_v3 = vunpack.c.l.bf16 %v141_v1  ;;  %v126_v4 = vunpack.c.h.bf16 %v124_v0  ;;  %v130_v5 = vunpack.c.h.bf16 %v141_v1  ;;  %v113_v36 = vld [vmem:[%s190_s1] ss:$0 sm:$0xff] }
   0x3   :  { %v114_v41 = vld [vmem:[%s191_s2] ss:$0 sm:$0xff] }
   0x4   :  { %22 = vadd.xlane.f32.xlu0 %v125_v2  ;;  %26 = vadd.xlane.f32.xlu1 %v129_v3 }
   0x8   :  { %24 = vadd.xlane.f32.xlu0 %v126_v4  ;;  %28 = vadd.xlane.f32.xlu1 %v130_v5 }
  0x8d   :  { %v23_v6 = vpop.xlane.xlu0 %22  ;;  %v27_v7 = vpop.xlane.xlu1 %26 }
  0x8e   :  { %v31_v8 = vmul.f32 0.0078125, %v23_v6  ;;  %v33_v9 = vmul.f32 0.0078125, %v27_v7 }
  0x90   :  { %v35_v10 = vsub.f32 %v125_v2, %v31_v8  ;;  %v37_v11 = vsub.f32 %v129_v3, %v33_v9 }
  0x91   :  { %v25_v12 = vpop.xlane.xlu0 %24  ;;  %v29_v13 = vpop.xlane.xlu1 %28 }
  0x92   :  { %v32_v14 = vmul.f32 0.0078125, %v25_v12  ;;  %v39_v15 = vmul.f32 %v35_v10, %v35_v10  ;;  %v34_v16 = vmul.f32 0.0078125, %v29_v13  ;;  %v41_v19 = vmul.f32 %v37_v11, %v37_v11 }
  0x94   :  { %v36_v17 = vsub.f32 %v126_v4, %v32_v14  ;;  %43 = vadd.xlane.f32.xlu0 %v39_v15  ;;  %v38_v18 = vsub.f32 %v130_v5, %v34_v16 }
  0x96   :  { %v40_v20 = vmul.f32 %v36_v17, %v36_v17  ;;  %v42_v21 = vmul.f32 %v38_v18, %v38_v18 }
  0x98   :  { %47 = vadd.xlane.f32.xlu0 %v41_v19  ;;  %45 = vadd.xlane.f32.xlu1 %v40_v20 }
  0x9c   :  { %49 = vadd.xlane.f32.xlu1 %v42_v21 }
 0x11d   :  { %v44_v22 = vpop.xlane.xlu0 %43 }
 0x11e   :  { %v51_v23 = vmul.f32 0.0078125, %v44_v22 }
 0x120   :  { %v55_v24 = vadd.f32 1e-12, %v51_v23 }
 0x121   :  { %v46_v25 = vpop.xlane.xlu1 %45  ;;  %v48_v26 = vpop.xlane.xlu0 %47 }
 0x122   :  { %143 = vrsqrt.f32 %v55_v24  ;;  %v52_v27 = vmul.f32 0.0078125, %v46_v25  ;;  %v53_v28 = vmul.f32 0.0078125, %v48_v26 }
 0x124   :  { %v56_v29 = vadd.f32 1e-12, %v52_v27  ;;  %v57_v30 = vadd.f32 1e-12, %v53_v28 }
 0x125   :  { %v50_v31 = vpop.xlane.xlu1 %49 }
 0x126   :  { %145 = vrsqrt.f32 %v56_v29  ;;  %v54_v32 = vmul.f32 0.0078125, %v50_v31 }
 0x127   :  { %147 = vrsqrt.f32 %v57_v30 }
 0x128   :  { %v58_v33 = vadd.f32 1e-12, %v54_v32 }
 0x12a   :  { %149 = vrsqrt.f32 %v58_v33 }
 0x12f   :  { %v144_v34 = vpop.eup %143 }
 0x130   :  { %v63_v35 = vmul.f32 %v144_v34, %v35_v10 }
 0x132   :  { %v74_v39 = vmul.f32 %v113_v36, %v63_v35 }
 0x133   :  { %v146_v37 = vpop.eup %145 }
 0x134   :  { %v148_v38 = vpop.eup %147  ;;  %v64_v40 = vmul.f32 %v146_v37, %v36_v17  ;;  %v85_v45 = vadd.f32 %v114_v41, %v74_v39 }
 0x135   :  { %v65_v42 = vmul.f32 %v148_v38, %v37_v11 }
 0x136   :  { %v75_v43 = vmul.f32 %v113_v36, %v64_v40 }
 0x137   :  { %v150_v44 = vpop.eup %149  ;;  %v76_v47 = vmul.f32 %v113_v36, %v65_v42 }
 0x138   :  { %v86_v46 = vadd.f32 %v114_v41, %v75_v43  ;;  %v66_v48 = vmul.f32 %v150_v44, %v38_v18 }
 0x139   :  { %v87_v51 = vadd.f32 %v114_v41, %v76_v47 }
 0x13a   :  { %v134_v49 = vpack.c.bf16 %v86_v46, %v85_v45  ;;  %v77_v50 = vmul.f32 %v113_v36, %v66_v48 }
 0x13c   :  { %135 = vst [vmem:[%s192_s3] sm:$0xff] %v134_v49   ;;  %v88_v52 = vadd.f32 %v114_v41, %v77_v50 }
 0x13e   :  { %v139_v53 = vpack.c.bf16 %v88_v52, %v87_v51 }
 0x140   :  { %142 = vst [vmem:[%s192_s3 + $0x8] sm:$0xff] %v139_v53  }

// kernel: bert_language_model.35
= control target key start
LH: loop header
LB: loop body
LE: loop exit
PB: predicated region body
PF: predicated region fallthrough
CT: control target
= control target key end

     0   :  { %v597_v2 = vmov 0   ;;  %s733_s0 = inlined_call_operand.vmem [shape: bf16[32,128], index: 0, kind: input, shape index: {}]   ;;  %s734_s1 = inlined_call_operand.vmem [shape: bf16[128,512], index: 1, kind: input, shape index: {}]   ;;  %s735_s2 = inlined_call_operand.vmem [shape: f32[1,512], index: 2, kind: input, shape index: {}]   ;;  %s736_s3 = inlined_call_operand.hbm [shape: f32[32,512], index: 3, kind: output, shape index: {}]  }
   0x1   :  { %v525_v0 = vld [vmem:[%s734_s1 + $0xe4] ss:$16 sps:$4 sm:$0xff]   ;;  %v527_v1 = vld [vmem:[%s734_s1 + $0xec] ss:$16 sps:$4 sm:$0xff]   ;;  %292 = vmatprep.mubr.bf16.mxu0 %v597_v2  ;;  %345 = vmatprep.mubr.bf16.mxu1 %v597_v2  ;;  %v529_v3 = vld [vmem:[%s734_s1 + $0xe0] ss:$16 sps:$4 sm:$0xff]  }
   0x2   :  { %260 = vmatprep.subr.bf16.mxu0 %v525_v0  ;;  %v530_v4 = vld [vmem:[%s734_s1 + $0xe8] ss:$16 sps:$4 sm:$0xff]   ;;  %313 = vmatprep.subr.bf16.mxu1 %v527_v1  ;;  %v531_v5 = vld [vmem:[%s734_s1 + $0xc4] ss:$16 sps:$4 sm:$0xff]   ;;  %v533_v6 = vld [vmem:[%s734_s1 + $0xcc] ss:$16 sps:$4 sm:$0xff]  }
   0x3   :  { %261 = vmatpush1.bf16.msra.mxu0 %v529_v3  ;;  %314 = vmatpush1.bf16.msra.mxu1 %v530_v4  ;;  %v535_v7 = vld [vmem:[%s734_s1 + $0xc0] ss:$16 sps:$4 sm:$0xff]   ;;  %v536_v8 = vld [vmem:[%s734_s1 + $0xc8] ss:$16 sps:$4 sm:$0xff]   ;;  %v537_v9 = vld [vmem:[%s734_s1 + $0xa4] ss:$16 sps:$4 sm:$0xff]  }
   0x4   :  { %262 = vmatprep.subr.bf16.mxu0 %v531_v5  ;;  %315 = vmatprep.subr.bf16.mxu1 %v533_v6  ;;  %v539_v10 = vld [vmem:[%s734_s1 + $0xac] ss:$16 sps:$4 sm:$0xff]   ;;  %v541_v11 = vld [vmem:[%s734_s1 + $0xa0] ss:$16 sps:$4 sm:$0xff]   ;;  %v542_v12 = vld [vmem:[%s734_s1 + $0xa8] ss:$16 sps:$4 sm:$0xff]  }
   0x5   :  { %v543_v13 = vld [vmem:[%s734_s1 + $0x84] ss:$16 sps:$4 sm:$0xff]   ;;  %v545_v14 = vld [vmem:[%s734_s1 + $0x8c] ss:$16 sps:$4 sm:$0xff]   ;;  %v547_v15 = vld [vmem:[%s734_s1 + $0x80] ss:$16 sps:$4 sm:$0xff]  }
   0x6   :  { %v548_v16 = vld [vmem:[%s734_s1 + $0x88] ss:$16 sps:$4 sm:$0xff]   ;;  %v549_v17 = vld [vmem:[%s734_s1 + $0x64] ss:$16 sps:$4 sm:$0xff]   ;;  %v551_v18 = vld [vmem:[%s734_s1 + $0x6c] ss:$16 sps:$4 sm:$0xff]  }
   0x7   :  { %263 = vmatpush1.bf16.msra.mxu0 %v535_v7  ;;  %316 = vmatpush1.bf16.msra.mxu1 %v536_v8  ;;  %v553_v19 = vld [vmem:[%s734_s1 + $0x60] ss:$16 sps:$4 sm:$0xff]   ;;  %v554_v20 = vld [vmem:[%s734_s1 + $0x68] ss:$16 sps:$4 sm:$0xff]   ;;  %v555_v21 = vld [vmem:[%s734_s1 + $0x44] ss:$16 sps:$4 sm:$0xff]  }
   0x8   :  { %264 = vmatprep.subr.bf16.mxu0 %v537_v9  ;;  %317 = vmatprep.subr.bf16.mxu1 %v539_v10  ;;  %v557_v22 = vld [vmem:[%s734_s1 + $0x4c] ss:$16 sps:$4 sm:$0xff]   ;;  %v559_v23 = vld [vmem:[%s734_s1 + $0x40] ss:$16 sps:$4 sm:$0xff]   ;;  %v560_v24 = vld [vmem:[%s734_s1 + $0x48] ss:$16 sps:$4 sm:$0xff]  }
   0x9   :  { %v561_v25 = vld [vmem:[%s734_s1 + $0x24] ss:$16 sps:$4 sm:$0xff]   ;;  %v563_v26 = vld [vmem:[%s734_s1 + $0x2c] ss:$16 sps:$4 sm:$0xff]  }
   0xb   :  { %265 = vmatpush1.bf16.msra.mxu0 %v541_v11  ;;  %318 = vmatpush1.bf16.msra.mxu1 %v542_v12 }
   0xc   :  { %266 = vmatprep.subr.bf16.mxu0 %v543_v13  ;;  %319 = vmatprep.subr.bf16.mxu1 %v545_v14 }
   0xf   :  { %267 = vmatpush1.bf16.msra.mxu0 %v547_v15  ;;  %320 = vmatpush1.bf16.msra.mxu1 %v548_v16 }
  0x10   :  { %268 = vmatprep.subr.bf16.mxu0 %v549_v17  ;;  %321 = vmatprep.subr.bf16.mxu1 %v551_v18 }
  0x13   :  { %269 = vmatpush1.bf16.msra.mxu0 %v553_v19  ;;  %322 = vmatpush1.bf16.msra.mxu1 %v554_v20 }
  0x14   :  { %270 = vmatprep.subr.bf16.mxu0 %v555_v21  ;;  %323 = vmatprep.subr.bf16.mxu1 %v557_v22 }
  0x15   :  { %8 = vsyncpa [#allocation4], 0  ;;  %v565_v27 = vld [vmem:[%s734_s1 + $0x20] ss:$16 sps:$4 sm:$0xff]   ;;  %v566_v28 = vld [vmem:[%s734_s1 + $0x28] ss:$16 sps:$4 sm:$0xff]   ;;  %v419_v35 = vlaneseq }
  0x16   :  { %v567_v29 = vld [vmem:[%s734_s1 + $0x4] ss:$16 sps:$4 sm:$0xff]   ;;  %v569_v30 = vld [vmem:[%s734_s1 + $0xc] ss:$16 sps:$4 sm:$0xff]   ;;  %v571_v31 = vld [vmem:[%s734_s1] ss:$16 sps:$4 sm:$0xff]  }
  0x17   :  { %271 = vmatpush1.bf16.msra.mxu0 %v559_v23  ;;  %324 = vmatpush1.bf16.msra.mxu1 %v560_v24  ;;  %v572_v32 = vld [vmem:[%s734_s1 + $0x8] ss:$16 sps:$4 sm:$0xff]   ;;  %v573_v33 = vld [vmem:[%s733_s0] sm:$0xff]   ;;  %v420_v36 = vshrl.u32 %v419_v35, 7 }
  0x18   :  { %272 = vmatprep.subr.bf16.mxu0 %v561_v25  ;;  %325 = vmatprep.subr.bf16.mxu1 %v563_v26  ;;  %v574_v34 = vld [vmem:[%s733_s0 + $0x8] sm:$0xff]   ;;  %v417_v39 = vld [vmem:[%s735_s2] sm:$0xf]  ;;  %s598_s0 = smov [#allocation3]  }
  0x19   :  { %v421_v37 = vsub.s32 0, %v420_v36  ;;  %v429_v38 = vsub.s32 2, %v420_v36  ;;  %v425_v40 = vsub.s32 1, %v420_v36  ;;  %v433_v41 = vsub.s32 3, %v420_v36  ;;  %s476_s2 = sshll.u32 %s598_s0, 4  ;;  %s477_s2 = int_to_ptr.vmem [resolvable:$true] %s476_s2 }
  0x1a   :  { %s575_s27 = scalar_lea.vmem %s477_s2, 2048  ;;  %p580_p1 = scmp.lt.s32.totalorder %s477_s2, %s477_s2 }
  0x1b   :  { %273 = vmatpush1.bf16.msra.mxu0 %v565_v27  ;;  %326 = vmatpush1.bf16.msra.mxu1 %v566_v28  ;;  %v422_v42 = vrot.slane %v417_v39, %v421_v37  ;;  %v430_v43 = vrot.slane %v417_v39, %v429_v38  ;;  %v426_v44 = vrot.slane %v417_v39, %v425_v40  ;;  %p576_p0 = scmp.ne.s32.totalorder %s477_s2, %s575_s27  ;;  %p581_p2 = scmp.lt.s32.totalorder %s575_s27, %s575_s27 }
  0x1c   :  { %274 = vmatprep.subr.bf16.mxu0 %v567_v29  ;;  %327 = vmatprep.subr.bf16.mxu1 %v569_v30  ;;  %v434_v45 = vrot.slane %v417_v39, %v433_v41 }
  0x1d   :  { %p582_p3 = por %p581_p2, %p580_p1 }
  0x1f   :  { %275 = vmatpush1.bf16.msra.mxu0 %v571_v31  ;;  %328 = vmatpush1.bf16.msra.mxu1 %v572_v32  ;;  %p583_p4 = pnand %p582_p3, %p576_p0 }
  0x22   :  { %293 = vmatmul.mubr.bf16.vlgmr.msra.gmra.mxu0 %v573_v33  ;;  %346 = vmatmul.mubr.bf16.vlgmr.msra.gmra.mxu1 %v573_v33 }
  0x23   :  { %302 = vmatprep.mubr.bf16.mxu0 %v597_v2  ;;  %355 = vmatprep.mubr.bf16.mxu1 %v597_v2 }
  0x2a   :  { %303 = vmatmul.mubr.bf16.gmra.mxu0 %v574_v34  ;;  %356 = vmatmul.mubr.bf16.gmra.mxu1 %v574_v34 }
  0xe2   :  { %v294_v46 = vpop.f32.mrf.mxu0  ;;  %v347_v47 = vpop.f32.mrf.mxu1 }
  0xe3   :  { %v439_v48 = vadd.f32 %v422_v42, %v294_v46  ;;  %v441_v49 = vadd.f32 %v430_v43, %v347_v47 }
  0xe4   :  { %v296_v50 = vpop.f32.mrf.mxu0  ;;  %v349_v51 = vpop.f32.mrf.mxu1 }
  0xe5   :  { %455 = vst [vmem:[#allocation3] sm:$0xff] %v439_v48  ;;  %457 = vst [vmem:[#allocation3 + $0x10] sm:$0xff] %v441_v49  ;;  %v440_v52 = vadd.f32 %v426_v44, %v296_v50  ;;  %v442_v53 = vadd.f32 %v434_v45, %v349_v51 }
  0xe6   :  { %v298_v54 = vpop.f32.mrf.mxu0  ;;  %v351_v55 = vpop.f32.mrf.mxu1 }
  0xe7   :  { %456 = vst [vmem:[#allocation3 + $0x8] sm:$0xff] %v440_v52  ;;  %458 = vst [vmem:[#allocation3 + $0x18] sm:$0xff] %v442_v53  ;;  %v443_v56 = vadd.f32 %v422_v42, %v298_v54  ;;  %v445_v57 = vadd.f32 %v430_v43, %v351_v55 }
  0xe8   :  { %v300_v58 = vpop.f32.mrf.mxu0  ;;  %v353_v59 = vpop.f32.mrf.mxu1 }
  0xe9   :  { %459 = vst [vmem:[#allocation3 + $0x20] sm:$0xff] %v443_v56  ;;  %461 = vst [vmem:[#allocation3 + $0x30] sm:$0xff] %v445_v57  ;;  %v444_v60 = vadd.f32 %v426_v44, %v300_v58  ;;  %v446_v61 = vadd.f32 %v434_v45, %v353_v59 }
  0xea   :  { %v304_v62 = vpop.f32.mrf.mxu0  ;;  %v357_v63 = vpop.f32.mrf.mxu1 }
  0xeb   :  { %460 = vst [vmem:[#allocation3 + $0x28] sm:$0xff] %v444_v60  ;;  %462 = vst [vmem:[#allocation3 + $0x38] sm:$0xff] %v446_v61  ;;  %v447_v0 = vadd.f32 %v422_v42, %v304_v62  ;;  %v449_v1 = vadd.f32 %v430_v43, %v357_v63 }
  0xec   :  { %v306_v2 = vpop.f32.mrf.mxu0  ;;  %v359_v3 = vpop.f32.mrf.mxu1 }
  0xed   :  { %463 = vst [vmem:[#allocation3 + $0x40] sm:$0xff] %v447_v0  ;;  %465 = vst [vmem:[#allocation3 + $0x50] sm:$0xff] %v449_v1  ;;  %v448_v4 = vadd.f32 %v426_v44, %v306_v2  ;;  %v450_v5 = vadd.f32 %v434_v45, %v359_v3 }
  0xee   :  { %v308_v6 = vpop.f32.mrf.mxu0  ;;  %v361_v7 = vpop.f32.mrf.mxu1 }
  0xef   :  { %464 = vst [vmem:[#allocation3 + $0x48] sm:$0xff] %v448_v4  ;;  %466 = vst [vmem:[#allocation3 + $0x58] sm:$0xff] %v450_v5  ;;  %v451_v8 = vadd.f32 %v422_v42, %v308_v6  ;;  %v453_v9 = vadd.f32 %v430_v43, %v361_v7 }
  0xf0   :  { %v310_v10 = vpop.f32.mrf.mxu0  ;;  %v363_v11 = vpop.f32.mrf.mxu1 }
  0xf1   :  { %467 = vst [vmem:[#allocation3 + $0x60] sm:$0xff] %v451_v8  ;;  %469 = vst [vmem:[#allocation3 + $0x70] sm:$0xff] %v453_v9  ;;  %v452_v12 = vadd.f32 %v426_v44, %v310_v10  ;;  %v454_v13 = vadd.f32 %v434_v45, %v363_v11 }
  0xf3   :  { %468 = vst [vmem:[#allocation3 + $0x68] sm:$0xff] %v452_v12  ;;  %470 = vst [vmem:[#allocation3 + $0x78] sm:$0xff] %v454_v13 }
  0xf4   :  { %586 = shalt.err (!%p583_p4)
}
  0xf5   :  { %s599_s28 = smov 512   ;;  %s600_s29 = smov 32  }
  0xf6   :  { %482 = dma.vmem_to_hbm [thread:$0]  %s477_s2, 2048, %s736_s3, [#allocation4], %s599_s28, %s599_s28, %s600_s29  }
  0xf7   :  { %595 = dma.done.wait [#allocation4], 2048  }
  0xf8   :  { %596 = vsyncadd [#allocation4], 4294965248 }
  0xf9   :  { %486 = vsyncpa [#allocation4], 1 }

</bundles_post_ra>
